<compile_context>
chip_gen: v7x
topology: tpu7x:2x2x1
jax: 0.10.0
libtpu: 0.0.40
codegen_flags: <defaults>
</compile_context>

<pallas_src>
import jax
import jax.numpy as jnp
import numpy as np
from jax import lax
from jax.experimental import pallas as pl
from jax.experimental.pallas import tpu as pltpu

BN_EPS = 1e-5
# Max-pool padding value.  cv1's output is post-ReLU (>= 0), so any negative
# padding value reproduces torch's -inf padding exactly.
NEG = -1e30


# ----------------------------------------------------------------------------
# Fused SPP kernel: cv1 (1x1+BN+ReLU) -> cascaded 5x5 max pools -> fused
# concat + cv2 (1x1+BN+ReLU).
# ----------------------------------------------------------------------------
def _spp_kernel(x_ref, w1_ref, b1_ref, w2_ref, b2_ref, o_ref, tpad_ref):
    # x_ref   : (1, H, W, C1)   one batch element, NHWC
    # w1_ref  : (C1, c_)        cv1 weight, BN scale folded in
    # b1_ref  : (1, c_)         cv1 folded-BN shift
    # w2_ref  : (4, c_, C2)     cv2 weight split per concat branch, BN scale folded
    # b2_ref  : (1, C2)         cv2 folded-BN shift
    # o_ref   : (1, H, W, C2)
    # tpad_ref: (H+4, W+4, c_)  VMEM scratch, NEG-padded buffer for 5x5 pools
    _, H, W, C1 = x_ref.shape
    c_ = w1_ref.shape[1]
    C2 = o_ref.shape[3]
    HW = H * W

    # ---- cv1: 1x1 conv (+ folded BN scale) + shift + ReLU, one big matmul ----
    x2d = x_ref[...].reshape(HW, C1)
    t = jnp.dot(x2d, w1_ref[...], preferred_element_type=jnp.float32)
    t = jnp.maximum(t + b1_ref[...], 0.0)                       # (HW, c_)

    # ---- cv2 accumulation, branch 0 = identity branch of the concat ----
    acc = jnp.dot(t, w2_ref[0], preferred_element_type=jnp.float32)   # (HW, C2)

    # ---- cascaded 5x5 stride-1 max pools == SPP branches k = 5, 9, 13 ----
    # Fill the padded scratch once; only the interior is rewritten below, so
    # the NEG border persists across the three cascade stages.
    tpad_ref[...] = jnp.full((H + 4, W + 4, c_), NEG, jnp.float32)
    cur = t.reshape(H, W, c_)
    for branch in range(1, 4):                     # statically unrolled
        tpad_ref[pl.ds(2, H), pl.ds(2, W), :] = cur
        # column max along W: 5 shifted maxima
        cm = tpad_ref[:, pl.ds(0, W), :]
        for dw in range(1, 5):
            cm = jnp.maximum(cm, tpad_ref[:, pl.ds(dw, W), :])
        # row max along H: 5 shifted maxima
        p = cm[0:H]
        for dh in range(1, 5):
            p = jnp.maximum(p, cm[dh:dh + H])
        # fused concat + cv2: accumulate this branch's contribution
        acc = acc + jnp.dot(p.reshape(HW, c_), w2_ref[branch],
                            preferred_element_type=jnp.float32)
        cur = p

    # ---- cv2 epilogue: folded-BN shift + ReLU ----
    y = jnp.maximum(acc + b2_ref[...], 0.0)
    o_ref[...] = y.reshape(1, H, W, C2).astype(o_ref.dtype)


def spp_pallas(x_nhwc, w1_io, b1, w2_branches, b2):
    """x_nhwc: (N,H,W,C1); w1_io: (C1,c_); w2_branches: (4,c_,C2)."""
    N, H, W, C1 = x_nhwc.shape
    c_ = w1_io.shape[1]
    C2 = w2_branches.shape[2]
    return pl.pallas_call(
        _spp_kernel,
        out_shape=jax.ShapeDtypeStruct((N, H, W, C2), jnp.float32),
        grid_spec=pltpu.PrefetchScalarGridSpec(
            num_scalar_prefetch=0,
            grid=(N,),
            in_specs=[
                pl.BlockSpec((1, H, W, C1), lambda n: (n, 0, 0, 0)),
                pl.BlockSpec((C1, c_), lambda n: (0, 0)),
                pl.BlockSpec((1, c_), lambda n: (0, 0)),
                pl.BlockSpec((4, c_, C2), lambda n: (0, 0, 0)),
                pl.BlockSpec((1, C2), lambda n: (0, 0)),
            ],
            out_specs=pl.BlockSpec((1, H, W, C2), lambda n: (n, 0, 0, 0)),
            scratch_shapes=[pltpu.VMEM((H + 4, W + 4, c_), jnp.float32)],
        ),
        compiler_params=pltpu.CompilerParams(
            dimension_semantics=("parallel",),
        ),
    )(x_nhwc, w1_io, b1.reshape(1, c_), w2_branches, b2.reshape(1, C2))


# ----------------------------------------------------------------------------
# Parameter construction (deterministic, synthetic) and BN folding
# ----------------------------------------------------------------------------
def make_conv_params(key, cin, cout):
    kw, kg, kb, km, kv = jax.random.split(key, 5)
    return {
        "w": jax.random.normal(kw, (cout, cin, 1, 1), jnp.float32) * 0.1,  # OIHW
        "gamma": 0.5 + jax.random.uniform(kg, (cout,), jnp.float32),
        "beta": jax.random.normal(kb, (cout,), jnp.float32) * 0.1,
        "mean": jax.random.normal(km, (cout,), jnp.float32) * 0.1,
        "var": 0.5 + jax.random.uniform(kv, (cout,), jnp.float32),
    }


def fold_bn(p):
    scale = p["gamma"] / jnp.sqrt(p["var"] + BN_EPS)
    shift = p["beta"] - p["mean"] * scale
    return scale, shift


def w_1x1_io(p):
    # (Cout, Cin, 1, 1) -> (Cin, Cout)
    return jnp.transpose(p["w"][:, :, 0, 0], (1, 0))


def init_spp_params(key, c1, c2):
    c_ = c1 // 2
    k1, k2 = jax.random.split(key)
    return {
        "cv1": make_conv_params(k1, c1, c_),
        "cv2": make_conv_params(k2, 4 * c_, c2),
    }


# ----------------------------------------------------------------------------
# SPP forward (NCHW in / NCHW out, matching the torch module)
# ----------------------------------------------------------------------------
@jax.jit
def spp_forward(x_nchw, params):
    x = jnp.transpose(x_nchw, (0, 2, 3, 1))                 # NCHW -> NHWC
    c_ = params["cv1"]["w"].shape[0]
    C2 = params["cv2"]["w"].shape[0]

    s1, b1 = fold_bn(params["cv1"])
    w1 = w_1x1_io(params["cv1"]) * s1[None, :]              # fold BN scale into weight

    s2, b2 = fold_bn(params["cv2"])
    w2 = (w_1x1_io(params["cv2"]) * s2[None, :]).reshape(4, c_, C2)

    out = spp_pallas(x, w1, b1, w2, b2)
    return jnp.transpose(out, (0, 3, 1, 2))                 # NHWC -> NCHW


# ----------------------------------------------------------------------------
# Pure-JAX reference (mirrors the PyTorch module) for a correctness check
# ----------------------------------------------------------------------------
def _conv_bn_relu_ref(x_nchw, p):
    y = lax.conv_general_dilated(x_nchw, p["w"], (1, 1), "VALID",
                                 dimension_numbers=("NCHW", "OIHW", "NCHW"))
    scale, shift = fold_bn(p)
    y = y * scale[None, :, None, None] + shift[None, :, None, None]
    return jnp.maximum(y, 0.0)


def _maxpool_ref(x_nchw, k):
    # nn.MaxPool2d(k, stride=1, padding=k//2): SAME padding with -inf
    return lax.reduce_window(x_nchw, -jnp.inf, lax.max,
                             (1, 1, k, k), (1, 1, 1, 1), "SAME")


def spp_ref(x_nchw, params):
    t = _conv_bn_relu_ref(x_nchw, params["cv1"])
    pools = [_maxpool_ref(t, k) for k in (5, 9, 13)]
    cat = jnp.concatenate([t] + pools, axis=1)
    return _conv_bn_relu_ref(cat, params["cv2"])


# ----------------------------------------------------------------------------
if __name__ == "__main__":
    key = jax.random.PRNGKey(0)
    kx, kp = jax.random.split(key)

    # Small demo shapes: batch=2, c1=c2=8 (so c_=4), spatial 16x16
    N, C1, C2, H, W = 2, 8, 8, 16, 16
    x = jax.random.normal(kx, (N, C1, H, W), jnp.float32)
    params = init_spp_params(kp, C1, C2)

    out = jax.block_until_ready(spp_forward(x, params))
    ref = jax.block_until_ready(spp_ref(x, params))

    np.testing.assert_allclose(np.asarray(out), np.asarray(ref),
                               rtol=1e-4, atol=1e-5)
    assert out.shape == (N, C2, H, W)

    print("KERNEL_OK")
</pallas_src>

<mosaic_0001>
module attributes {stable_mosaic.version = 11 : i64} {
  func.func @_spp_kernel(%arg0: i32, %arg1: memref<1x16x16x8xf32, #tpu.memory_space<vmem>>, %arg2: memref<8x4xf32, #tpu.memory_space<vmem>>, %arg3: memref<1x4xf32, #tpu.memory_space<vmem>>, %arg4: memref<4x4x8xf32, #tpu.memory_space<vmem>>, %arg5: memref<1x8xf32, #tpu.memory_space<vmem>>, %arg6: memref<1x16x16x8xf32, #tpu.memory_space<vmem>>, %arg7: memref<20x20x4xf32, #tpu.memory_space<vmem>>) attributes {dimension_semantics = [#tpu.dimension_semantics<parallel>], iteration_bounds = array<i64: 2>, scalar_prefetch = 0 : i64, scratch_operands = 1 : i64, tpu.core_type = #tpu.core_type<tc>, window_params = [{transform_indices = @transform_0, window_bounds = array<i64: 1, 16, 16, 8>}, {pipeline_mode = #tpu.pipeline_mode<synchronous>, transform_indices = @transform_1, window_bounds = array<i64: 8, 4>}, {pipeline_mode = #tpu.pipeline_mode<synchronous>, transform_indices = @transform_2, window_bounds = array<i64: 1, 4>}, {pipeline_mode = #tpu.pipeline_mode<synchronous>, transform_indices = @transform_3, window_bounds = array<i64: 4, 4, 8>}, {pipeline_mode = #tpu.pipeline_mode<synchronous>, transform_indices = @transform_4, window_bounds = array<i64: 1, 8>}, {transform_indices = @transform_5, window_bounds = array<i64: 1, 16, 16, 8>}]} {
    %c0 = arith.constant 0 : index
    %c0_0 = arith.constant 0 : index
    %c0_1 = arith.constant 0 : index
    %c0_2 = arith.constant 0 : index
    %0 = vector.load %arg1[%c0, %c0_0, %c0_1, %c0_2] : memref<1x16x16x8xf32, #tpu.memory_space<vmem>>, vector<1x16x16x8xf32>
    %1 = vector.shape_cast %0 : vector<1x16x16x8xf32> to vector<256x8xf32>
    %c0_3 = arith.constant 0 : index
    %c0_4 = arith.constant 0 : index
    %2 = vector.load %arg2[%c0_3, %c0_4] : memref<8x4xf32, #tpu.memory_space<vmem>>, vector<8x4xf32>
    %cst = arith.constant dense<0.000000e+00> : vector<256x4xf32>
    %3 = tpu.matmul %1, %2, %cst {dimension_numbers = #tpu.dot_dimension_numbers<[1], [0], [0], [1], [0, 0, 1, 1], [], []>} : vector<256x8xf32>, vector<8x4xf32>, vector<256x4xf32> -> vector<256x4xf32>
    %c0_5 = arith.constant 0 : index
    %c0_6 = arith.constant 0 : index
    %4 = vector.load %arg3[%c0_5, %c0_6] : memref<1x4xf32, #tpu.memory_space<vmem>>, vector<1x4xf32>
    %5 = vector.broadcast %4 : vector<1x4xf32> to vector<256x4xf32>
    %6 = arith.addf %3, %5 : vector<256x4xf32>
    %cst_7 = arith.constant 0.000000e+00 : f32
    %7 = vector.broadcast %cst_7 : f32 to vector<256x4xf32>
    %8 = arith.maximumf %6, %7 : vector<256x4xf32>
    %c0_8 = arith.constant 0 : index
    %c0_9 = arith.constant 0 : index
    %c0_10 = arith.constant 0 : index
    %9 = vector.load %arg4[%c0_8, %c0_9, %c0_10] : memref<4x4x8xf32, #tpu.memory_space<vmem>>, vector<1x4x8xf32>
    %10 = vector.shape_cast %9 : vector<1x4x8xf32> to vector<4x8xf32>
    %cst_11 = arith.constant dense<0.000000e+00> : vector<256x8xf32>
    %11 = tpu.matmul %8, %10, %cst_11 {dimension_numbers = #tpu.dot_dimension_numbers<[1], [0], [0], [1], [0, 0, 1, 1], [], []>} : vector<256x4xf32>, vector<4x8xf32>, vector<256x8xf32> -> vector<256x8xf32>
    %cst_12 = arith.constant -1.000000e+30 : f32
    %12 = vector.broadcast %cst_12 : f32 to vector<20x20x4xf32>
    %c0_13 = arith.constant 0 : index
    %c0_14 = arith.constant 0 : index
    %c0_15 = arith.constant 0 : index
    %13 = vector.load %arg7[%c0_13, %c0_14, %c0_15] : memref<20x20x4xf32, #tpu.memory_space<vmem>>, vector<20x20x4xf32>
    tpu.vector_store %arg7[%c0_13, %c0_14, %c0_15], %12 {strides = array<i32>} : memref<20x20x4xf32, #tpu.memory_space<vmem>>, vector<20x20x4xf32>,
    %14 = vector.shape_cast %8 : vector<256x4xf32> to vector<16x16x4xf32>
    %c2 = arith.constant 2 : index
    %c2_16 = arith.constant 2 : index
    %c0_17 = arith.constant 0 : index
    %15 = vector.load %arg7[%c2, %c2_16, %c0_17] : memref<20x20x4xf32, #tpu.memory_space<vmem>>, vector<16x16x4xf32>
    tpu.vector_store %arg7[%c2, %c2_16, %c0_17], %14 {strides = array<i32>} : memref<20x20x4xf32, #tpu.memory_space<vmem>>, vector<16x16x4xf32>,
    %c0_18 = arith.constant 0 : index
    %c0_19 = arith.constant 0 : index
    %c0_20 = arith.constant 0 : index
    %16 = vector.load %arg7[%c0_18, %c0_19, %c0_20] : memref<20x20x4xf32, #tpu.memory_space<vmem>>, vector<20x16x4xf32>
    %c0_21 = arith.constant 0 : index
    %c1 = arith.constant 1 : index
    %c0_22 = arith.constant 0 : index
    %17 = vector.load %arg7[%c0_21, %c1, %c0_22] : memref<20x20x4xf32, #tpu.memory_space<vmem>>, vector<20x16x4xf32>
    %18 = arith.maximumf %16, %17 : vector<20x16x4xf32>
    %c0_23 = arith.constant 0 : index
    %c2_24 = arith.constant 2 : index
    %c0_25 = arith.constant 0 : index
    %19 = vector.load %arg7[%c0_23, %c2_24, %c0_25] : memref<20x20x4xf32, #tpu.memory_space<vmem>>, vector<20x16x4xf32>
    %20 = arith.maximumf %18, %19 : vector<20x16x4xf32>
    %c0_26 = arith.constant 0 : index
    %c3 = arith.constant 3 : index
    %c0_27 = arith.constant 0 : index
    %21 = vector.load %arg7[%c0_26, %c3, %c0_27] : memref<20x20x4xf32, #tpu.memory_space<vmem>>, vector<20x16x4xf32>
    %22 = arith.maximumf %20, %21 : vector<20x16x4xf32>
    %c0_28 = arith.constant 0 : index
    %c4 = arith.constant 4 : index
    %c0_29 = arith.constant 0 : index
    %23 = vector.load %arg7[%c0_28, %c4, %c0_29] : memref<20x20x4xf32, #tpu.memory_space<vmem>>, vector<20x16x4xf32>
    %24 = arith.maximumf %22, %23 : vector<20x16x4xf32>
    %25 = vector.extract_strided_slice %24 {offsets = [0, 0, 0], sizes = [16, 16, 4], strides = [1, 1, 1]} : vector<20x16x4xf32> to vector<16x16x4xf32>
    %26 = vector.extract_strided_slice %24 {offsets = [1, 0, 0], sizes = [16, 16, 4], strides = [1, 1, 1]} : vector<20x16x4xf32> to vector<16x16x4xf32>
    %27 = arith.maximumf %25, %26 : vector<16x16x4xf32>
    %28 = vector.extract_strided_slice %24 {offsets = [2, 0, 0], sizes = [16, 16, 4], strides = [1, 1, 1]} : vector<20x16x4xf32> to vector<16x16x4xf32>
    %29 = arith.maximumf %27, %28 : vector<16x16x4xf32>
    %30 = vector.extract_strided_slice %24 {offsets = [3, 0, 0], sizes = [16, 16, 4], strides = [1, 1, 1]} : vector<20x16x4xf32> to vector<16x16x4xf32>
    %31 = arith.maximumf %29, %30 : vector<16x16x4xf32>
    %32 = vector.extract_strided_slice %24 {offsets = [4, 0, 0], sizes = [16, 16, 4], strides = [1, 1, 1]} : vector<20x16x4xf32> to vector<16x16x4xf32>
    %33 = arith.maximumf %31, %32 : vector<16x16x4xf32>
    %34 = vector.shape_cast %33 : vector<16x16x4xf32> to vector<256x4xf32>
    %c1_30 = arith.constant 1 : index
    %c0_31 = arith.constant 0 : index
    %c0_32 = arith.constant 0 : index
    %35 = vector.load %arg4[%c1_30, %c0_31, %c0_32] : memref<4x4x8xf32, #tpu.memory_space<vmem>>, vector<1x4x8xf32>
    %36 = vector.shape_cast %35 : vector<1x4x8xf32> to vector<4x8xf32>
    %cst_33 = arith.constant dense<0.000000e+00> : vector<256x8xf32>
    %37 = tpu.matmul %34, %36, %cst_33 {dimension_numbers = #tpu.dot_dimension_numbers<[1], [0], [0], [1], [0, 0, 1, 1], [], []>} : vector<256x4xf32>, vector<4x8xf32>, vector<256x8xf32> -> vector<256x8xf32>
    %38 = arith.addf %11, %37 : vector<256x8xf32>
    %c2_34 = arith.constant 2 : index
    %c2_35 = arith.constant 2 : index
    %c0_36 = arith.constant 0 : index
    %39 = vector.load %arg7[%c2_34, %c2_35, %c0_36] : memref<20x20x4xf32, #tpu.memory_space<vmem>>, vector<16x16x4xf32>
    tpu.vector_store %arg7[%c2_34, %c2_35, %c0_36], %33 {strides = array<i32>} : memref<20x20x4xf32, #tpu.memory_space<vmem>>, vector<16x16x4xf32>,
    %c0_37 = arith.constant 0 : index
    %c0_38 = arith.constant 0 : index
    %c0_39 = arith.constant 0 : index
    %40 = vector.load %arg7[%c0_37, %c0_38, %c0_39] : memref<20x20x4xf32, #tpu.memory_space<vmem>>, vector<20x16x4xf32>
    %c0_40 = arith.constant 0 : index
    %c1_41 = arith.constant 1 : index
    %c0_42 = arith.constant 0 : index
    %41 = vector.load %arg7[%c0_40, %c1_41, %c0_42] : memref<20x20x4xf32, #tpu.memory_space<vmem>>, vector<20x16x4xf32>
    %42 = arith.maximumf %40, %41 : vector<20x16x4xf32>
    %c0_43 = arith.constant 0 : index
    %c2_44 = arith.constant 2 : index
    %c0_45 = arith.constant 0 : index
    %43 = vector.load %arg7[%c0_43, %c2_44, %c0_45] : memref<20x20x4xf32, #tpu.memory_space<vmem>>, vector<20x16x4xf32>
    %44 = arith.maximumf %42, %43 : vector<20x16x4xf32>
    %c0_46 = arith.constant 0 : index
    %c3_47 = arith.constant 3 : index
    %c0_48 = arith.constant 0 : index
    %45 = vector.load %arg7[%c0_46, %c3_47, %c0_48] : memref<20x20x4xf32, #tpu.memory_space<vmem>>, vector<20x16x4xf32>
    %46 = arith.maximumf %44, %45 : vector<20x16x4xf32>
    %c0_49 = arith.constant 0 : index
    %c4_50 = arith.constant 4 : index
    %c0_51 = arith.constant 0 : index
    %47 = vector.load %arg7[%c0_49, %c4_50, %c0_51] : memref<20x20x4xf32, #tpu.memory_space<vmem>>, vector<20x16x4xf32>
    %48 = arith.maximumf %46, %47 : vector<20x16x4xf32>
    %49 = vector.extract_strided_slice %48 {offsets = [0, 0, 0], sizes = [16, 16, 4], strides = [1, 1, 1]} : vector<20x16x4xf32> to vector<16x16x4xf32>
    %50 = vector.extract_strided_slice %48 {offsets = [1, 0, 0], sizes = [16, 16, 4], strides = [1, 1, 1]} : vector<20x16x4xf32> to vector<16x16x4xf32>
    %51 = arith.maximumf %49, %50 : vector<16x16x4xf32>
    %52 = vector.extract_strided_slice %48 {offsets = [2, 0, 0], sizes = [16, 16, 4], strides = [1, 1, 1]} : vector<20x16x4xf32> to vector<16x16x4xf32>
    %53 = arith.maximumf %51, %52 : vector<16x16x4xf32>
    %54 = vector.extract_strided_slice %48 {offsets = [3, 0, 0], sizes = [16, 16, 4], strides = [1, 1, 1]} : vector<20x16x4xf32> to vector<16x16x4xf32>
    %55 = arith.maximumf %53, %54 : vector<16x16x4xf32>
    %56 = vector.extract_strided_slice %48 {offsets = [4, 0, 0], sizes = [16, 16, 4], strides = [1, 1, 1]} : vector<20x16x4xf32> to vector<16x16x4xf32>
    %57 = arith.maximumf %55, %56 : vector<16x16x4xf32>
    %58 = vector.shape_cast %57 : vector<16x16x4xf32> to vector<256x4xf32>
    %c2_52 = arith.constant 2 : index
    %c0_53 = arith.constant 0 : index
    %c0_54 = arith.constant 0 : index
    %59 = vector.load %arg4[%c2_52, %c0_53, %c0_54] : memref<4x4x8xf32, #tpu.memory_space<vmem>>, vector<1x4x8xf32>
    %60 = vector.shape_cast %59 : vector<1x4x8xf32> to vector<4x8xf32>
    %cst_55 = arith.constant dense<0.000000e+00> : vector<256x8xf32>
    %61 = tpu.matmul %58, %60, %cst_55 {dimension_numbers = #tpu.dot_dimension_numbers<[1], [0], [0], [1], [0, 0, 1, 1], [], []>} : vector<256x4xf32>, vector<4x8xf32>, vector<256x8xf32> -> vector<256x8xf32>
    %62 = arith.addf %38, %61 : vector<256x8xf32>
    %c2_56 = arith.constant 2 : index
    %c2_57 = arith.constant 2 : index
    %c0_58 = arith.constant 0 : index
    %63 = vector.load %arg7[%c2_56, %c2_57, %c0_58] : memref<20x20x4xf32, #tpu.memory_space<vmem>>, vector<16x16x4xf32>
    tpu.vector_store %arg7[%c2_56, %c2_57, %c0_58], %57 {strides = array<i32>} : memref<20x20x4xf32, #tpu.memory_space<vmem>>, vector<16x16x4xf32>,
    %c0_59 = arith.constant 0 : index
    %c0_60 = arith.constant 0 : index
    %c0_61 = arith.constant 0 : index
    %64 = vector.load %arg7[%c0_59, %c0_60, %c0_61] : memref<20x20x4xf32, #tpu.memory_space<vmem>>, vector<20x16x4xf32>
    %c0_62 = arith.constant 0 : index
    %c1_63 = arith.constant 1 : index
    %c0_64 = arith.constant 0 : index
    %65 = vector.load %arg7[%c0_62, %c1_63, %c0_64] : memref<20x20x4xf32, #tpu.memory_space<vmem>>, vector<20x16x4xf32>
    %66 = arith.maximumf %64, %65 : vector<20x16x4xf32>
    %c0_65 = arith.constant 0 : index
    %c2_66 = arith.constant 2 : index
    %c0_67 = arith.constant 0 : index
    %67 = vector.load %arg7[%c0_65, %c2_66, %c0_67] : memref<20x20x4xf32, #tpu.memory_space<vmem>>, vector<20x16x4xf32>
    %68 = arith.maximumf %66, %67 : vector<20x16x4xf32>
    %c0_68 = arith.constant 0 : index
    %c3_69 = arith.constant 3 : index
    %c0_70 = arith.constant 0 : index
    %69 = vector.load %arg7[%c0_68, %c3_69, %c0_70] : memref<20x20x4xf32, #tpu.memory_space<vmem>>, vector<20x16x4xf32>
    %70 = arith.maximumf %68, %69 : vector<20x16x4xf32>
    %c0_71 = arith.constant 0 : index
    %c4_72 = arith.constant 4 : index
    %c0_73 = arith.constant 0 : index
    %71 = vector.load %arg7[%c0_71, %c4_72, %c0_73] : memref<20x20x4xf32, #tpu.memory_space<vmem>>, vector<20x16x4xf32>
    %72 = arith.maximumf %70, %71 : vector<20x16x4xf32>
    %73 = vector.extract_strided_slice %72 {offsets = [0, 0, 0], sizes = [16, 16, 4], strides = [1, 1, 1]} : vector<20x16x4xf32> to vector<16x16x4xf32>
    %74 = vector.extract_strided_slice %72 {offsets = [1, 0, 0], sizes = [16, 16, 4], strides = [1, 1, 1]} : vector<20x16x4xf32> to vector<16x16x4xf32>
    %75 = arith.maximumf %73, %74 : vector<16x16x4xf32>
    %76 = vector.extract_strided_slice %72 {offsets = [2, 0, 0], sizes = [16, 16, 4], strides = [1, 1, 1]} : vector<20x16x4xf32> to vector<16x16x4xf32>
    %77 = arith.maximumf %75, %76 : vector<16x16x4xf32>
    %78 = vector.extract_strided_slice %72 {offsets = [3, 0, 0], sizes = [16, 16, 4], strides = [1, 1, 1]} : vector<20x16x4xf32> to vector<16x16x4xf32>
    %79 = arith.maximumf %77, %78 : vector<16x16x4xf32>
    %80 = vector.extract_strided_slice %72 {offsets = [4, 0, 0], sizes = [16, 16, 4], strides = [1, 1, 1]} : vector<20x16x4xf32> to vector<16x16x4xf32>
    %81 = arith.maximumf %79, %80 : vector<16x16x4xf32>
    %82 = vector.shape_cast %81 : vector<16x16x4xf32> to vector<256x4xf32>
    %c3_74 = arith.constant 3 : index
    %c0_75 = arith.constant 0 : index
    %c0_76 = arith.constant 0 : index
    %83 = vector.load %arg4[%c3_74, %c0_75, %c0_76] : memref<4x4x8xf32, #tpu.memory_space<vmem>>, vector<1x4x8xf32>
    %84 = vector.shape_cast %83 : vector<1x4x8xf32> to vector<4x8xf32>
    %cst_77 = arith.constant dense<0.000000e+00> : vector<256x8xf32>
    %85 = tpu.matmul %82, %84, %cst_77 {dimension_numbers = #tpu.dot_dimension_numbers<[1], [0], [0], [1], [0, 0, 1, 1], [], []>} : vector<256x4xf32>, vector<4x8xf32>, vector<256x8xf32> -> vector<256x8xf32>
    %86 = arith.addf %62, %85 : vector<256x8xf32>
    %c0_78 = arith.constant 0 : index
    %c0_79 = arith.constant 0 : index
    %87 = vector.load %arg5[%c0_78, %c0_79] : memref<1x8xf32, #tpu.memory_space<vmem>>, vector<1x8xf32>
    %88 = vector.broadcast %87 : vector<1x8xf32> to vector<256x8xf32>
    %89 = arith.addf %86, %88 : vector<256x8xf32>
    %cst_80 = arith.constant 0.000000e+00 : f32
    %90 = vector.broadcast %cst_80 : f32 to vector<256x8xf32>
    %91 = arith.maximumf %89, %90 : vector<256x8xf32>
    %92 = vector.shape_cast %91 : vector<256x8xf32> to vector<1x16x16x8xf32>
    %c0_81 = arith.constant 0 : index
    %c0_82 = arith.constant 0 : index
    %c0_83 = arith.constant 0 : index
    %c0_84 = arith.constant 0 : index
    %93 = vector.load %arg6[%c0_81, %c0_82, %c0_83, %c0_84] : memref<1x16x16x8xf32, #tpu.memory_space<vmem>>, vector<1x16x16x8xf32>
    tpu.vector_store %arg6[%c0_81, %c0_82, %c0_83, %c0_84], %92 {strides = array<i32>} : memref<1x16x16x8xf32, #tpu.memory_space<vmem>>, vector<1x16x16x8xf32>,
    return
  }
  func.func @transform_0(%arg0: i32) -> (i32, i32, i32, i32) {
    %c0_i32 = arith.constant 0 : i32
    %c0_i32_0 = arith.constant 0 : i32
    %c0_i32_1 = arith.constant 0 : i32
    %c0_i32_2 = arith.constant 0 : i32
    return %arg0, %c0_i32, %c0_i32_0, %c0_i32_1 : i32, i32, i32, i32
  }
  func.func @transform_1(%arg0: i32) -> (i32, i32) {
    %c0_i32 = arith.constant 0 : i32
    %c0_i32_0 = arith.constant 0 : i32
    %c0_i32_1 = arith.constant 0 : i32
    return %c0_i32, %c0_i32_0 : i32, i32
  }
  func.func @transform_2(%arg0: i32) -> (i32, i32) {
    %c0_i32 = arith.constant 0 : i32
    %c0_i32_0 = arith.constant 0 : i32
    %c0_i32_1 = arith.constant 0 : i32
    return %c0_i32, %c0_i32_0 : i32, i32
  }
  func.func @transform_3(%arg0: i32) -> (i32, i32, i32) {
    %c0_i32 = arith.constant 0 : i32
    %c0_i32_0 = arith.constant 0 : i32
    %c0_i32_1 = arith.constant 0 : i32
    %c0_i32_2 = arith.constant 0 : i32
    return %c0_i32, %c0_i32_0, %c0_i32_1 : i32, i32, i32
  }
  func.func @transform_4(%arg0: i32) -> (i32, i32) {
    %c0_i32 = arith.constant 0 : i32
    %c0_i32_0 = arith.constant 0 : i32
    %c0_i32_1 = arith.constant 0 : i32
    return %c0_i32, %c0_i32_0 : i32, i32
  }
  func.func @transform_5(%arg0: i32) -> (i32, i32, i32, i32) {
    %c0_i32 = arith.constant 0 : i32
    %c0_i32_0 = arith.constant 0 : i32
    %c0_i32_1 = arith.constant 0 : i32
    %c0_i32_2 = arith.constant 0 : i32
    return %arg0, %c0_i32, %c0_i32_0, %c0_i32_1 : i32, i32, i32, i32
  }
}

</mosaic_0001>

<bundles_post_ra>
// kernel: spp_forward.1
= control target key start
LH: loop header
LB: loop body
LE: loop exit
PB: predicated region body
PF: predicated region fallthrough
CT: control target
= control target key end

     0   :  { %s4511_s18 = smov 0   ;;  %s5881_s0 = inlined_call_operand.vmem [shape: f32[2,16,16,8], index: 0, kind: input, shape index: {}]   ;;  %s5882_s1 = inlined_call_operand.vmem [shape: f32[8,4], index: 1, kind: input, shape index: {}]   ;;  %s5883_s2 = inlined_call_operand.vmem [shape: f32[1,4], index: 2, kind: input, shape index: {}]   ;;  %s5884_s3 = inlined_call_operand.vmem [shape: f32[4,4,8], index: 3, kind: input, shape index: {}]   ;;  %s5885_s4 = inlined_call_operand.vmem [shape: f32[1,8], index: 4, kind: input, shape index: {}]   ;;  %s5886_s5 = inlined_call_operand.vmem [shape: f32[2,16,16,8], index: 5, kind: output, shape index: {}]  }
   0x1 LB: > { %s3768_s19 = sadd.s32 4294967295, %s4478_s18   ;;  %p3772_p0 = scmp.ge.s32.totalorder %s4478_s18, 1  ;;  %s4478_s18 = sphi %s4511_s18, %s15_s18  }
   0x2   : > { %p187_p1 = scmp.lt.s32.totalorder %s4478_s18, 3 }
   0x4   : > { %p188_p2 = pnand %p3772_p0, %p187_p1 }
   0x6   : > { %191 = sbr.rel (%p188_p2) target bundleno = 706 (0x2c2), region = 40 }
   0xd   : > { %v257_v0 = vld [vmem:[%s5882_s1] sm:$0xff]  ;;  %p215_p3 = scmp.lt.s32.totalorder %s3768_s19, 1  ;;  %vm265_vm0 = vcmask 64512   ;;  %vm620_vm1 = vcmask 31744   ;;  %vm623_vm2 = vcmask 27648   ;;  %vm1301_vm3 = vcmask 1043456  }
   0xe   : > { %4115 = vmatprep.subr.mxu0 %v257_v0  ;;  %v4480_v33 = vmov -1e+30   ;;  %v3810_v34 = vld [vmem:[%s5884_s3 + $0x4] sm:$0xf]  ;;  %v4664_v35 = vld [vmem:[%s5884_s3] sm:$0xf] }
   0xf   : > { %4116 = vmatpush3.msra.mxu0 %v257_v0  ;;  %s5937_s19 = smov (!%p215_p3, %s3768_s19), 1  ;;  %629 = vst.msk [vmem:[#allocation2 + $0x38] sm:$0xff] %vm620_vm1, %v4480_v33  ;;  %621 = vst.msk [vmem:[#allocation2] sm:$0xff] %vm620_vm1, %v4480_v33  ;;  %4365 = vmatprep.subr.msk.mxu1 %vm1301_vm3, %v4664_v35  ;;  %v4675_v36 = vld [vmem:[%s5884_s3 + $0x8] sm:$0xf] }
  0x10   : > { %s3948_s22 = sshll.u32 %s5937_s19, 8  ;;  %630 = vst.msk [vmem:[#allocation2 + $0x40] sm:$0xf] %vm623_vm2, %v4480_v33  ;;  %624 = vst.msk [vmem:[#allocation2 + $0x10] sm:$0xf] %vm623_vm2, %v4480_v33  ;;  %4165 = vmatprep.subr.msk.mxu0 %vm1301_vm3, %v3810_v34  ;;  %4366 = vmatpush3.msk.msra.mxu1 %vm1301_vm3, %v4664_v35 }
  0x11   : > { %s4530_s25 = scalar_lea.vmem %s5881_s0, %s3948_s22  ;;  %622 = vst.msk [vmem:[#allocation2 + $0x8] sm:$0xff] %vm620_vm1, %v4480_v33  ;;  %625 = vst.msk [vmem:[#allocation2 + $0x18] sm:$0xff] %vm620_vm1, %v4480_v33  ;;  %4265 = vmatprep.subr.msk.mxu1 %vm1301_vm3, %v4675_v36  ;;  %v4682_v45 = vld [vmem:[%s5883_s2] ss:$0 sm:$0xff]  ;;  %s5761_s15 = scalar_lea.vmem %s5886_s5, %s3948_s22 }
  0x12   : > { %v225_v1 = vld [vmem:[%s4530_s25] sm:$0xff]  ;;  %v226_v2 = vld [vmem:[%s4530_s25 + $0x8] sm:$0xff]  ;;  %v227_v3 = vld [vmem:[%s4530_s25 + $0x10] sm:$0xff]  ;;  %626 = vst.msk [vmem:[#allocation2 + $0x20] sm:$0xff] %vm620_vm1, %v4480_v33 }
  0x13   : > { %4117 = vmatprep.mubr.msk.f32.mxu0 %vm265_vm0, %v225_v1  ;;  %v228_v4 = vld [vmem:[%s4530_s25 + $0x18] sm:$0xff]  ;;  %v229_v5 = vld [vmem:[%s4530_s25 + $0x20] sm:$0xff]  ;;  %v230_v6 = vld [vmem:[%s4530_s25 + $0x28] sm:$0xff]  ;;  %627 = vst.msk [vmem:[#allocation2 + $0x28] sm:$0xf] %vm623_vm2, %v4480_v33 }
  0x14   : > { %4118 = vmatmul.mubr.msk.f32.vlgmr.msra.gmra.mrb[0].mxu0 %vm265_vm0, %v226_v2  ;;  %v231_v7 = vld [vmem:[%s4530_s25 + $0x30] sm:$0xff]  ;;  %v232_v8 = vld [vmem:[%s4530_s25 + $0x38] sm:$0xff]  ;;  %v233_v9 = vld [vmem:[%s4530_s25 + $0x40] sm:$0xff]  ;;  %628 = vst.msk [vmem:[#allocation2 + $0x30] sm:$0xff] %vm620_vm1, %v4480_v33 }
  0x15   : > { %4120 = vmatprep.mubr.msk.f32.mxu0 %vm265_vm0, %v227_v3  ;;  %v234_v10 = vld [vmem:[%s4530_s25 + $0x48] sm:$0xff]  ;;  %v235_v11 = vld [vmem:[%s4530_s25 + $0x50] sm:$0xff]  ;;  %v236_v12 = vld [vmem:[%s4530_s25 + $0x58] sm:$0xff]  ;;  %631 = vst.msk [vmem:[#allocation2 + $0x48] sm:$0xff] %vm620_vm1, %v4480_v33  ;;  %4166 = vmatpush3.msk.msra.mxu0 %vm1301_vm3, %v3810_v34 }
  0x16   : > { %v237_v13 = vld [vmem:[%s4530_s25 + $0x60] sm:$0xff]  ;;  %v238_v14 = vld [vmem:[%s4530_s25 + $0x68] sm:$0xff]  ;;  %v239_v15 = vld [vmem:[%s4530_s25 + $0x70] sm:$0xff]  ;;  %632 = vst.msk [vmem:[#allocation2 + $0x50] sm:$0xff] %vm620_vm1, %v4480_v33  ;;  %4215 = vmatprep.subr.msk.mxu0 %vm1301_vm3, %v4664_v35 }
  0x17   : > { %v240_v16 = vld [vmem:[%s4530_s25 + $0x78] sm:$0xff]  ;;  %v241_v17 = vld [vmem:[%s4530_s25 + $0x80] sm:$0xff]  ;;  %v242_v18 = vld [vmem:[%s4530_s25 + $0x88] sm:$0xff]  ;;  %633 = vst.msk [vmem:[#allocation2 + $0x58] sm:$0xf] %vm623_vm2, %v4480_v33 }
  0x18   : > { %4121 = vmatmul.mubr.msk.f32.gmra.mrb[2].mxu0 %vm265_vm0, %v228_v4  ;;  %v243_v19 = vld [vmem:[%s4530_s25 + $0x90] sm:$0xff]  ;;  %v244_v20 = vld [vmem:[%s4530_s25 + $0x98] sm:$0xff]  ;;  %v245_v21 = vld [vmem:[%s4530_s25 + $0xa0] sm:$0xff]  ;;  %634 = vst.msk [vmem:[#allocation2 + $0x60] sm:$0xff] %vm620_vm1, %v4480_v33 }
  0x19   : > { %4123 = vmatprep.mubr.msk.f32.mxu0 %vm265_vm0, %v229_v5  ;;  %v246_v22 = vld [vmem:[%s4530_s25 + $0xa8] sm:$0xff]  ;;  %v247_v23 = vld [vmem:[%s4530_s25 + $0xb0] sm:$0xff]  ;;  %v248_v24 = vld [vmem:[%s4530_s25 + $0xb8] sm:$0xff]  ;;  %635 = vst.msk [vmem:[#allocation2 + $0x68] sm:$0xff] %vm620_vm1, %v4480_v33 }
  0x1a   : > { %v249_v25 = vld [vmem:[%s4530_s25 + $0xc0] sm:$0xff]  ;;  %v250_v26 = vld [vmem:[%s4530_s25 + $0xc8] sm:$0xff]  ;;  %v251_v27 = vld [vmem:[%s4530_s25 + $0xd0] sm:$0xff]  ;;  %636 = vst.msk [vmem:[#allocation2 + $0x70] sm:$0xf] %vm623_vm2, %v4480_v33 }
  0x1b   : > { %v252_v28 = vld [vmem:[%s4530_s25 + $0xd8] sm:$0xff]  ;;  %v253_v29 = vld [vmem:[%s4530_s25 + $0xe0] sm:$0xff]  ;;  %v254_v30 = vld [vmem:[%s4530_s25 + $0xe8] sm:$0xff]  ;;  %637 = vst.msk [vmem:[#allocation2 + $0x78] sm:$0xff] %vm620_vm1, %v4480_v33 }
  0x1c   : > { %4124 = vmatmul.mubr.msk.f32.gmra.mrb[4].mxu0 %vm265_vm0, %v230_v6  ;;  %v255_v31 = vld [vmem:[%s4530_s25 + $0xf0] sm:$0xff]  ;;  %v256_v32 = vld [vmem:[%s4530_s25 + $0xf8] sm:$0xff]  ;;  %638 = vst.msk [vmem:[#allocation2 + $0x80] sm:$0xff] %vm620_vm1, %v4480_v33  ;;  %640 = vst.msk [vmem:[#allocation2 + $0x90] sm:$0xff] %vm620_vm1, %v4480_v33 }
  0x1d   : > { %4126 = vmatprep.mubr.msk.f32.mxu0 %vm265_vm0, %v231_v7  ;;  %639 = vst.msk [vmem:[#allocation2 + $0x88] sm:$0xf] %vm623_vm2, %v4480_v33  ;;  %642 = vst.msk [vmem:[#allocation2 + $0xa0] sm:$0xf] %vm623_vm2, %v4480_v33  ;;  %v715_v37 = vld [vmem:[#allocation2] sm:$0xff]  ;;  %v717_v39 = vld [vmem:[#allocation2 + $0x18] sm:$0xff] }
  0x1e   : > { %641 = vst.msk [vmem:[#allocation2 + $0x98] sm:$0xff] %vm620_vm1, %v4480_v33  ;;  %643 = vst.msk [vmem:[#allocation2 + $0xa8] sm:$0xff] %vm620_vm1, %v4480_v33  ;;  %v755_v38 = vld [vmem:[#allocation2 + $0x1] sm:$0xff]  ;;  %v757_v40 = vld [vmem:[#allocation2 + $0x19] sm:$0xff] }
  0x1f   : > { %644 = vst.msk [vmem:[#allocation2 + $0xb0] sm:$0xff] %vm620_vm1, %v4480_v33  ;;  %646 = vst.msk [vmem:[#allocation2 + $0xc0] sm:$0xff] %vm620_vm1, %v4480_v33  ;;  %v716_v41 = vld [vmem:[#allocation2 + $0x8] sm:$0xff]  ;;  %v718_v42 = vld [vmem:[#allocation2 + $0x20] sm:$0xff]  ;;  %v795_v46 = vmax.f32 %v715_v37, %v755_v38  ;;  %v797_v47 = vmax.f32 %v717_v39, %v757_v40 }
  0x20   : > { %4127 = vmatmul.mubr.msk.f32.gmra.mrb[6].mxu0 %vm265_vm0, %v232_v8  ;;  %645 = vst.msk [vmem:[#allocation2 + $0xb8] sm:$0xf] %vm623_vm2, %v4480_v33  ;;  %648 = vst.msk [vmem:[#allocation2 + $0xd0] sm:$0xf] %vm623_vm2, %v4480_v33  ;;  %v756_v43 = vld [vmem:[#allocation2 + $0x9] sm:$0xff]  ;;  %v758_v44 = vld [vmem:[#allocation2 + $0x21] sm:$0xff] }
  0x21   : > { %4129 = vmatprep.mubr.msk.f32.mxu0 %vm265_vm0, %v233_v9  ;;  %647 = vst.msk [vmem:[#allocation2 + $0xc8] sm:$0xff] %vm620_vm1, %v4480_v33  ;;  %649 = vst.msk [vmem:[#allocation2 + $0xd8] sm:$0xff] %vm620_vm1, %v4480_v33  ;;  %v835_v48 = vld [vmem:[#allocation2 + $0x2] sm:$0xff]  ;;  %v837_v50 = vld [vmem:[#allocation2 + $0x1a] sm:$0xff]  ;;  %v796_v51 = vmax.f32 %v716_v41, %v756_v43  ;;  %v798_v52 = vmax.f32 %v718_v42, %v758_v44 }
  0x22   : > { %650 = vst.msk [vmem:[#allocation2 + $0xe0] sm:$0xff] %vm620_vm1, %v4480_v33  ;;  %652 = vst.msk [vmem:[#allocation2 + $0xf0] sm:$0xff] %vm620_vm1, %v4480_v33  ;;  %v836_v55 = vld [vmem:[#allocation2 + $0xa] sm:$0xff]  ;;  %v838_v56 = vld [vmem:[#allocation2 + $0x22] sm:$0xff]  ;;  %v875_v58 = vmax.f32 %v795_v46, %v835_v48  ;;  %v877_v60 = vmax.f32 %v797_v47, %v837_v50 }
  0x23   : > { %651 = vst.msk [vmem:[#allocation2 + $0xe8] sm:$0xf] %vm623_vm2, %v4480_v33  ;;  %654 = vst.msk [vmem:[#allocation2 + $0x100] sm:$0xf] %vm623_vm2, %v4480_v33  ;;  %v915_v61 = vld [vmem:[#allocation2 + $0x3] sm:$0xff]  ;;  %v917_v62 = vld [vmem:[#allocation2 + $0x1b] sm:$0xff]  ;;  %v876_v2 = vmax.f32 %v796_v51, %v836_v55  ;;  %v878_v3 = vmax.f32 %v798_v52, %v838_v56 }
  0x24   : > { %4130 = vmatmul.mubr.msk.f32.gmra.mrb[8].mxu0 %vm265_vm0, %v234_v10  ;;  %653 = vst.msk [vmem:[#allocation2 + $0xf8] sm:$0xff] %vm620_vm1, %v4480_v33  ;;  %655 = vst.msk [vmem:[#allocation2 + $0x108] sm:$0xff] %vm620_vm1, %v4480_v33  ;;  %v916_v9 = vld [vmem:[#allocation2 + $0xb] sm:$0xff]  ;;  %v918_v10 = vld [vmem:[#allocation2 + $0x23] sm:$0xff] }
  0x25   : > { %4132 = vmatprep.mubr.msk.f32.mxu0 %vm265_vm0, %v235_v11  ;;  %656 = vst.msk [vmem:[#allocation2 + $0x110] sm:$0xff] %vm620_vm1, %v4480_v33  ;;  %658 = vst.msk [vmem:[#allocation2 + $0x120] sm:$0xff] %vm620_vm1, %v4480_v33  ;;  %v4724_v52 = vld [vmem:[#allocation2] sm:$0xff] }
  0x26   : > { %657 = vst.msk [vmem:[#allocation2 + $0x118] sm:$0xf] %vm623_vm2, %v4480_v33  ;;  %660 = vst.msk [vmem:[#allocation2 + $0x130] sm:$0xf] %vm623_vm2, %v4480_v33 }
  0x27   : > { %659 = vst.msk [vmem:[#allocation2 + $0x128] sm:$0xff] %vm620_vm1, %v4480_v33  ;;  %661 = vst.msk [vmem:[#allocation2 + $0x138] sm:$0xff] %vm620_vm1, %v4480_v33 }
  0x28   : > { %4133 = vmatmul.mubr.msk.f32.gmra.mrb[10].mxu0 %vm265_vm0, %v236_v12  ;;  %662 = vst.msk [vmem:[#allocation2 + $0x140] sm:$0xff] %vm620_vm1, %v4480_v33  ;;  %664 = vst.msk [vmem:[#allocation2 + $0x150] sm:$0xff] %vm620_vm1, %v4480_v33 }
  0x29   : > { %4135 = vmatprep.mubr.msk.f32.mxu0 %vm265_vm0, %v237_v13  ;;  %663 = vst.msk [vmem:[#allocation2 + $0x148] sm:$0xf] %vm623_vm2, %v4480_v33  ;;  %666 = vst.msk [vmem:[#allocation2 + $0x160] sm:$0xf] %vm623_vm2, %v4480_v33  ;;  %v955_v13 = vmax.f32 %v875_v58, %v915_v61 }
  0x2a   : > { %665 = vst.msk [vmem:[#allocation2 + $0x158] sm:$0xff] %vm620_vm1, %v4480_v33  ;;  %667 = vst.msk [vmem:[#allocation2 + $0x168] sm:$0xff] %vm620_vm1, %v4480_v33 }
  0x2b   : > { %668 = vst.msk [vmem:[#allocation2 + $0x170] sm:$0xff] %vm620_vm1, %v4480_v33  ;;  %670 = vst.msk [vmem:[#allocation2 + $0x180] sm:$0xff] %vm620_vm1, %v4480_v33 }
  0x2c   : > { %4136 = vmatmul.mubr.msk.f32.gmra.mrb[12].mxu0 %vm265_vm0, %v238_v14  ;;  %669 = vst.msk [vmem:[#allocation2 + $0x178] sm:$0xf] %vm623_vm2, %v4480_v33  ;;  %672 = vst.msk [vmem:[#allocation2 + $0x190] sm:$0xf] %vm623_vm2, %v4480_v33 }
  0x2d   : > { %4138 = vmatprep.mubr.msk.f32.mxu0 %vm265_vm0, %v239_v15  ;;  %671 = vst.msk [vmem:[#allocation2 + $0x188] sm:$0xff] %vm620_vm1, %v4480_v33  ;;  %673 = vst.msk [vmem:[#allocation2 + $0x198] sm:$0xff] %vm620_vm1, %v4480_v33 }
  0x2e   : > { %674 = vst.msk [vmem:[#allocation2 + $0x1a0] sm:$0xff] %vm620_vm1, %v4480_v33  ;;  %676 = vst.msk [vmem:[#allocation2 + $0x1b0] sm:$0xff] %vm620_vm1, %v4480_v33 }
  0x2f   : > { %675 = vst.msk [vmem:[#allocation2 + $0x1a8] sm:$0xf] %vm623_vm2, %v4480_v33  ;;  %678 = vst.msk [vmem:[#allocation2 + $0x1c0] sm:$0xf] %vm623_vm2, %v4480_v33 }
  0x30   : > { %4139 = vmatmul.mubr.msk.f32.gmra.mrb[14].mxu0 %vm265_vm0, %v240_v16  ;;  %677 = vst.msk [vmem:[#allocation2 + $0x1b8] sm:$0xff] %vm620_vm1, %v4480_v33  ;;  %679 = vst.msk [vmem:[#allocation2 + $0x1c8] sm:$0xff] %vm620_vm1, %v4480_v33 }
  0x31   : > { %4141 = vmatprep.mubr.msk.f32.mxu0 %vm265_vm0, %v241_v17  ;;  %680 = vst.msk [vmem:[#allocation2 + $0x1d0] sm:$0xff] %vm620_vm1, %v4480_v33  ;;  %5908 = vst [vmem:[#allocation3_spill] sm:$0xff] %v4724_v52 }
  0x32   : > { %681 = vst.msk [vmem:[#allocation2 + $0x1d8] sm:$0xf] %vm623_vm2, %v4480_v33 }
  0x34   : > { %4142 = vmatmul.mubr.msk.f32.gmra.mrb[16].mxu0 %vm265_vm0, %v242_v18  ;;  %v957_v18 = vmax.f32 %v877_v60, %v917_v62  ;;  %v4736_v62 = vld [vmem:[#allocation2 + $0x1] sm:$0xff] }
  0x35   : > { %4144 = vmatprep.mubr.msk.f32.mxu0 %vm265_vm0, %v243_v19  ;;  %v751_v63 = vld [vmem:[#allocation2 + $0x1b0] sm:$0xff]  ;;  %v995_v19 = vld [vmem:[#allocation2 + $0x4] sm:$0xff]  ;;  %5909 = vst [vmem:[#allocation4_spill] sm:$0xff] %v4736_v62 }
  0x36   : > { %v1035_v38 = vmax.f32 %v955_v13, %v995_v19 }
  0x37   : > { %v791_v4 = vld [vmem:[#allocation2 + $0x1b1] sm:$0xff]  ;;  %v792_v6 = vld [vmem:[#allocation2 + $0x1b9] sm:$0xff]  ;;  %v753_v11 = vld [vmem:[#allocation2 + $0x1c8] sm:$0xff] }
  0x38   : > { %4145 = vmatmul.mubr.msk.f32.gmra.mrb[18].mxu0 %vm265_vm0, %v244_v20  ;;  %v752_v5 = vld [vmem:[#allocation2 + $0x1b8] sm:$0xff]  ;;  %v793_v14 = vld [vmem:[#allocation2 + $0x1c9] sm:$0xff]  ;;  %v831_v20 = vmax.f32 %v751_v63, %v791_v4 }
  0x39   : > { %4147 = vmatprep.mubr.msk.f32.mxu0 %vm265_vm0, %v245_v21  ;;  %v754_v15 = vld [vmem:[#allocation2 + $0x1d0] sm:$0xff]  ;;  %v832_v21 = vmax.f32 %v752_v5, %v792_v6  ;;  %v833_v33 = vmax.f32 %v753_v11, %v793_v14  ;;  %v952_v51 = vld [vmem:[#allocation2 + $0x1bb] sm:$0xff] }
  0x3a   : > { %v794_v16 = vld [vmem:[#allocation2 + $0x1d1] sm:$0xff] }
  0x3b   : > { %v834_v34 = vmax.f32 %v754_v15, %v794_v16  ;;  %v873_v39 = vld [vmem:[#allocation2 + $0x1ca] sm:$0xff]  ;;  %v874_v40 = vld [vmem:[#allocation2 + $0x1d2] sm:$0xff] }
  0x3c   : > { %4148 = vmatmul.mubr.msk.f32.gmra.mrb[20].mxu0 %vm265_vm0, %v246_v22  ;;  %v951_v50 = vld [vmem:[#allocation2 + $0x1b3] sm:$0xff]  ;;  %v4732_v60 = vmax.f32 %v833_v33, %v873_v39  ;;  %v953_v4 = vld [vmem:[#allocation2 + $0x1cb] sm:$0xff] }
  0x3d   : > { %4150 = vmatprep.mubr.msk.f32.mxu0 %vm265_vm0, %v247_v23  ;;  %v4734_v61 = vmax.f32 %v834_v34, %v874_v40  ;;  %v954_v5 = vld [vmem:[#allocation2 + $0x1d3] sm:$0xff] }
  0x3e   : > { %v4748_v14 = vld [vmem:[#allocation2 + $0x18] sm:$0xff] }
  0x3f   : > { %5910 = vst [vmem:[#allocation5_spill] sm:$0xff] %v4748_v14 }
  0x40   : > { %4151 = vmatmul.mubr.msk.f32.gmra.mrb[22].mxu0 %vm265_vm0, %v248_v24  ;;  %v997_v24 = vld [vmem:[#allocation2 + $0x1c] sm:$0xff] }
  0x41   : > { %4153 = vmatprep.mubr.msk.f32.mxu0 %vm265_vm0, %v249_v25  ;;  %v956_v25 = vmax.f32 %v876_v2, %v916_v9  ;;  %v4719_v42 = vmax.f32 %v957_v18, %v997_v24  ;;  %v4754_v24 = vld [vmem:[#allocation2 + $0x19] sm:$0xff] }
  0x42   : > { %5911 = vst [vmem:[#allocation6_spill] sm:$0xff] %v4754_v24 }
  0x43   : > { %v4746_v9 = vmax.f32 %v1035_v38, %v4719_v42 }
  0x44   : > { %4154 = vmatmul.mubr.msk.f32.gmra.mrb[24].mxu0 %vm265_vm0, %v250_v26  ;;  %v958_v26 = vmax.f32 %v878_v3, %v918_v10  ;;  %v1031_v3 = vld [vmem:[#allocation2 + $0x1b4] sm:$0xff] }
  0x45   : > { %4156 = vmatprep.mubr.msk.f32.mxu0 %vm265_vm0, %v251_v27  ;;  %v871_v27 = vld [vmem:[#allocation2 + $0x1b2] sm:$0xff] }
  0x46   : > { %v911_v43 = vmax.f32 %v831_v20, %v871_v27 }
  0x48   : > { %4157 = vmatmul.mubr.msk.f32.gmra.mrb[26].mxu0 %vm265_vm0, %v252_v28  ;;  %v872_v28 = vld [vmem:[#allocation2 + $0x1ba] sm:$0xff]  ;;  %v991_v11 = vmax.f32 %v911_v43, %v951_v50 }
  0x49   : > { %4159 = vmatprep.mubr.msk.f32.mxu0 %vm265_vm0, %v253_v29  ;;  %v912_v44 = vmax.f32 %v832_v21, %v872_v28 }
  0x4b   : > { %v992_v13 = vmax.f32 %v912_v44, %v952_v51  ;;  %v1033_v44 = vld [vmem:[#allocation2 + $0x1cc] sm:$0xff] }
  0x4c   : > { %4160 = vmatmul.mubr.msk.f32.gmra.mrb[28].mxu0 %vm265_vm0, %v254_v30 }
  0x4d   : > { %4162 = vmatprep.mubr.msk.f32.mxu0 %vm265_vm0, %v255_v31  ;;  %v996_v31 = vld [vmem:[#allocation2 + $0xc] sm:$0xff] }
  0x4e   : > { %v1036_v48 = vmax.f32 %v956_v25, %v996_v31  ;;  %v993_v31 = vmax.f32 %v4732_v60, %v953_v4 }
  0x50   : > { %4163 = vmatmul.mubr.msk.f32.gmra.mrb[30].mxu0 %vm265_vm0, %v256_v32  ;;  %v998_v32 = vld [vmem:[#allocation2 + $0x24] sm:$0xff] }
  0xe7   : > { %v4119_v49 = vpop.f32.mrb[0].mxu0 }
  0xe8   : > { %v4685_v53 = vadd.f32 %v4119_v49, %v4682_v45  ;;  %v428_v54 = vpop.f32.mrb[1].mxu0  ;;  %v4722_v49 = vmax.f32 %v958_v26, %v998_v32  ;;  %v994_v32 = vmax.f32 %v4734_v61, %v954_v5 }
  0xe9   : > { %v4688_v57 = vadd.f32 %v4682_v45, %v428_v54 }
  0xea   : > { %v5901_v59 = vmax.f32 %v4685_v53, 0.0  ;;  %v4752_v21 = vmax.f32 %v1036_v48, %v4722_v49 }
  0xeb   : > { %v5902_v0 = vmax.f32 %v4688_v57, 0.0  ;;  %v4122_v1 = vpop.f32.mrb[2].mxu0 }
  0xec   : > { %684 = vst.msk [vmem:[#allocation2 + $0x3a] sm:$0xff] %vm620_vm1, %v5901_v59  ;;  %v4696_v7 = vadd.f32 %v4122_v1, %v4682_v45  ;;  %v438_v8 = vpop.f32.mrb[3].mxu0 }
  0xed   : > { %683 = vst.msk [vmem:[#allocation2 + $0x32] sm:$0xff] %vm620_vm1, %v5902_v0  ;;  %v4702_v12 = vadd.f32 %v4682_v45, %v438_v8 }
  0xee   : > { %v5897_v17 = vmax.f32 %v4696_v7, 0.0 }
  0xef   : > { %v5900_v22 = vmax.f32 %v4702_v12, 0.0  ;;  %v4125_v23 = vpop.f32.mrb[4].mxu0 }
  0xf0   : > { %686 = vst.msk [vmem:[#allocation2 + $0x52] sm:$0xff] %vm620_vm1, %v5897_v17  ;;  %v4710_v29 = vadd.f32 %v4125_v23, %v4682_v45  ;;  %v448_v30 = vpop.f32.mrb[5].mxu0  ;;  %v1032_v23 = vld [vmem:[#allocation2 + $0x1bc] sm:$0xff] }
  0xf1   : > { %685 = vst.msk [vmem:[#allocation2 + $0x4a] sm:$0xff] %vm620_vm1, %v5900_v22  ;;  %v4716_v37 = vadd.f32 %v4682_v45, %v448_v30 }
  0xf2   : > { %v5894_v41 = vmax.f32 %v4710_v29, 0.0 }
  0xf3   : > { %v5895_v46 = vmax.f32 %v4716_v37, 0.0  ;;  %v4128_v47 = vpop.f32.mrb[6].mxu0  ;;  %v840_v20 = vld [vmem:[#allocation2 + $0x3a] sm:$0xff] }
  0xf4   : > { %688 = vst.msk [vmem:[#allocation2 + $0x6a] sm:$0xff] %vm620_vm1, %v5894_v41  ;;  %v4730_v54 = vadd.f32 %v4128_v47, %v4682_v45  ;;  %v458_v55 = vpop.f32.mrb[7].mxu0  ;;  %v719_v56 = vld [vmem:[#allocation2 + $0x30] sm:$0xff]  ;;  %v720_v2 = vld [vmem:[#allocation2 + $0x38] sm:$0xff] }
  0xf5   : > { %v759_v58 = vld [vmem:[#allocation2 + $0x31] sm:$0xff]  ;;  %687 = vst.msk [vmem:[#allocation2 + $0x62] sm:$0xff] %vm620_vm1, %v5895_v46  ;;  %v4742_v63 = vadd.f32 %v4682_v45, %v458_v55  ;;  %v760_v10 = vld [vmem:[#allocation2 + $0x39] sm:$0xff] }
  0xf6   : > { %v799_v1 = vmax.f32 %v719_v56, %v759_v58  ;;  %v5891_v6 = vmax.f32 %v4730_v54, 0.0  ;;  %v839_v8 = vld [vmem:[#allocation2 + $0x32] sm:$0xff]  ;;  %v800_v19 = vmax.f32 %v720_v2, %v760_v10  ;;  %v4773_v56 = vmax.f32 %v991_v11, %v1031_v3  ;;  %v920_v10 = vld [vmem:[#allocation2 + $0x3b] sm:$0xff] }
  0xf7   : > { %v5892_v15 = vmax.f32 %v4742_v63, 0.0  ;;  %v4131_v16 = vpop.f32.mrb[8].mxu0  ;;  %v919_v30 = vld [vmem:[#allocation2 + $0x33] sm:$0xff]  ;;  %v4775_v58 = vmax.f32 %v992_v13, %v1032_v23 }
  0xf8   : > { %v879_v18 = vmax.f32 %v799_v1, %v839_v8  ;;  %690 = vst.msk [vmem:[#allocation2 + $0x82] sm:$0xff] %vm620_vm1, %v5891_v6  ;;  %v4760_v25 = vadd.f32 %v4131_v16, %v4682_v45  ;;  %v468_v26 = vpop.f32.mrb[9].mxu0  ;;  %v721_v27 = vld [vmem:[#allocation2 + $0x48] sm:$0xff]  ;;  %v722_v40 = vld [vmem:[#allocation2 + $0x50] sm:$0xff]  ;;  %v880_v43 = vmax.f32 %v800_v19, %v840_v20  ;;  %v4788_v20 = vmax.f32 %v993_v31, %v1033_v44 }
  0xf9   : > { %v761_v28 = vld [vmem:[#allocation2 + $0x49] sm:$0xff]  ;;  %689 = vst.msk [vmem:[#allocation2 + $0x7a] sm:$0xff] %vm620_vm1, %v5892_v15  ;;  %v4770_v34 = vadd.f32 %v4682_v45, %v468_v26  ;;  %v1034_v47 = vld [vmem:[#allocation2 + $0x1d4] sm:$0xff] }
  0xfa   : > { %v801_v38 = vmax.f32 %v721_v27, %v761_v28  ;;  %v959_v39 = vmax.f32 %v879_v18, %v919_v30  ;;  %v5888_v48 = vmax.f32 %v4760_v25, 0.0  ;;  %v841_v50 = vld [vmem:[#allocation2 + $0x4a] sm:$0xff]  ;;  %v999_v51 = vld [vmem:[#allocation2 + $0x34] sm:$0xff]  ;;  %v960_v19 = vmax.f32 %v880_v43, %v920_v10 }
  0xfb   : > { %v762_v55 = vld [vmem:[#allocation2 + $0x51] sm:$0xff]  ;;  %v5890_v61 = vmax.f32 %v4770_v34, 0.0  ;;  %v4134_v1 = vpop.f32.mrb[10].mxu0  ;;  %v4790_v23 = vmax.f32 %v994_v32, %v1034_v47 }
  0xfc   : > { %v881_v2 = vmax.f32 %v801_v38, %v841_v50  ;;  %v921_v4 = vld [vmem:[#allocation2 + $0x4b] sm:$0xff]  ;;  %v4780_v5 = vmax.f32 %v959_v39, %v999_v51  ;;  %v802_v8 = vmax.f32 %v722_v40, %v762_v55  ;;  %692 = vst.msk [vmem:[#allocation2 + $0x9a] sm:$0xff] %vm620_vm1, %v5888_v48  ;;  %v4786_v3 = vadd.f32 %v4134_v1, %v4682_v45  ;;  %v478_v11 = vpop.f32.mrb[11].mxu0  ;;  %v723_v13 = vld [vmem:[#allocation2 + $0x60] sm:$0xff] }
  0xfd   : > { %v724_v16 = vld [vmem:[#allocation2 + $0x68] sm:$0xff]  ;;  %691 = vst.msk [vmem:[#allocation2 + $0x92] sm:$0xff] %vm620_vm1, %v5890_v61  ;;  %v4796_v26 = vadd.f32 %v4682_v45, %v478_v11  ;;  %v842_v39 = vld [vmem:[#allocation2 + $0x52] sm:$0xff]  ;;  %v1000_v40 = vld [vmem:[#allocation2 + $0x3c] sm:$0xff] }
  0xfe   : > { %v764_v18 = vld [vmem:[#allocation2 + $0x69] sm:$0xff]  ;;  %v763_v27 = vld [vmem:[#allocation2 + $0x61] sm:$0xff]  ;;  %v961_v28 = vmax.f32 %v881_v2, %v921_v4  ;;  %v1107_v30 = vmax.f32 %v4746_v9, %v4780_v5  ;;  %v5887_v31 = vmax.f32 %v4786_v3, 0.0  ;;  %v882_v47 = vmax.f32 %v802_v8, %v842_v39  ;;  %v922_v4 = vld [vmem:[#allocation2 + $0x53] sm:$0xff] }
  0xff   : > { %v804_v38 = vmax.f32 %v724_v16, %v764_v18  ;;  %v803_v43 = vmax.f32 %v723_v13, %v763_v27  ;;  %v1001_v32 = vld [vmem:[#allocation2 + $0x4c] sm:$0xff]  ;;  %v4801_v50 = vmax.f32 %v960_v19, %v1000_v40  ;;  %v5889_v51 = vmax.f32 %v4796_v26, 0.0  ;;  %v4137_v55 = vpop.f32.mrb[12].mxu0  ;;  %v843_v1 = vld [vmem:[#allocation2 + $0x62] sm:$0xff] }
 0x100   : > { %v844_v44 = vld [vmem:[#allocation2 + $0x6a] sm:$0xff]  ;;  %v4804_v10 = vmax.f32 %v961_v28, %v1001_v32  ;;  %v1077_v16 = vmax.f32 %v4719_v42, %v4780_v5  ;;  %694 = vst.msk [vmem:[#allocation2 + $0xb2] sm:$0xff] %vm620_vm1, %v5887_v31  ;;  %v4812_v18 = vadd.f32 %v4137_v55, %v4682_v45  ;;  %v488_v8 = vpop.f32.mrb[13].mxu0  ;;  %v962_v19 = vmax.f32 %v882_v47, %v922_v4  ;;  %v725_v28 = vld [vmem:[#allocation2 + $0x78] sm:$0xff] }
 0x101   : > { %v884_v2 = vmax.f32 %v804_v38, %v844_v44  ;;  %v883_v11 = vmax.f32 %v803_v43, %v843_v1  ;;  %v924_v13 = vld [vmem:[#allocation2 + $0x6b] sm:$0xff]  ;;  %v1108_v27 = vmax.f32 %v4752_v21, %v4801_v50  ;;  %v765_v38 = vld [vmem:[#allocation2 + $0x79] sm:$0xff]  ;;  %693 = vst.msk [vmem:[#allocation2 + $0xaa] sm:$0xff] %vm620_vm1, %v5889_v51  ;;  %v4820_v39 = vadd.f32 %v4682_v45, %v488_v8  ;;  %v923_v40 = vld [vmem:[#allocation2 + $0x63] sm:$0xff] }
 0x102   : > { %v1139_v32 = vmax.f32 %v1107_v30, %v4804_v10  ;;  %v1002_v55 = vld [vmem:[#allocation2 + $0x54] sm:$0xff]  ;;  %v805_v43 = vmax.f32 %v725_v28, %v765_v38  ;;  %v726_v1 = vld [vmem:[#allocation2 + $0x80] sm:$0xff]  ;;  %v5893_v47 = vmax.f32 %v4812_v18, 0.0  ;;  %v1004_v60 = vld [vmem:[#allocation2 + $0x6c] sm:$0xff]  ;;  %v1109_v48 = vmax.f32 %v1077_v16, %v4804_v10 }
 0x103   : > { %v964_v44 = vmax.f32 %v884_v2, %v924_v13  ;;  %v963_v4 = vmax.f32 %v883_v11, %v923_v40  ;;  %v4824_v33 = vmax.f32 %v962_v19, %v1002_v55  ;;  %v845_v31 = vld [vmem:[#allocation2 + $0x7a] sm:$0xff]  ;;  %v5896_v8 = vmax.f32 %v4820_v39, 0.0  ;;  %v4140_v61 = vpop.f32.mrb[14].mxu0  ;;  %v1003_v6 = vld [vmem:[#allocation2 + $0x64] sm:$0xff] }
 0x104   : > { %v766_v51 = vld [vmem:[#allocation2 + $0x81] sm:$0xff]  ;;  %v885_v30 = vmax.f32 %v805_v43, %v845_v31  ;;  %696 = vst.msk [vmem:[#allocation2 + $0xca] sm:$0xff] %vm620_vm1, %v5893_v47  ;;  %v4834_v11 = vadd.f32 %v4140_v61, %v4682_v45  ;;  %v498_v19 = vpop.f32.mrb[15].mxu0  ;;  %v727_v40 = vld [vmem:[#allocation2 + $0x90] sm:$0xff]  ;;  %v768_v46 = vld [vmem:[#allocation2 + $0x99] sm:$0xff] }
 0x105   : > { %v4828_v15 = vmax.f32 %v964_v44, %v1004_v60  ;;  %v806_v2 = vmax.f32 %v726_v1, %v766_v51  ;;  %v846_v13 = vld [vmem:[#allocation2 + $0x82] sm:$0xff]  ;;  %v4836_v28 = vmax.f32 %v963_v4, %v1003_v6  ;;  %v1140_v16 = vmax.f32 %v1108_v27, %v4824_v33  ;;  %v767_v31 = vld [vmem:[#allocation2 + $0x91] sm:$0xff]  ;;  %695 = vst.msk [vmem:[#allocation2 + $0xc2] sm:$0xff] %vm620_vm1, %v5896_v8 }
 0x106   : > { %5912 = vst [vmem:[#allocation7_spill] sm:$0xff] %v4834_v11  ;;  %v925_v38 = vld [vmem:[#allocation2 + $0x7b] sm:$0xff]  ;;  %v1078_v60 = vmax.f32 %v4722_v49, %v4801_v50  ;;  %v4845_v51 = vadd.f32 %v4682_v45, %v498_v19  ;;  %v807_v55 = vmax.f32 %v727_v40, %v767_v31  ;;  %v5898_v43 = vmax.f32 %v4834_v11, 0.0  ;;  %v926_v41 = vld [vmem:[#allocation2 + $0x83] sm:$0xff] }
 0x107   : > { %v965_v61 = vmax.f32 %v885_v30, %v925_v38  ;;  %v886_v44 = vmax.f32 %v806_v2, %v846_v13  ;;  %v728_v6 = vld [vmem:[#allocation2 + $0x98] sm:$0xff]  ;;  %v1171_v27 = vmax.f32 %v1139_v32, %v4836_v28  ;;  %v1172_v1 = vmax.f32 %v1140_v16, %v4828_v15  ;;  %v4143_v17 = vpop.f32.mrb[16].mxu0  ;;  %v1006_v16 = vld [vmem:[#allocation2 + $0x84] sm:$0xff] }
 0x108   : > { %v1005_v4 = vld [vmem:[#allocation2 + $0x7c] sm:$0xff]  ;;  %v1141_v47 = vmax.f32 %v1109_v48, %v4836_v28  ;;  %v5899_v8 = vmax.f32 %v4845_v51, 0.0  ;;  %v1110_v2 = vmax.f32 %v1078_v60, %v4824_v33  ;;  %v847_v13 = vld [vmem:[#allocation2 + $0x92] sm:$0xff]  ;;  %698 = vst.msk [vmem:[#allocation2 + $0xe2] sm:$0xff] %vm620_vm1, %v5898_v43  ;;  %v514_v32 = vadd.f32 %v4143_v17, %v4682_v45  ;;  %v508_v48 = vpop.f32.mrb[17].mxu0  ;;  %v729_v40 = vld [vmem:[#allocation2 + $0xa8] sm:$0xff] }
 0x109   : > { %v4852_v19 = vmax.f32 %v965_v61, %v1005_v4  ;;  %v966_v30 = vmax.f32 %v886_v44, %v926_v41  ;;  %4167 = vmatprep.mubr.msk.f32.mxu0 %vm620_vm1, %v1171_v27  ;;  %1854 = vst.msk [vmem:[#allocation2 + $0x32] sm:$0xff] %vm620_vm1, %v1171_v27  ;;  %1855 = vst.msk [vmem:[#allocation2 + $0x3a] sm:$0xff] %vm620_vm1, %v1172_v1  ;;  %v887_v38 = vmax.f32 %v807_v55, %v847_v13  ;;  %v769_v31 = vld [vmem:[#allocation2 + $0xa9] sm:$0xff]  ;;  %v927_v27 = vld [vmem:[#allocation2 + $0x93] sm:$0xff] }
 0x10a   : > { %v1079_v41 = vmax.f32 %v4780_v5, %v4804_v10  ;;  %v808_v60 = vmax.f32 %v728_v6, %v768_v46  ;;  %697 = vst.msk [vmem:[#allocation2 + $0xda] sm:$0xff] %vm620_vm1, %v5899_v8  ;;  %v509_v17 = vadd.f32 %v4682_v45, %v508_v48  ;;  %4168 = vmatmul.mubr.msk.f32.vlgmr.msra.gmra.mrb[32].mxu0 %vm620_vm1, %v1172_v1  ;;  %v848_v4 = vld [vmem:[#allocation2 + $0x9a] sm:$0xff]  ;;  %v604_v5 = vmax.f32 %v514_v32, 0.0 }
 0x10b   : > { %v1173_v61 = vmax.f32 %v1141_v47, %v4852_v19  ;;  %v4870_v44 = vmax.f32 %v966_v30, %v1006_v16  ;;  %v1142_v55 = vmax.f32 %v1110_v2, %v4828_v15  ;;  %v967_v46 = vmax.f32 %v887_v38, %v927_v27  ;;  %4216 = vmatpush3.msk.msra.mxu0 %vm1301_vm3, %v4664_v35  ;;  %v4146_v48 = vpop.f32.mrb[18].mxu0  ;;  %v1007_v1 = vld [vmem:[#allocation2 + $0x94] sm:$0xff] }
 0x10c   : > { %v1111_v6 = vmax.f32 %v1079_v41, %v4836_v28  ;;  %v888_v13 = vmax.f32 %v808_v60, %v848_v4  ;;  %v603_v43 = vmax.f32 %v509_v17, 0.0  ;;  %v928_v30 = vld [vmem:[#allocation2 + $0x9b] sm:$0xff]  ;;  %v1080_v2 = vmax.f32 %v4801_v50, %v4824_v33  ;;  %700 = vst.msk [vmem:[#allocation2 + $0xfa] sm:$0xff] %vm620_vm1, %v604_v5  ;;  %v518_v38 = vpop.f32.mrb[19].mxu0  ;;  %v849_v17 = vld [vmem:[#allocation2 + $0xaa] sm:$0xff] }
 0x10d   : > { %4170 = vmatprep.mubr.msk.f32.mxu0 %vm620_vm1, %v1173_v61  ;;  %1856 = vst.msk [vmem:[#allocation2 + $0x4a] sm:$0xff] %vm620_vm1, %v1173_v61  ;;  %v1174_v47 = vmax.f32 %v1142_v55, %v4870_v44  ;;  %v809_v32 = vmax.f32 %v729_v40, %v769_v31  ;;  %v524_v16 = vadd.f32 %v4146_v48, %v4682_v45  ;;  %v730_v61 = vld [vmem:[#allocation2 + $0xb0] sm:$0xff]  ;;  %v1008_v50 = vld [vmem:[#allocation2 + $0x9c] sm:$0xff] }
 0x10e   : > { %v4883_v35 = vmax.f32 %v967_v46, %v1007_v1  ;;  %v1143_v41 = vmax.f32 %v1111_v6, %v4852_v19  ;;  %v968_v60 = vmax.f32 %v888_v13, %v928_v30  ;;  %v770_v27 = vld [vmem:[#allocation2 + $0xb1] sm:$0xff]  ;;  %699 = vst.msk [vmem:[#allocation2 + $0xf2] sm:$0xff] %vm620_vm1, %v603_v43  ;;  %v519_v55 = vadd.f32 %v4682_v45, %v518_v38  ;;  %v731_v4 = vld [vmem:[#allocation2 + $0xc0] sm:$0xff] }
 0x10f   : > { %4171 = vmatmul.mubr.msk.f32.gmra.mrb[34].mxu0 %vm620_vm1, %v1174_v47  ;;  %1857 = vst.msk [vmem:[#allocation2 + $0x52] sm:$0xff] %vm620_vm1, %v1174_v47  ;;  %4241 = vmatprep.mubr.msk.f32.mxu1 %vm620_vm1, %v603_v43  ;;  %v1112_v40 = vmax.f32 %v1080_v2, %v4828_v15  ;;  %v889_v31 = vmax.f32 %v809_v32, %v849_v17  ;;  %v771_v46 = vld [vmem:[#allocation2 + $0xc1] sm:$0xff]  ;;  %v606_v6 = vmax.f32 %v524_v16, 0.0  ;;  %v929_v1 = vld [vmem:[#allocation2 + $0xab] sm:$0xff]  ;;  %v4149_v43 = vpop.f32.mrb[20].mxu0 }
 0x110   : > { %4242 = vmatmul.mubr.msk.f32.vlgmr.msra.gmra.mrb[0].mxu1 %vm620_vm1, %v604_v5  ;;  %v1175_v13 = vmax.f32 %v1143_v41, %v4883_v35  ;;  %v4894_v48 = vmax.f32 %v968_v60, %v1008_v50  ;;  %v1081_v30 = vmax.f32 %v4804_v10, %v4836_v28  ;;  %v605_v47 = vmax.f32 %v519_v55, 0.0  ;;  %v850_v16 = vld [vmem:[#allocation2 + $0xb2] sm:$0xff]  ;;  %v4904_v5 = vld [vmem:[%s5884_s3 + $0xc] sm:$0xf] }
 0x111   : > { %4266 = vmatpush3.msk.msra.mxu1 %vm1301_vm3, %v4675_v36  ;;  %v1144_v2 = vmax.f32 %v1112_v40, %v4870_v44  ;;  %v969_v32 = vmax.f32 %v889_v31, %v929_v1  ;;  %v810_v38 = vmax.f32 %v730_v61, %v770_v27  ;;  %702 = vst.msk [vmem:[#allocation2 + $0x112] sm:$0xff] %vm620_vm1, %v606_v6  ;;  %v528_v36 = vpop.f32.mrb[21].mxu0  ;;  %v1009_v10 = vld [vmem:[#allocation2 + $0xac] sm:$0xff]  ;;  %v851_v1 = vld [vmem:[#allocation2 + $0xc2] sm:$0xff]  ;;  %v1891_v14 = vld [vmem:[#allocation2 + $0x38] sm:$0xff] }
 0x112   : > { %v534_v41 = vadd.f32 %v4149_v43, %v4682_v45  ;;  %4173 = vmatprep.mubr.msk.f32.mxu0 %vm620_vm1, %v1175_v13  ;;  %1858 = vst.msk [vmem:[#allocation2 + $0x62] sm:$0xff] %vm620_vm1, %v1175_v13  ;;  %v1113_v60 = vmax.f32 %v1081_v30, %v4852_v19  ;;  %v1082_v17 = vmax.f32 %v4824_v33, %v4828_v15  ;;  %v732_v27 = vld [vmem:[#allocation2 + $0xc8] sm:$0xff]  ;;  %701 = vst.msk [vmem:[#allocation2 + $0x10a] sm:$0xff] %vm620_vm1, %v605_v47  ;;  %v2090_v24 = vld [vmem:[#allocation2 + $0x33] sm:$0xff] }
 0x113   : > { %v811_v61 = vmax.f32 %v731_v4, %v771_v46  ;;  %v772_v55 = vld [vmem:[#allocation2 + $0xc9] sm:$0xff]  ;;  %v529_v50 = vadd.f32 %v4682_v45, %v528_v36  ;;  %v1176_v40 = vmax.f32 %v1144_v2, %v4894_v48  ;;  %4244 = vmatprep.mubr.msk.f32.mxu1 %vm620_vm1, %v605_v47  ;;  %v4917_v31 = vmax.f32 %v969_v32, %v1009_v10  ;;  %v930_v4 = vld [vmem:[#allocation2 + $0xb3] sm:$0xff]  ;;  %v4152_v47 = vpop.f32.mrb[22].mxu0 }
 0x114   : > { %v890_v13 = vmax.f32 %v810_v38, %v850_v16  ;;  %v608_v43 = vmax.f32 %v534_v41, 0.0  ;;  %4245 = vmatmul.mubr.msk.f32.gmra.mrb[2].mxu1 %vm620_vm1, %v606_v6  ;;  %v1145_v33 = vmax.f32 %v1113_v60, %v4883_v35  ;;  %v1114_v46 = vmax.f32 %v1082_v17, %v4870_v44  ;;  %4315 = vmatprep.subr.msk.mxu1 %vm1301_vm3, %v4904_v5  ;;  %v931_v32 = vld [vmem:[#allocation2 + $0xc3] sm:$0xff]  ;;  %v733_v16 = vld [vmem:[#allocation2 + $0xd8] sm:$0xff]  ;;  %v538_v17 = vpop.f32.mrb[23].mxu0 }
 0x115   : > { %v891_v30 = vmax.f32 %v811_v61, %v851_v1  ;;  %v607_v36 = vmax.f32 %v529_v50, 0.0  ;;  %4174 = vmatmul.mubr.msk.f32.gmra.mrb[36].mxu0 %vm620_vm1, %v1176_v40  ;;  %1859 = vst.msk [vmem:[#allocation2 + $0x6a] sm:$0xff] %vm620_vm1, %v1176_v40  ;;  %v1083_v6 = vmax.f32 %v4836_v28, %v4852_v19  ;;  %v812_v38 = vmax.f32 %v732_v27, %v772_v55  ;;  %v773_v41 = vld [vmem:[#allocation2 + $0xd9] sm:$0xff]  ;;  %v852_v1 = vld [vmem:[#allocation2 + $0xca] sm:$0xff] }
 0x116   : > { %v970_v2 = vmax.f32 %v890_v13, %v930_v4  ;;  %704 = vst.msk [vmem:[#allocation2 + $0x12a] sm:$0xff] %vm620_vm1, %v608_v43  ;;  %v544_v10 = vadd.f32 %v4152_v47, %v4682_v45  ;;  %v1177_v60 = vmax.f32 %v1145_v33, %v4917_v31  ;;  %v1010_v61 = vld [vmem:[#allocation2 + $0xb4] sm:$0xff]  ;;  %v1146_v50 = vmax.f32 %v1114_v46, %v4894_v48  ;;  %v1011_v27 = vld [vmem:[#allocation2 + $0xc4] sm:$0xff] }
 0x117   : > { %v971_v40 = vmax.f32 %v891_v30, %v931_v32  ;;  %703 = vst.msk [vmem:[#allocation2 + $0x122] sm:$0xff] %vm620_vm1, %v607_v36  ;;  %v539_v13 = vadd.f32 %v4682_v45, %v538_v17  ;;  %4247 = vmatprep.mubr.msk.f32.mxu1 %vm620_vm1, %v607_v36  ;;  %v1115_v55 = vmax.f32 %v1083_v6, %v4883_v35  ;;  %v932_v46 = vld [vmem:[#allocation2 + $0xcb] sm:$0xff]  ;;  %v4155_v17 = vpop.f32.mrb[24].mxu0  ;;  %v856_v8 = vld [vmem:[#allocation2 + $0xfa] sm:$0xff] }
 0x118   : > { %v4934_v28 = vmax.f32 %v970_v2, %v1010_v61  ;;  %v892_v4 = vmax.f32 %v812_v38, %v852_v1  ;;  %v610_v47 = vmax.f32 %v544_v10, 0.0  ;;  %4176 = vmatprep.mubr.msk.f32.mxu0 %vm620_vm1, %v1177_v60  ;;  %1860 = vst.msk [vmem:[#allocation2 + $0x7a] sm:$0xff] %vm620_vm1, %v1177_v60  ;;  %4248 = vmatmul.mubr.msk.f32.gmra.mrb[4].mxu1 %vm620_vm1, %v608_v43  ;;  %v1012_v10 = vld [vmem:[#allocation2 + $0xcc] sm:$0xff]  ;;  %v853_v61 = vld [vmem:[#allocation2 + $0xda] sm:$0xff]  ;;  %v548_v60 = vpop.f32.mrb[25].mxu0 }
 0x119   : > { %v4941_v33 = vmax.f32 %v971_v40, %v1011_v27  ;;  %v1084_v30 = vmax.f32 %v4828_v15, %v4870_v44  ;;  %v813_v2 = vmax.f32 %v733_v16, %v773_v41  ;;  %v609_v32 = vmax.f32 %v539_v13, 0.0  ;;  %v734_v1 = vld [vmem:[#allocation2 + $0xe0] sm:$0xff]  ;;  %v735_v41 = vld [vmem:[#allocation2 + $0xf0] sm:$0xff] }
 0x11a   : > { %v1178_v36 = vmax.f32 %v1146_v50, %v4934_v28  ;;  %v1147_v6 = vmax.f32 %v1115_v55, %v4917_v31  ;;  %v972_v38 = vmax.f32 %v892_v4, %v932_v46  ;;  %706 = vst.msk [vmem:[#allocation2 + $0x142] sm:$0xff] %vm620_vm1, %v610_v47  ;;  %v554_v43 = vadd.f32 %v4155_v17, %v4682_v45  ;;  %v774_v16 = vld [vmem:[#allocation2 + $0xe1] sm:$0xff]  ;;  %v775_v50 = vld [vmem:[#allocation2 + $0xf1] sm:$0xff] }
 0x11b   : > { %v1116_v40 = vmax.f32 %v1084_v30, %v4894_v48  ;;  %v893_v27 = vmax.f32 %v813_v2, %v853_v61  ;;  %v1085_v15 = vmax.f32 %v4852_v19, %v4883_v35  ;;  %705 = vst.msk [vmem:[#allocation2 + $0x13a] sm:$0xff] %vm620_vm1, %v609_v32  ;;  %v549_v55 = vadd.f32 %v4682_v45, %v548_v60  ;;  %v933_v46 = vld [vmem:[#allocation2 + $0xdb] sm:$0xff] }
 0x11c   : > { %4177 = vmatmul.mubr.msk.f32.gmra.mrb[38].mxu0 %vm620_vm1, %v1178_v36  ;;  %1861 = vst.msk [vmem:[#allocation2 + $0x82] sm:$0xff] %vm620_vm1, %v1178_v36  ;;  %v1179_v13 = vmax.f32 %v1147_v6, %v4941_v33  ;;  %v4957_v4 = vmax.f32 %v972_v38, %v1012_v10  ;;  %4250 = vmatprep.mubr.msk.f32.mxu1 %vm620_vm1, %v609_v32  ;;  %v612_v30 = vmax.f32 %v554_v43, 0.0  ;;  %v4158_v6 = vpop.f32.mrb[26].mxu0  ;;  %v1013_v61 = vld [vmem:[#allocation2 + $0xdc] sm:$0xff]  ;;  %v2170_v62 = vld [vmem:[#allocation2 + $0x34] sm:$0xff] }
 0x11d   : > { %v1148_v19 = vmax.f32 %v1116_v40, %v4934_v28  ;;  %4251 = vmatmul.mubr.msk.f32.gmra.mrb[6].mxu1 %vm620_vm1, %v610_v47  ;;  %v973_v2 = vmax.f32 %v893_v27, %v933_v46  ;;  %v1117_v17 = vmax.f32 %v1085_v15, %v4917_v31  ;;  %v611_v36 = vmax.f32 %v549_v55, 0.0  ;;  %v736_v43 = vld [vmem:[#allocation2 + $0xf8] sm:$0xff]  ;;  %v854_v55 = vld [vmem:[#allocation2 + $0xe2] sm:$0xff]  ;;  %v1020_v22 = vld [vmem:[#allocation2 + $0x12c] sm:$0xff] }
 0x11e   : > { %4179 = vmatprep.mubr.msk.f32.mxu0 %vm620_vm1, %v1179_v13  ;;  %1862 = vst.msk [vmem:[#allocation2 + $0x92] sm:$0xff] %vm620_vm1, %v1179_v13  ;;  %v814_v38 = vmax.f32 %v734_v1, %v774_v16  ;;  %v1086_v32 = vmax.f32 %v4870_v44, %v4894_v48  ;;  %v815_v10 = vmax.f32 %v735_v41, %v775_v50  ;;  %v776_v60 = vld [vmem:[#allocation2 + $0xf9] sm:$0xff]  ;;  %708 = vst.msk [vmem:[#allocation2 + $0x15a] sm:$0xff] %vm620_vm1, %v612_v30  ;;  %v558_v13 = vpop.f32.mrb[27].mxu0  ;;  %v934_v16 = vld [vmem:[#allocation2 + $0xe3] sm:$0xff] }
 0x11f   : > { %v1180_v47 = vmax.f32 %v1148_v19, %v4957_v4  ;;  %v564_v40 = vadd.f32 %v4158_v6, %v4682_v45  ;;  %v4970_v27 = vmax.f32 %v973_v2, %v1013_v61  ;;  %v1149_v15 = vmax.f32 %v1117_v17, %v4941_v33  ;;  %v855_v46 = vld [vmem:[#allocation2 + $0xf2] sm:$0xff]  ;;  %707 = vst.msk [vmem:[#allocation2 + $0x152] sm:$0xff] %vm620_vm1, %v611_v36  ;;  %v2014_v0 = vld [vmem:[#allocation2 + $0x62] sm:$0xff] }
 0x120   : > { %v559_v44 = vadd.f32 %v4682_v45, %v558_v13  ;;  %v894_v1 = vmax.f32 %v814_v38, %v854_v55  ;;  %v1118_v41 = vmax.f32 %v1086_v32, %v4934_v28  ;;  %4253 = vmatprep.mubr.msk.f32.mxu1 %vm620_vm1, %v611_v36  ;;  %v895_v50 = vmax.f32 %v815_v10, %v855_v46  ;;  %v935_v17 = vld [vmem:[#allocation2 + $0xf3] sm:$0xff]  ;;  %v737_v38 = vld [vmem:[#allocation2 + $0x108] sm:$0xff]  ;;  %v4161_v10 = vpop.f32.mrb[28].mxu0 }
 0x121   : > { %4180 = vmatmul.mubr.msk.f32.gmra.mrb[40].mxu0 %vm620_vm1, %v1180_v47  ;;  %1863 = vst.msk [vmem:[#allocation2 + $0x9a] sm:$0xff] %vm620_vm1, %v1180_v47  ;;  %v614_v19 = vmax.f32 %v564_v40, 0.0  ;;  %v1181_v2 = vmax.f32 %v1149_v15, %v4970_v27  ;;  %4254 = vmatmul.mubr.msk.f32.gmra.mrb[8].mxu1 %vm620_vm1, %v612_v30  ;;  %v1087_v6 = vmax.f32 %v4883_v35, %v4917_v31  ;;  %v777_v13 = vld [vmem:[#allocation2 + $0x109] sm:$0xff]  ;;  %v1015_v35 = vld [vmem:[#allocation2 + $0xf4] sm:$0xff] }
 0x122   : > { %v816_v61 = vmax.f32 %v736_v43, %v776_v60  ;;  %v613_v32 = vmax.f32 %v559_v44, 0.0  ;;  %v974_v55 = vmax.f32 %v894_v1, %v934_v16  ;;  %v1150_v36 = vmax.f32 %v1118_v41, %v4957_v4  ;;  %v1014_v30 = vld [vmem:[#allocation2 + $0xe4] sm:$0xff]  ;;  %v568_v60 = vpop.f32.mrb[29].mxu0  ;;  %v936_v41 = vld [vmem:[#allocation2 + $0xfb] sm:$0xff] }
 0x123   : > { %v975_v46 = vmax.f32 %v895_v50, %v935_v17  ;;  %710 = vst.msk [vmem:[#allocation2 + $0x172] sm:$0xff] %vm620_vm1, %v614_v19  ;;  %4182 = vmatprep.mubr.msk.f32.mxu0 %vm620_vm1, %v1181_v2  ;;  %1864 = vst.msk [vmem:[#allocation2 + $0xaa] sm:$0xff] %vm620_vm1, %v1181_v2  ;;  %v574_v47 = vadd.f32 %v4161_v10, %v4682_v45  ;;  %v1119_v43 = vmax.f32 %v1087_v6, %v4941_v33 }
 0x124   : > { %v896_v40 = vmax.f32 %v816_v61, %v856_v8  ;;  %v1088_v15 = vmax.f32 %v4894_v48, %v4934_v28  ;;  %709 = vst.msk [vmem:[#allocation2 + $0x16a] sm:$0xff] %vm620_vm1, %v613_v32  ;;  %v4992_v44 = vmax.f32 %v974_v55, %v1014_v30  ;;  %v569_v16 = vadd.f32 %v4682_v45, %v568_v60  ;;  %v857_v48 = vld [vmem:[#allocation2 + $0x10a] sm:$0xff]  ;;  %v1016_v30 = vld [vmem:[#allocation2 + $0xfc] sm:$0xff] }
 0x125   : > { %v4994_v1 = vmax.f32 %v975_v46, %v1015_v35  ;;  %4256 = vmatprep.mubr.msk.f32.mxu1 %vm620_vm1, %v613_v32  ;;  %v817_v50 = vmax.f32 %v737_v38, %v777_v13  ;;  %v616_v2 = vmax.f32 %v574_v47, 0.0  ;;  %v1151_v17 = vmax.f32 %v1119_v43, %v4970_v27  ;;  %v738_v61 = vld [vmem:[#allocation2 + $0x110] sm:$0xff]  ;;  %v4164_v35 = vpop.f32.mrb[30].mxu0  ;;  %v739_v13 = vld [vmem:[#allocation2 + $0x120] sm:$0xff] }
 0x126   : > { %v976_v6 = vmax.f32 %v896_v40, %v936_v41  ;;  %v1120_v8 = vmax.f32 %v1088_v15, %v4957_v4  ;;  %4257 = vmatmul.mubr.msk.f32.gmra.mrb[10].mxu1 %vm620_vm1, %v614_v19  ;;  %v778_v55 = vld [vmem:[#allocation2 + $0x111] sm:$0xff]  ;;  %v1182_v10 = vmax.f32 %v1150_v36, %v4992_v44  ;;  %v615_v46 = vmax.f32 %v569_v16, 0.0  ;;  %v779_v32 = vld [vmem:[#allocation2 + $0x121] sm:$0xff]  ;;  %v578_v15 = vpop.f32.mrb[31].mxu0 }
 0x127   : > { %v897_v60 = vmax.f32 %v817_v50, %v857_v48  ;;  %v1089_v38 = vmax.f32 %v4917_v31, %v4941_v33  ;;  %712 = vst.msk [vmem:[#allocation2 + $0x18a] sm:$0xff] %vm620_vm1, %v616_v2  ;;  %v1183_v47 = vmax.f32 %v1151_v17, %v4994_v1  ;;  %v584_v40 = vadd.f32 %v4164_v35, %v4682_v45  ;;  %v937_v36 = vld [vmem:[#allocation2 + $0x10b] sm:$0xff] }
 0x128   : > { %v5006_v43 = vmax.f32 %v976_v6, %v1016_v30  ;;  %v1152_v19 = vmax.f32 %v1120_v8, %v4992_v44  ;;  %4183 = vmatmul.mubr.msk.f32.gmra.mrb[42].mxu0 %vm620_vm1, %v1182_v10  ;;  %1865 = vst.msk [vmem:[#allocation2 + $0xb2] sm:$0xff] %vm620_vm1, %v1182_v10  ;;  %711 = vst.msk [vmem:[#allocation2 + $0x182] sm:$0xff] %vm620_vm1, %v615_v46  ;;  %v579_v41 = vadd.f32 %v4682_v45, %v578_v15  ;;  %v740_v17 = vld [vmem:[#allocation2 + $0x128] sm:$0xff]  ;;  %v858_v35 = vld [vmem:[#allocation2 + $0x112] sm:$0xff] }
 0x129   : > { %v977_v31 = vmax.f32 %v897_v60, %v937_v36  ;;  %v1121_v16 = vmax.f32 %v1089_v38, %v4970_v27  ;;  %v818_v50 = vmax.f32 %v738_v61, %v778_v55  ;;  %v780_v6 = vld [vmem:[#allocation2 + $0x129] sm:$0xff]  ;;  %4185 = vmatprep.mubr.msk.f32.mxu0 %vm620_vm1, %v1183_v47  ;;  %1866 = vst.msk [vmem:[#allocation2 + $0xc2] sm:$0xff] %vm620_vm1, %v1183_v47  ;;  %v618_v48 = vmax.f32 %v584_v40, 0.0  ;;  %v781_v36 = vld [vmem:[#allocation2 + $0x139] sm:$0xff] }
 0x12a   : > { %v1184_v8 = vmax.f32 %v1152_v19, %v5006_v43  ;;  %v1017_v30 = vld [vmem:[#allocation2 + $0x10c] sm:$0xff]  ;;  %v1090_v10 = vmax.f32 %v4934_v28, %v4957_v4  ;;  %4259 = vmatprep.mubr.msk.f32.mxu1 %vm620_vm1, %v615_v46  ;;  %v819_v60 = vmax.f32 %v739_v13, %v779_v32  ;;  %v617_v61 = vmax.f32 %v579_v41, 0.0  ;;  %v859_v47 = vld [vmem:[#allocation2 + $0x122] sm:$0xff]  ;;  %v741_v32 = vld [vmem:[#allocation2 + $0x138] sm:$0xff] }
 0x12b   : > { %v5021_v38 = vmax.f32 %v977_v31, %v1017_v30  ;;  %v1153_v45 = vmax.f32 %v1121_v16, %v4994_v1  ;;  %v898_v55 = vmax.f32 %v818_v50, %v858_v35  ;;  %4260 = vmatmul.mubr.msk.f32.gmra.mrb[12].mxu1 %vm620_vm1, %v616_v2  ;;  %714 = vst.msk [vmem:[#allocation2 + $0x1a2] sm:$0xff] %vm620_vm1, %v618_v48  ;;  %v938_v19 = vld [vmem:[#allocation2 + $0x113] sm:$0xff]  ;;  %v939_v16 = vld [vmem:[#allocation2 + $0x123] sm:$0xff] }
 0x12c   : > { %1867 = vst.msk [vmem:[#allocation2 + $0xca] sm:$0xff] %vm620_vm1, %v1184_v8  ;;  %v1122_v40 = vmax.f32 %v1090_v10, %v4992_v44  ;;  %v899_v28 = vmax.f32 %v819_v60, %v859_v47  ;;  %v1091_v46 = vmax.f32 %v4941_v33, %v4970_v27  ;;  %v820_v13 = vmax.f32 %v740_v17, %v780_v6  ;;  %v1890_v15 = vld [vmem:[#allocation2 + $0x30] sm:$0xff]  ;;  %v1892_v30 = vld [vmem:[#allocation2 + $0x48] sm:$0xff]  ;;  %v1894_v60 = vld [vmem:[#allocation2 + $0x60] sm:$0xff] }
 0x12d   : > { %4186 = vmatmul.mubr.msk.f32.gmra.mrb[44].mxu0 %vm620_vm1, %v1184_v8  ;;  %v1185_v2 = vmax.f32 %v1153_v45, %v5021_v38  ;;  %713 = vst.msk [vmem:[#allocation2 + $0x19a] sm:$0xff] %vm620_vm1, %v617_v61  ;;  %v978_v31 = vmax.f32 %v898_v55, %v938_v19  ;;  %v860_v41 = vld [vmem:[#allocation2 + $0x12a] sm:$0xff]  ;;  %v1092_v50 = vmax.f32 %v4957_v4, %v4992_v44  ;;  %v1018_v17 = vld [vmem:[#allocation2 + $0x114] sm:$0xff] }
 0x12e   : > { %4262 = vmatprep.mubr.msk.f32.mxu1 %vm620_vm1, %v617_v61  ;;  %v1930_v33 = vld [vmem:[#allocation2 + $0x31] sm:$0xff]  ;;  %v1154_v6 = vmax.f32 %v1122_v40, %v5006_v43  ;;  %v979_v35 = vmax.f32 %v899_v28, %v939_v16  ;;  %v1123_v8 = vmax.f32 %v1091_v46, %v4994_v1  ;;  %v900_v10 = vmax.f32 %v820_v13, %v860_v41  ;;  %v1932_v45 = vld [vmem:[#allocation2 + $0x49] sm:$0xff]  ;;  %v1934_v40 = vld [vmem:[#allocation2 + $0x61] sm:$0xff] }
 0x12f   : > { %4188 = vmatprep.mubr.msk.f32.mxu0 %vm620_vm1, %v1185_v2  ;;  %1868 = vst.msk [vmem:[#allocation2 + $0xda] sm:$0xff] %vm620_vm1, %v1185_v2  ;;  %v5040_v55 = vmax.f32 %v978_v31, %v1018_v17  ;;  %v1019_v4 = vld [vmem:[#allocation2 + $0x124] sm:$0xff]  ;;  %v1124_v61 = vmax.f32 %v1092_v50, %v5006_v43  ;;  %4263 = vmatmul.mubr.msk.f32.gmra.mrb[14].mxu1 %vm620_vm1, %v618_v48  ;;  %v861_v16 = vld [vmem:[#allocation2 + $0x13a] sm:$0xff] }
 0x130   : > { %v940_v47 = vld [vmem:[#allocation2 + $0x12b] sm:$0xff]  ;;  %v821_v19 = vmax.f32 %v741_v32, %v781_v36  ;;  %v5044_v28 = vmax.f32 %v979_v35, %v1019_v4  ;;  %v1155_v46 = vmax.f32 %v1123_v8, %v5021_v38  ;;  %v1093_v41 = vmax.f32 %v4970_v27, %v4994_v1  ;;  %v742_v2 = vld [vmem:[#allocation2 + $0x140] sm:$0xff] }
 0x131   : > { %v980_v13 = vmax.f32 %v900_v10, %v940_v47  ;;  %v782_v31 = vld [vmem:[#allocation2 + $0x141] sm:$0xff]  ;;  %v1186_v17 = vmax.f32 %v1154_v6, %v5040_v55  ;;  %v1156_v50 = vmax.f32 %v1124_v61, %v5040_v55  ;;  %v1970_v48 = vmax.f32 %v1890_v15, %v1930_v33  ;;  %v2010_v32 = vld [vmem:[#allocation2 + $0x32] sm:$0xff]  ;;  %v2012_v36 = vld [vmem:[#allocation2 + $0x4a] sm:$0xff] }
 0x132   : > { %v901_v59 = vmax.f32 %v821_v19, %v861_v16  ;;  %v1187_v35 = vmax.f32 %v1155_v46, %v5044_v28  ;;  %v941_v8 = vld [vmem:[#allocation2 + $0x13b] sm:$0xff]  ;;  %v1125_v47 = vmax.f32 %v1093_v41, %v5021_v38  ;;  %v1972_v27 = vmax.f32 %v1892_v30, %v1932_v45  ;;  %v2092_v61 = vld [vmem:[#allocation2 + $0x4b] sm:$0xff]  ;;  %v2094_v41 = vld [vmem:[#allocation2 + $0x63] sm:$0xff] }
 0x133   : > { %v5052_v4 = vmax.f32 %v980_v13, %v1020_v22  ;;  %v1021_v10 = vld [vmem:[#allocation2 + $0x13c] sm:$0xff]  ;;  %4189 = vmatmul.mubr.msk.f32.gmra.mrb[46].mxu0 %vm620_vm1, %v1186_v17  ;;  %1869 = vst.msk [vmem:[#allocation2 + $0xe2] sm:$0xff] %vm620_vm1, %v1186_v17  ;;  %v1974_v15 = vmax.f32 %v1894_v60, %v1934_v40  ;;  %v2050_v33 = vmax.f32 %v1970_v48, %v2010_v32  ;;  %v1893_v46 = vld [vmem:[#allocation2 + $0x50] sm:$0xff]  ;;  %v1895_v32 = vld [vmem:[#allocation2 + $0x68] sm:$0xff] }
 0x134   : > { %v981_v6 = vmax.f32 %v901_v59, %v941_v8  ;;  %v822_v19 = vmax.f32 %v742_v2, %v782_v31  ;;  %v1931_v22 = vld [vmem:[#allocation2 + $0x39] sm:$0xff]  ;;  %v1933_v13 = vld [vmem:[#allocation2 + $0x51] sm:$0xff]  ;;  %4191 = vmatprep.mubr.msk.f32.mxu0 %vm620_vm1, %v1187_v35  ;;  %1870 = vst.msk [vmem:[#allocation2 + $0xf2] sm:$0xff] %vm620_vm1, %v1187_v35  ;;  %v1157_v45 = vmax.f32 %v1125_v47, %v5044_v28  ;;  %v862_v17 = vld [vmem:[#allocation2 + $0x142] sm:$0xff] }
 0x135   : > { %v1188_v30 = vmax.f32 %v1156_v50, %v5052_v4  ;;  %v2052_v16 = vmax.f32 %v1972_v27, %v2012_v36  ;;  %v1094_v59 = vmax.f32 %v4992_v44, %v5006_v43  ;;  %v2054_v40 = vmax.f32 %v1974_v15, %v2014_v0  ;;  %v2172_v31 = vld [vmem:[#allocation2 + $0x4c] sm:$0xff]  ;;  %v2174_v35 = vld [vmem:[#allocation2 + $0x64] sm:$0xff] }
 0x136   : > { %v5063_v60 = vmax.f32 %v981_v6, %v1021_v10  ;;  %v2130_v2 = vmax.f32 %v2050_v33, %v2090_v24  ;;  %v902_v48 = vmax.f32 %v822_v19, %v862_v17  ;;  %v1935_v8 = vld [vmem:[#allocation2 + $0x69] sm:$0xff]  ;;  %v1971_v52 = vmax.f32 %v1891_v14, %v1931_v22  ;;  %v2011_v6 = vld [vmem:[#allocation2 + $0x3a] sm:$0xff]  ;;  %v783_v33 = vld [vmem:[#allocation2 + $0x151] sm:$0xff] }
 0x137   : > { %1871 = vst.msk [vmem:[#allocation2 + $0xfa] sm:$0xff] %vm620_vm1, %v1188_v30  ;;  %v2132_v50 = vmax.f32 %v2052_v16, %v2092_v61  ;;  %v942_v47 = vld [vmem:[#allocation2 + $0x143] sm:$0xff]  ;;  %v1126_v27 = vmax.f32 %v1094_v59, %v5040_v55  ;;  %v1973_v11 = vmax.f32 %v1893_v46, %v1933_v13  ;;  %4192 = vmatmul.mubr.msk.f32.gmra.mrb[48].mxu0 %vm620_vm1, %v1188_v30  ;;  %v743_v15 = vld [vmem:[#allocation2 + $0x150] sm:$0xff]  ;;  %v1896_v14 = vld [vmem:[#allocation2 + $0x78] sm:$0xff] }
 0x138   : > { %v1022_v36 = vld [vmem:[#allocation2 + $0x144] sm:$0xff]  ;;  %v1189_v44 = vmax.f32 %v1157_v45, %v5063_v60  ;;  %v2134_v0 = vmax.f32 %v2054_v40, %v2094_v41  ;;  %v5069_v24 = vmax.f32 %v2130_v2, %v2170_v62  ;;  %v982_v10 = vmax.f32 %v902_v48, %v942_v47  ;;  %v2013_v17 = vld [vmem:[#allocation2 + $0x52] sm:$0xff]  ;;  %v2091_v41 = vld [vmem:[#allocation2 + $0x3b] sm:$0xff] }
 0x139   : > { %v5071_v19 = vmax.f32 %v2132_v50, %v2172_v31  ;;  %v1158_v61 = vmax.f32 %v1126_v27, %v5052_v4  ;;  %v1975_v16 = vmax.f32 %v1895_v32, %v1935_v8  ;;  %v2051_v59 = vmax.f32 %v1971_v52, %v2011_v6  ;;  %v1936_v46 = vld [vmem:[#allocation2 + $0x79] sm:$0xff]  ;;  %v2015_v30 = vld [vmem:[#allocation2 + $0x6a] sm:$0xff] }
 0x13a   : > { %4194 = vmatprep.mubr.msk.f32.mxu0 %vm620_vm1, %v1189_v44  ;;  %1872 = vst.msk [vmem:[#allocation2 + $0x10a] sm:$0xff] %vm620_vm1, %v1189_v44  ;;  %v5076_v22 = vmax.f32 %v2134_v0, %v2174_v35  ;;  %v2278_v62 = vmax.f32 %v4746_v9, %v5069_v24  ;;  %v5080_v13 = vmax.f32 %v982_v10, %v1022_v36  ;;  %v2093_v2 = vld [vmem:[#allocation2 + $0x53] sm:$0xff]  ;;  %v2095_v31 = vld [vmem:[#allocation2 + $0x6b] sm:$0xff]  ;;  %v2171_v48 = vld [vmem:[#allocation2 + $0x3c] sm:$0xff] }
 0x13b   : > { %v2053_v45 = vmax.f32 %v1973_v11, %v2013_v17  ;;  %v2055_v40 = vmax.f32 %v1975_v16, %v2015_v30  ;;  %v2131_v52 = vmax.f32 %v2051_v59, %v2091_v41  ;;  %v823_v32 = vmax.f32 %v743_v15, %v783_v33  ;;  %v2173_v9 = vld [vmem:[#allocation2 + $0x54] sm:$0xff]  ;;  %v2175_v36 = vld [vmem:[#allocation2 + $0x6c] sm:$0xff] }
 0x13c   : > { %v1095_v8 = vmax.f32 %v4994_v1, %v5021_v38  ;;  %v2310_v50 = vmax.f32 %v2278_v62, %v5071_v19  ;;  %v1190_v35 = vmax.f32 %v1158_v61, %v5080_v13  ;;  %v863_v27 = vld [vmem:[#allocation2 + $0x152] sm:$0xff]  ;;  %v1976_v44 = vmax.f32 %v1896_v14, %v1936_v46  ;;  %v2016_v16 = vld [vmem:[#allocation2 + $0x7a] sm:$0xff] }
 0x13d   : > { %v2133_v47 = vmax.f32 %v2053_v45, %v2093_v2  ;;  %v2135_v11 = vmax.f32 %v2055_v40, %v2095_v31  ;;  %v5086_v0 = vmax.f32 %v2131_v52, %v2171_v48  ;;  %v903_v10 = vmax.f32 %v823_v32, %v863_v27  ;;  %v744_v15 = vld [vmem:[#allocation2 + $0x158] sm:$0xff]  ;;  %v1897_v46 = vld [vmem:[#allocation2 + $0x80] sm:$0xff]  ;;  %v785_v27 = vld [vmem:[#allocation2 + $0x169] sm:$0xff] }
 0x13e   : > { %v1127_v6 = vmax.f32 %v1095_v8, %v5044_v28  ;;  %v784_v33 = vld [vmem:[#allocation2 + $0x159] sm:$0xff]  ;;  %v2342_v1 = vmax.f32 %v2310_v50, %v5076_v22  ;;  %4195 = vmatmul.mubr.msk.f32.gmra.mrb[50].mxu0 %vm620_vm1, %v1190_v35  ;;  %1873 = vst.msk [vmem:[#allocation2 + $0x112] sm:$0xff] %vm620_vm1, %v1190_v35  ;;  %v2056_v59 = vmax.f32 %v1976_v44, %v2016_v16  ;;  %v1937_v62 = vld [vmem:[#allocation2 + $0x81] sm:$0xff] }
 0x13f   : > { %v5092_v61 = vmax.f32 %v2133_v47, %v2173_v9  ;;  %v943_v17 = vld [vmem:[#allocation2 + $0x153] sm:$0xff]  ;;  %v2248_v14 = vmax.f32 %v4719_v42, %v5069_v24  ;;  %v5096_v30 = vmax.f32 %v2135_v11, %v2175_v36  ;;  %v2279_v45 = vmax.f32 %v4752_v21, %v5086_v0  ;;  %v2096_v2 = vld [vmem:[#allocation2 + $0x7b] sm:$0xff]  ;;  %v745_v36 = vld [vmem:[#allocation2 + $0x168] sm:$0xff] }
 0x140   : > { %v983_v41 = vmax.f32 %v903_v10, %v943_v17  ;;  %v1159_v40 = vmax.f32 %v1127_v6, %v5063_v60  ;;  %4267 = vmatprep.mubr.msk.f32.mxu1 %vm620_vm1, %v2342_v1  ;;  %2732 = vst.msk [vmem:[#allocation2 + $0x32] sm:$0xff] %vm620_vm1, %v2342_v1  ;;  %v1023_v31 = vld [vmem:[#allocation2 + $0x154] sm:$0xff]  ;;  %v2136_v52 = vmax.f32 %v2056_v59, %v2096_v2  ;;  %v2176_v48 = vld [vmem:[#allocation2 + $0x7c] sm:$0xff] }
 0x141   : > { %v2280_v42 = vmax.f32 %v2248_v14, %v5071_v19  ;;  %v824_v32 = vmax.f32 %v744_v15, %v784_v33  ;;  %v1096_v8 = vmax.f32 %v5006_v43, %v5040_v55  ;;  %v2311_v50 = vmax.f32 %v2279_v45, %v5092_v61  ;;  %v864_v35 = vld [vmem:[#allocation2 + $0x15a] sm:$0xff]  ;;  %v2017_v16 = vld [vmem:[#allocation2 + $0x82] sm:$0xff]  ;;  %v1898_v59 = vld [vmem:[#allocation2 + $0x90] sm:$0xff] }
 0x142   : > { %v5107_v21 = vmax.f32 %v983_v41, %v1023_v31  ;;  %v1977_v47 = vmax.f32 %v1897_v46, %v1937_v62  ;;  %v2249_v9 = vmax.f32 %v4722_v49, %v5086_v0  ;;  %v5111_v44 = vmax.f32 %v2136_v52, %v2176_v48  ;;  %v944_v33 = vld [vmem:[#allocation2 + $0x15b] sm:$0xff]  ;;  %v1938_v49 = vld [vmem:[#allocation2 + $0x91] sm:$0xff]  ;;  %v2097_v45 = vld [vmem:[#allocation2 + $0x83] sm:$0xff] }
 0x143   : > { %v2312_v11 = vmax.f32 %v2280_v42, %v5076_v22  ;;  %v904_v10 = vmax.f32 %v824_v32, %v864_v35  ;;  %v1128_v6 = vmax.f32 %v1096_v8, %v5052_v4  ;;  %v2343_v43 = vmax.f32 %v2311_v50, %v5096_v30  ;;  %v746_v2 = vld [vmem:[#allocation2 + $0x170] sm:$0xff]  ;;  %v2177_v50 = vld [vmem:[#allocation2 + $0x84] sm:$0xff] }
 0x144   : > { %v1191_v15 = vmax.f32 %v1159_v40, %v5107_v21  ;;  %v2057_v1 = vmax.f32 %v1977_v47, %v2017_v16  ;;  %v2281_v17 = vmax.f32 %v2249_v9, %v5092_v61  ;;  %v825_v41 = vmax.f32 %v745_v36, %v785_v27  ;;  %v786_v31 = vld [vmem:[#allocation2 + $0x171] sm:$0xff]  ;;  %v1024_v40 = vld [vmem:[#allocation2 + $0x15c] sm:$0xff] }
 0x145   : > { %v2344_v14 = vmax.f32 %v2312_v11, %v5111_v44  ;;  %v984_v46 = vmax.f32 %v904_v10, %v944_v33  ;;  %v1160_v62 = vmax.f32 %v1128_v6, %v5080_v13  ;;  %4268 = vmatmul.mubr.msk.f32.vlgmr.msra.gmra.mrb[16].mxu1 %vm620_vm1, %v2343_v43  ;;  %2733 = vst.msk [vmem:[#allocation2 + $0x3a] sm:$0xff] %vm620_vm1, %v2343_v43  ;;  %v865_v42 = vld [vmem:[#allocation2 + $0x16a] sm:$0xff]  ;;  %v2018_v11 = vld [vmem:[#allocation2 + $0x92] sm:$0xff] }
 0x146   : > { %4197 = vmatprep.mubr.msk.f32.mxu0 %vm620_vm1, %v1191_v15  ;;  %1874 = vst.msk [vmem:[#allocation2 + $0x122] sm:$0xff] %vm620_vm1, %v1191_v15  ;;  %v2137_v52 = vmax.f32 %v2057_v1, %v2097_v45  ;;  %v2313_v48 = vmax.f32 %v2281_v17, %v5096_v30  ;;  %v1097_v32 = vmax.f32 %v5021_v38, %v5044_v28  ;;  %v945_v47 = vld [vmem:[#allocation2 + $0x16b] sm:$0xff]  ;;  %v1939_v6 = vld [vmem:[#allocation2 + $0x99] sm:$0xff] }
 0x147   : > { %4316 = vmatpush3.msk.msra.mxu1 %vm1301_vm3, %v4904_v5  ;;  %4270 = vmatprep.mubr.msk.f32.mxu1 %vm620_vm1, %v2344_v14  ;;  %2734 = vst.msk [vmem:[#allocation2 + $0x4a] sm:$0xff] %vm620_vm1, %v2344_v14  ;;  %v5131_v8 = vmax.f32 %v984_v46, %v1024_v40  ;;  %v905_v35 = vmax.f32 %v825_v41, %v865_v42  ;;  %v1899_v5 = vld [vmem:[#allocation2 + $0x98] sm:$0xff]  ;;  %v747_v17 = vld [vmem:[#allocation2 + $0x180] sm:$0xff]  ;;  %v1025_v14 = vld [vmem:[#allocation2 + $0x16c] sm:$0xff] }
 0x148   : > { %v1978_v9 = vmax.f32 %v1898_v59, %v1938_v49  ;;  %v5133_v36 = vmax.f32 %v2137_v52, %v2177_v50  ;;  %v1129_v27 = vmax.f32 %v1097_v32, %v5063_v60  ;;  %v2250_v38 = vmax.f32 %v5069_v24, %v5071_v19  ;;  %v866_v33 = vld [vmem:[#allocation2 + $0x172] sm:$0xff]  ;;  %v787_v59 = vld [vmem:[#allocation2 + $0x181] sm:$0xff] }
 0x149   : > { %v826_v10 = vmax.f32 %v746_v2, %v786_v31  ;;  %v1192_v16 = vmax.f32 %v1160_v62, %v5131_v8  ;;  %v985_v43 = vmax.f32 %v905_v35, %v945_v47  ;;  %v1098_v1 = vmax.f32 %v5040_v55, %v5052_v4  ;;  %v2098_v45 = vld [vmem:[#allocation2 + $0x93] sm:$0xff]  ;;  %v1900_v47 = vld [vmem:[#allocation2 + $0xa8] sm:$0xff] }
 0x14a   : > { %v2058_v15 = vmax.f32 %v1978_v9, %v2018_v11  ;;  %v2345_v49 = vmax.f32 %v2313_v48, %v5133_v36  ;;  %v1161_v46 = vmax.f32 %v1129_v27, %v5107_v21  ;;  %v2282_v24 = vmax.f32 %v2250_v38, %v5076_v22  ;;  %v2178_v31 = vld [vmem:[#allocation2 + $0x94] sm:$0xff]  ;;  %v1940_v9 = vld [vmem:[#allocation2 + $0xa9] sm:$0xff] }
 0x14b   : > { %v906_v41 = vmax.f32 %v826_v10, %v866_v33  ;;  %4198 = vmatmul.mubr.msk.f32.gmra.mrb[52].mxu0 %vm620_vm1, %v1192_v16  ;;  %1875 = vst.msk [vmem:[#allocation2 + $0x12a] sm:$0xff] %vm620_vm1, %v1192_v16  ;;  %v5146_v62 = vmax.f32 %v985_v43, %v1025_v14  ;;  %v946_v55 = vld [vmem:[#allocation2 + $0x173] sm:$0xff]  ;;  %v1130_v40 = vmax.f32 %v1098_v1, %v5080_v13  ;;  %v2099_v43 = vld [vmem:[#allocation2 + $0x9b] sm:$0xff]  ;;  %v748_v1 = vld [vmem:[#allocation2 + $0x188] sm:$0xff] }
 0x14c   : > { %v2138_v2 = vmax.f32 %v2058_v15, %v2098_v45  ;;  %v1979_v52 = vmax.f32 %v1899_v5, %v1939_v6  ;;  %4271 = vmatmul.mubr.msk.f32.gmra.mrb[18].mxu1 %vm620_vm1, %v2345_v49  ;;  %2735 = vst.msk [vmem:[#allocation2 + $0x52] sm:$0xff] %vm620_vm1, %v2345_v49  ;;  %v2314_v48 = vmax.f32 %v2282_v24, %v5111_v44  ;;  %v2019_v32 = vld [vmem:[#allocation2 + $0x9a] sm:$0xff]  ;;  %v867_v6 = vld [vmem:[#allocation2 + $0x182] sm:$0xff]  ;;  %v1901_v24 = vld [vmem:[#allocation2 + $0xb0] sm:$0xff] }
 0x14d   : > { %v986_v42 = vmax.f32 %v906_v41, %v946_v55  ;;  %v2251_v50 = vmax.f32 %v5086_v0, %v5092_v61  ;;  %v827_v35 = vmax.f32 %v747_v17, %v787_v59  ;;  %v1193_v27 = vmax.f32 %v1161_v46, %v5146_v62  ;;  %v1026_v38 = vld [vmem:[#allocation2 + $0x174] sm:$0xff]  ;;  %v788_v17 = vld [vmem:[#allocation2 + $0x189] sm:$0xff] }
 0x14e   : > { %v5155_v11 = vmax.f32 %v2138_v2, %v2178_v31  ;;  %v1162_v10 = vmax.f32 %v1130_v40, %v5131_v8  ;;  %v2059_v5 = vmax.f32 %v1979_v52, %v2019_v32  ;;  %v1099_v0 = vmax.f32 %v5044_v28, %v5063_v60  ;;  %v947_v14 = vld [vmem:[#allocation2 + $0x183] sm:$0xff]  ;;  %v1941_v41 = vld [vmem:[#allocation2 + $0xb1] sm:$0xff] }
 0x14f   : > { %v5158_v16 = vmax.f32 %v986_v42, %v1026_v38  ;;  %v2283_v15 = vmax.f32 %v2251_v50, %v5096_v30  ;;  %v907_v33 = vmax.f32 %v827_v35, %v867_v6  ;;  %4200 = vmatprep.mubr.msk.f32.mxu0 %vm620_vm1, %v1193_v27  ;;  %1876 = vst.msk [vmem:[#allocation2 + $0x13a] sm:$0xff] %vm620_vm1, %v1193_v27  ;;  %v2179_v31 = vld [vmem:[#allocation2 + $0x9c] sm:$0xff]  ;;  %v2020_v52 = vld [vmem:[#allocation2 + $0xaa] sm:$0xff] }
 0x150   : > { %v2346_v59 = vmax.f32 %v2314_v48, %v5155_v11  ;;  %v2139_v49 = vmax.f32 %v2059_v5, %v2099_v43  ;;  %v1980_v46 = vmax.f32 %v1900_v47, %v1940_v9  ;;  %v2252_v45 = vmax.f32 %v5071_v19, %v5076_v22  ;;  %v1027_v42 = vld [vmem:[#allocation2 + $0x184] sm:$0xff]  ;;  %v749_v5 = vld [vmem:[#allocation2 + $0x198] sm:$0xff] }
 0x151   : > { %v1194_v2 = vmax.f32 %v1162_v10, %v5158_v16  ;;  %v2315_v28 = vmax.f32 %v2283_v15, %v5133_v36  ;;  %v987_v55 = vmax.f32 %v907_v33, %v947_v14  ;;  %v1131_v40 = vmax.f32 %v1099_v0, %v5107_v21  ;;  %v2100_v19 = vld [vmem:[#allocation2 + $0xab] sm:$0xff]  ;;  %v789_v6 = vld [vmem:[#allocation2 + $0x199] sm:$0xff] }
 0x152   : > { %4273 = vmatprep.mubr.msk.f32.mxu1 %vm620_vm1, %v2346_v59  ;;  %2736 = vst.msk [vmem:[#allocation2 + $0x62] sm:$0xff] %vm620_vm1, %v2346_v59  ;;  %v5173_v48 = vmax.f32 %v2139_v49, %v2179_v31  ;;  %v2060_v32 = vmax.f32 %v1980_v46, %v2020_v52  ;;  %v2284_v50 = vmax.f32 %v2252_v45, %v5111_v44  ;;  %v868_v27 = vld [vmem:[#allocation2 + $0x18a] sm:$0xff]  ;;  %v1942_v59 = vld [vmem:[#allocation2 + $0xc1] sm:$0xff] }
 0x153   : > { %v828_v35 = vmax.f32 %v748_v1, %v788_v17  ;;  %4201 = vmatmul.mubr.msk.f32.gmra.mrb[54].mxu0 %vm620_vm1, %v1194_v2  ;;  %1877 = vst.msk [vmem:[#allocation2 + $0x142] sm:$0xff] %vm620_vm1, %v1194_v2  ;;  %v5178_v47 = vmax.f32 %v987_v55, %v1027_v42  ;;  %v1163_v9 = vmax.f32 %v1131_v40, %v5146_v62  ;;  %v2021_v1 = vld [vmem:[#allocation2 + $0xb2] sm:$0xff]  ;;  %v1902_v17 = vld [vmem:[#allocation2 + $0xc0] sm:$0xff] }
 0x154   : > { %v1100_v38 = vmax.f32 %v5052_v4, %v5080_v13  ;;  %v1981_v10 = vmax.f32 %v1901_v24, %v1941_v41  ;;  %v2347_v43 = vmax.f32 %v2315_v28, %v5173_v48  ;;  %v2140_v15 = vmax.f32 %v2060_v32, %v2100_v19  ;;  %v2180_v14 = vld [vmem:[#allocation2 + $0xac] sm:$0xff]  ;;  %v869_v32 = vld [vmem:[#allocation2 + $0x19a] sm:$0xff] }
 0x155   : > { %v2316_v33 = vmax.f32 %v2284_v50, %v5155_v11  ;;  %v908_v0 = vmax.f32 %v828_v35, %v868_v27  ;;  %v1195_v49 = vmax.f32 %v1163_v9, %v5178_v47  ;;  %v948_v46 = vld [vmem:[#allocation2 + $0x18b] sm:$0xff]  ;;  %v2253_v4 = vmax.f32 %v5092_v61, %v5096_v30  ;;  %v2101_v28 = vld [vmem:[#allocation2 + $0xb3] sm:$0xff]  ;;  %v750_v50 = vld [vmem:[#allocation2 + $0x1a0] sm:$0xff] }
 0x156   : > { %v1132_v45 = vmax.f32 %v1100_v38, %v5131_v8  ;;  %v2061_v2 = vmax.f32 %v1981_v10, %v2021_v1  ;;  %4274 = vmatmul.mubr.msk.f32.gmra.mrb[20].mxu1 %vm620_vm1, %v2347_v43  ;;  %2737 = vst.msk [vmem:[#allocation2 + $0x6a] sm:$0xff] %vm620_vm1, %v2347_v43  ;;  %v5191_v24 = vmax.f32 %v2140_v15, %v2180_v14  ;;  %v1028_v31 = vld [vmem:[#allocation2 + $0x18c] sm:$0xff]  ;;  %v790_v35 = vld [vmem:[#allocation2 + $0x1a1] sm:$0xff]  ;;  %v2181_v38 = vld [vmem:[#allocation2 + $0xb4] sm:$0xff] }
 0x157   : > { %v988_v41 = vmax.f32 %v908_v0, %v948_v46  ;;  %v829_v55 = vmax.f32 %v749_v5, %v789_v6  ;;  %v1101_v40 = vmax.f32 %v5063_v60, %v5107_v21  ;;  %4203 = vmatprep.mubr.msk.f32.mxu0 %vm620_vm1, %v1195_v49  ;;  %1878 = vst.msk [vmem:[#allocation2 + $0x152] sm:$0xff] %vm620_vm1, %v1195_v49  ;;  %v2022_v5 = vld [vmem:[#allocation2 + $0xc2] sm:$0xff] }
 0x158   : > { %v1164_v52 = vmax.f32 %v1132_v45, %v5158_v16  ;;  %v2141_v61 = vmax.f32 %v2061_v2, %v2101_v28  ;;  %v2285_v42 = vmax.f32 %v2253_v4, %v5133_v36  ;;  %v1982_v19 = vmax.f32 %v1902_v17, %v1942_v59  ;;  %v949_v15 = vld [vmem:[#allocation2 + $0x19b] sm:$0xff]  ;;  %v1903_v17 = vld [vmem:[#allocation2 + $0xc8] sm:$0xff] }
 0x159   : > { %v2348_v9 = vmax.f32 %v2316_v33, %v5191_v24  ;;  %v5200_v27 = vmax.f32 %v988_v41, %v1028_v31  ;;  %v909_v10 = vmax.f32 %v829_v55, %v869_v32  ;;  %v1133_v60 = vmax.f32 %v1101_v40, %v5146_v62  ;;  %v1943_v59 = vld [vmem:[#allocation2 + $0xc9] sm:$0xff]  ;;  %v1029_v4 = vld [vmem:[#allocation2 + $0x19c] sm:$0xff] }
 0x15a   : > { %v5203_v6 = vmax.f32 %v2141_v61, %v2181_v38  ;;  %v2317_v43 = vmax.f32 %v2285_v42, %v5173_v48  ;;  %v2062_v0 = vmax.f32 %v1982_v19, %v2022_v5  ;;  %v2254_v1 = vmax.f32 %v5076_v22, %v5111_v44  ;;  %v2102_v46 = vld [vmem:[#allocation2 + $0xc3] sm:$0xff]  ;;  %v1904_v32 = vld [vmem:[#allocation2 + $0xd8] sm:$0xff] }
 0x15b   : > { %4276 = vmatprep.mubr.msk.f32.mxu1 %vm620_vm1, %v2348_v9  ;;  %2738 = vst.msk [vmem:[#allocation2 + $0x7a] sm:$0xff] %vm620_vm1, %v2348_v9  ;;  %v1196_v33 = vmax.f32 %v1164_v52, %v5200_v27  ;;  %v989_v49 = vmax.f32 %v909_v10, %v949_v15  ;;  %v1165_v14 = vmax.f32 %v1133_v60, %v5178_v47  ;;  %v870_v22 = vld [vmem:[#allocation2 + $0x1a2] sm:$0xff]  ;;  %v1944_v19 = vld [vmem:[#allocation2 + $0xd9] sm:$0xff]  ;;  %v2023_v38 = vld [vmem:[#allocation2 + $0xca] sm:$0xff] }
 0x15c   : > { %v830_v45 = vmax.f32 %v750_v50, %v790_v35  ;;  %v2349_v2 = vmax.f32 %v2317_v43, %v5203_v6  ;;  %v2142_v41 = vmax.f32 %v2062_v0, %v2102_v46  ;;  %v2286_v31 = vmax.f32 %v2254_v1, %v5155_v11  ;;  %v2182_v40 = vld [vmem:[#allocation2 + $0xc4] sm:$0xff]  ;;  %v2024_v46 = vld [vmem:[#allocation2 + $0xda] sm:$0xff] }
 0x15d   : > { %v1102_v28 = vmax.f32 %v5080_v13, %v5131_v8  ;;  %4204 = vmatmul.mubr.msk.f32.gmra.mrb[56].mxu0 %vm620_vm1, %v1196_v33  ;;  %1879 = vst.msk [vmem:[#allocation2 + $0x15a] sm:$0xff] %vm620_vm1, %v1196_v33  ;;  %v1069_v55 = vmax.f32 %v989_v49, %v1029_v4  ;;  %v1103_v61 = vmax.f32 %v5107_v21, %v5146_v62  ;;  %v950_v35 = vld [vmem:[#allocation2 + $0x1a3] sm:$0xff] }
 0x15e   : > { %v910_v52 = vmax.f32 %v830_v45, %v870_v22  ;;  %v1983_v42 = vmax.f32 %v1903_v17, %v1943_v59  ;;  %4277 = vmatmul.mubr.msk.f32.gmra.mrb[22].mxu1 %vm620_vm1, %v2349_v2  ;;  %2739 = vst.msk [vmem:[#allocation2 + $0x82] sm:$0xff] %vm620_vm1, %v2349_v2  ;;  %v5222_v50 = vmax.f32 %v2142_v41, %v2182_v40  ;;  %v1030_v0 = vld [vmem:[#allocation2 + $0x1a4] sm:$0xff]  ;;  %v2183_v41 = vld [vmem:[#allocation2 + $0xcc] sm:$0xff] }
 0x15f   : > { %v2318_v13 = vmax.f32 %v2286_v31, %v5191_v24  ;;  %v1134_v9 = vmax.f32 %v1102_v28, %v5158_v16  ;;  %v2255_v10 = vmax.f32 %v5096_v30, %v5133_v36  ;;  %v1197_v60 = vmax.f32 %v1165_v14, %v1069_v55  ;;  %v2103_v17 = vld [vmem:[#allocation2 + $0xcb] sm:$0xff]  ;;  %v1905_v2 = vld [vmem:[#allocation2 + $0xe0] sm:$0xff] }
 0x160   : > { %v990_v21 = vmax.f32 %v910_v52, %v950_v35  ;;  %v1135_v5 = vmax.f32 %v1103_v61, %v5178_v47  ;;  %v2063_v43 = vmax.f32 %v1983_v42, %v2023_v38  ;;  %v1984_v33 = vmax.f32 %v1904_v32, %v1944_v19  ;;  %v1945_v4 = vld [vmem:[#allocation2 + $0xe1] sm:$0xff]  ;;  %v1906_v52 = vld [vmem:[#allocation2 + $0xf0] sm:$0xff] }
 0x161   : > { %v2350_v15 = vmax.f32 %v2318_v13, %v5222_v50  ;;  %v1166_v1 = vmax.f32 %v1134_v9, %v5200_v27  ;;  %v2287_v59 = vmax.f32 %v2255_v10, %v5173_v48  ;;  %4206 = vmatprep.mubr.msk.f32.mxu0 %vm620_vm1, %v1197_v60  ;;  %1880 = vst.msk [vmem:[#allocation2 + $0x16a] sm:$0xff] %vm620_vm1, %v1197_v60  ;;  %v1946_v61 = vld [vmem:[#allocation2 + $0xf1] sm:$0xff]  ;;  %v2104_v19 = vld [vmem:[#allocation2 + $0xdb] sm:$0xff] }
 0x162   : > { %v1070_v49 = vmax.f32 %v990_v21, %v1030_v0  ;;  %v1167_v30 = vmax.f32 %v1135_v5, %v1069_v55  ;;  %v2143_v14 = vmax.f32 %v2063_v43, %v2103_v17  ;;  %v2256_v45 = vmax.f32 %v5111_v44, %v5155_v11  ;;  %v2025_v60 = vld [vmem:[#allocation2 + $0xe2] sm:$0xff] }
 0x163   : > { %4279 = vmatprep.mubr.msk.f32.mxu1 %vm620_vm1, %v2350_v15  ;;  %2740 = vst.msk [vmem:[#allocation2 + $0x92] sm:$0xff] %vm620_vm1, %v2350_v15  ;;  %v2319_v31 = vmax.f32 %v2287_v59, %v5203_v6  ;;  %v2064_v22 = vmax.f32 %v1984_v33, %v2024_v46  ;;  %v1104_v28 = vmax.f32 %v5131_v8, %v5158_v16  ;;  %v2105_v17 = vld [vmem:[#allocation2 + $0xe3] sm:$0xff]  ;;  %v1947_v46 = vld [vmem:[#allocation2 + $0xf9] sm:$0xff] }
 0x164   : > { %v1105_v40 = vmax.f32 %v5146_v62, %v5178_v47  ;;  %v1198_v42 = vmax.f32 %v1166_v1, %v1070_v49  ;;  %v1199_v44 = vmax.f32 %v1167_v30, %v4773_v56  ;;  %v5244_v32 = vmax.f32 %v2143_v14, %v2183_v41  ;;  %v2184_v62 = vld [vmem:[#allocation2 + $0xdc] sm:$0xff]  ;;  %v2026_v1 = vld [vmem:[#allocation2 + $0xf2] sm:$0xff] }
 0x165   : > { %v2288_v13 = vmax.f32 %v2256_v45, %v5191_v24  ;;  %v2144_v35 = vmax.f32 %v2064_v22, %v2104_v19  ;;  %v1136_v9 = vmax.f32 %v1104_v28, %v5200_v27  ;;  %v1985_v10 = vmax.f32 %v1905_v2, %v1945_v4  ;;  %v1907_v14 = vld [vmem:[#allocation2 + $0xf8] sm:$0xff]  ;;  %v1908_v22 = vld [vmem:[#allocation2 + $0x108] sm:$0xff] }
 0x166   : > { %v1137_v38 = vmax.f32 %v1105_v40, %v1069_v55  ;;  %4207 = vmatmul.mubr.msk.f32.gmra.mrb[58].mxu0 %vm620_vm1, %v1198_v42  ;;  %1881 = vst.msk [vmem:[#allocation2 + $0x172] sm:$0xff] %vm620_vm1, %v1198_v42  ;;  %1882 = vst.msk [vmem:[#allocation2 + $0x182] sm:$0xff] %vm620_vm1, %v1199_v44  ;;  %v2351_v8 = vmax.f32 %v2319_v31, %v5244_v32  ;;  %v2257_v21 = vmax.f32 %v5133_v36, %v5173_v48  ;;  %v2106_v31 = vld [vmem:[#allocation2 + $0xf3] sm:$0xff]  ;;  %v1948_v28 = vld [vmem:[#allocation2 + $0x109] sm:$0xff] }
 0x167   : > { %v2320_v47 = vmax.f32 %v2288_v13, %v5222_v50  ;;  %v1986_v5 = vmax.f32 %v1906_v52, %v1946_v61  ;;  %4209 = vmatprep.mubr.msk.f32.mxu0 %vm620_vm1, %v1199_v44  ;;  %v5256_v55 = vmax.f32 %v2144_v35, %v2184_v62  ;;  %v1168_v43 = vmax.f32 %v1136_v9, %v1070_v49  ;;  %v2185_v40 = vld [vmem:[#allocation2 + $0xe4] sm:$0xff]  ;;  %v1909_v13 = vld [vmem:[#allocation2 + $0x110] sm:$0xff] }
 0x168   : > { %v1169_v15 = vmax.f32 %v1137_v38, %v4773_v56  ;;  %v2065_v0 = vmax.f32 %v1985_v10, %v2025_v60  ;;  %4280 = vmatmul.mubr.msk.f32.gmra.mrb[24].mxu1 %vm620_vm1, %v2351_v8  ;;  %2741 = vst.msk [vmem:[#allocation2 + $0x9a] sm:$0xff] %vm620_vm1, %v2351_v8  ;;  %v2289_v59 = vmax.f32 %v2257_v21, %v5203_v6  ;;  %v1949_v35 = vld [vmem:[#allocation2 + $0x111] sm:$0xff]  ;;  %v2027_v10 = vld [vmem:[#allocation2 + $0xfa] sm:$0xff] }
 0x169   : > { %v2066_v33 = vmax.f32 %v1986_v5, %v2026_v1  ;;  %v2258_v36 = vmax.f32 %v5155_v11, %v5191_v24  ;;  %v1106_v30 = vmax.f32 %v5158_v16, %v5200_v27  ;;  %v2352_v45 = vmax.f32 %v2320_v47, %v5256_v55  ;;  %v2186_v27 = vld [vmem:[#allocation2 + $0xf4] sm:$0xff]  ;;  %v2028_v21 = vld [vmem:[#allocation2 + $0x10a] sm:$0xff]  ;;  %v1910_v5 = vld [vmem:[#allocation2 + $0x120] sm:$0xff] }
 0x16a   : > { %v1200_v2 = vmax.f32 %v1168_v43, %v4775_v58  ;;  %v1201_v4 = vmax.f32 %v1169_v15, %v4788_v20  ;;  %v2145_v41 = vmax.f32 %v2065_v0, %v2105_v17  ;;  %v2321_v52 = vmax.f32 %v2289_v59, %v5244_v32  ;;  %v1950_v43 = vld [vmem:[#allocation2 + $0x121] sm:$0xff]  ;;  %v2108_v59 = vld [vmem:[#allocation2 + $0x10b] sm:$0xff] }
 0x16b   : > { %v2146_v61 = vmax.f32 %v2066_v33, %v2106_v31  ;;  %v2290_v11 = vmax.f32 %v2258_v36, %v5222_v50  ;;  %v1138_v42 = vmax.f32 %v1106_v30, %v1070_v49  ;;  %4282 = vmatprep.mubr.msk.f32.mxu1 %vm620_vm1, %v2352_v45  ;;  %2742 = vst.msk [vmem:[#allocation2 + $0xaa] sm:$0xff] %vm620_vm1, %v2352_v45  ;;  %v2107_v1 = vld [vmem:[#allocation2 + $0xfb] sm:$0xff]  ;;  %v1911_v45 = vld [vmem:[#allocation2 + $0x128] sm:$0xff] }
 0x16c   : > { %4210 = vmatmul.mubr.msk.f32.gmra.mrb[60].mxu0 %vm620_vm1, %v1200_v2  ;;  %1883 = vst.msk [vmem:[#allocation2 + $0x18a] sm:$0xff] %vm620_vm1, %v1200_v2  ;;  %1884 = vst.msk [vmem:[#allocation2 + $0x19a] sm:$0xff] %vm620_vm1, %v1201_v4  ;;  %v5276_v16 = vmax.f32 %v2145_v41, %v2185_v40  ;;  %v1987_v44 = vmax.f32 %v1907_v14, %v1947_v46  ;;  %v2259_v19 = vmax.f32 %v5173_v48, %v5203_v6  ;;  %v1951_v2 = vld [vmem:[#allocation2 + $0x129] sm:$0xff] }
 0x16d   : > { %4212 = vmatprep.mubr.msk.f32.mxu0 %vm620_vm1, %v1201_v4  ;;  %v5281_v49 = vmax.f32 %v2146_v61, %v2186_v27  ;;  %v2322_v9 = vmax.f32 %v2290_v11, %v5256_v55  ;;  %v1170_v38 = vmax.f32 %v1138_v42, %v4775_v58  ;;  %v1988_v8 = vmax.f32 %v1908_v22, %v1948_v28  ;;  %v2187_v4 = vld [vmem:[#allocation2 + $0xfc] sm:$0xff]  ;;  %v2109_v61 = vld [vmem:[#allocation2 + $0x113] sm:$0xff] }
 0x16e   : > { %v2353_v62 = vmax.f32 %v2321_v52, %v5276_v16  ;;  %v2067_v47 = vmax.f32 %v1987_v44, %v2027_v10  ;;  %v2291_v60 = vmax.f32 %v2259_v19, %v5244_v32  ;;  %v2260_v48 = vmax.f32 %v5191_v24, %v5222_v50  ;;  %v2029_v24 = vld [vmem:[#allocation2 + $0x112] sm:$0xff]  ;;  %v2030_v42 = vld [vmem:[#allocation2 + $0x122] sm:$0xff] }
 0x16f   : > { %v2354_v15 = vmax.f32 %v2322_v9, %v5281_v49  ;;  %v1202_v0 = vmax.f32 %v1170_v38, %v4790_v23  ;;  %v2068_v17 = vmax.f32 %v1988_v8, %v2028_v21  ;;  %v1989_v33 = vmax.f32 %v1909_v13, %v1949_v35  ;;  %v1952_v9 = vld [vmem:[#allocation2 + $0x139] sm:$0xff] }
 0x170   : > { %4283 = vmatmul.mubr.msk.f32.gmra.mrb[26].mxu1 %vm620_vm1, %v2353_v62  ;;  %2743 = vst.msk [vmem:[#allocation2 + $0xb2] sm:$0xff] %vm620_vm1, %v2353_v62  ;;  %v2147_v36 = vmax.f32 %v2067_v47, %v2107_v1  ;;  %v2323_v30 = vmax.f32 %v2291_v60, %v5276_v16  ;;  %v2292_v14 = vmax.f32 %v2260_v48, %v5256_v55  ;;  %v5913_v28 = vmax.f32 %v4688_v57, 0.0  ;;  %v1912_v57 = vld [vmem:[#allocation2 + $0x138] sm:$0xff]  ;;  %v2110_v62 = vld [vmem:[#allocation2 + $0x123] sm:$0xff] }
 0x171   : > { %v2261_v46 = vmax.f32 %v5203_v6, %v5244_v32  ;;  %4285 = vmatprep.mubr.msk.f32.mxu1 %vm620_vm1, %v2354_v15  ;;  %2744 = vst.msk [vmem:[#allocation2 + $0xc2] sm:$0xff] %vm620_vm1, %v2354_v15  ;;  %4213 = vmatmul.mubr.msk.f32.gmra.mrb[62].mxu0 %vm620_vm1, %v1202_v0  ;;  %1885 = vst.msk [vmem:[#allocation2 + $0x1a2] sm:$0xff] %vm620_vm1, %v1202_v0  ;;  %v2148_v41 = vmax.f32 %v2068_v17, %v2108_v59  ;;  %v2188_v6 = vld [vmem:[#allocation2 + $0x10c] sm:$0xff]  ;;  %v2189_v10 = vld [vmem:[#allocation2 + $0x114] sm:$0xff]  ;;  %v5914_v48 = vmax.f32 %v4685_v53, 0.0 }
 0x172   : > { %v2069_v31 = vmax.f32 %v1989_v33, %v2029_v24  ;;  %v1990_v22 = vmax.f32 %v1910_v5, %v1950_v43  ;;  %4217 = vmatprep.mubr.msk.f32.mxu0 %vm620_vm1, %v5913_v28  ;;  %v5304_v40 = vmax.f32 %v2147_v36, %v2187_v4  ;;  %v2324_v52 = vmax.f32 %v2292_v14, %v5281_v49  ;;  %v2031_v60 = vld [vmem:[#allocation2 + $0x12a] sm:$0xff]  ;;  %v1913_v1 = vld [vmem:[#allocation2 + $0x140] sm:$0xff] }
 0x173   : > { %v2293_v11 = vmax.f32 %v2261_v46, %v5276_v16  ;;  %v2262_v27 = vmax.f32 %v5222_v50, %v5256_v55  ;;  %v5310_v44 = vmax.f32 %v2148_v41, %v2188_v6  ;;  %v1991_v35 = vmax.f32 %v1911_v45, %v1951_v2  ;;  %v2190_v15 = vld [vmem:[#allocation2 + $0x124] sm:$0xff]  ;;  %v1954_v14 = vld [vmem:[#allocation2 + $0x151] sm:$0xff] }
 0x174   : > { %v2149_v19 = vmax.f32 %v2069_v31, %v2109_v61  ;;  %v2070_v13 = vmax.f32 %v1990_v22, %v2030_v42  ;;  %v2355_v38 = vmax.f32 %v2323_v30, %v5304_v40  ;;  %v2263_v21 = vmax.f32 %v5244_v32, %v5276_v16  ;;  %v1953_v17 = vld [vmem:[#allocation2 + $0x141] sm:$0xff]  ;;  %v2111_v53 = vld [vmem:[#allocation2 + $0x12b] sm:$0xff] }
 0x175   : > { %v2325_v8 = vmax.f32 %v2293_v11, %v5304_v40  ;;  %v2294_v47 = vmax.f32 %v2262_v27, %v5281_v49  ;;  %v2356_v50 = vmax.f32 %v2324_v52, %v5310_v44  ;;  %4218 = vmatmul.mubr.msk.f32.vlgmr.msra.gmra.mrb[32].mxu0 %vm620_vm1, %v5914_v48  ;;  %v2071_v0 = vmax.f32 %v1991_v35, %v2031_v60  ;;  %v1914_v30 = vld [vmem:[#allocation2 + $0x150] sm:$0xff]  ;;  %v2112_v22 = vld [vmem:[#allocation2 + $0x13b] sm:$0xff]  ;;  %v2113_v60 = vld [vmem:[#allocation2 + $0x143] sm:$0xff] }
 0x176   : > { %v5321_v5 = vmax.f32 %v2149_v19, %v2189_v10  ;;  %v2150_v43 = vmax.f32 %v2070_v13, %v2110_v62  ;;  %4286 = vmatmul.mubr.msk.f32.gmra.mrb[28].mxu1 %vm620_vm1, %v2355_v38  ;;  %2745 = vst.msk [vmem:[#allocation2 + $0xca] sm:$0xff] %vm620_vm1, %v2355_v38  ;;  %v5915_v59 = vmax.f32 %v4702_v12, 0.0  ;;  %v2295_v33 = vmax.f32 %v2263_v21, %v5304_v40  ;;  %v2032_v12 = vld [vmem:[#allocation2 + $0x13a] sm:$0xff]  ;;  %v2191_v4 = vld [vmem:[#allocation2 + $0x12c] sm:$0xff]  ;;  %v2033_v42 = vld [vmem:[#allocation2 + $0x142] sm:$0xff] }
 0x177   : > { %v2326_v32 = vmax.f32 %v2294_v47, %v5310_v44  ;;  %v1992_v36 = vmax.f32 %v1912_v57, %v1952_v9  ;;  %4288 = vmatprep.mubr.msk.f32.mxu1 %vm620_vm1, %v2356_v50  ;;  %2746 = vst.msk [vmem:[#allocation2 + $0xda] sm:$0xff] %vm620_vm1, %v2356_v50  ;;  %v2151_v45 = vmax.f32 %v2071_v0, %v2111_v53  ;;  %v5916_v61 = vmax.f32 %v4696_v7, 0.0  ;;  %v1915_v19 = vld [vmem:[#allocation2 + $0x158] sm:$0xff]  ;;  %v1916_v38 = vld [vmem:[#allocation2 + $0x168] sm:$0xff] }
 0x178   : > { %4220 = vmatprep.mubr.msk.f32.mxu0 %vm620_vm1, %v5915_v59  ;;  %v2357_v24 = vmax.f32 %v2325_v8, %v5321_v5  ;;  %v5333_v46 = vmax.f32 %v2150_v43, %v2190_v15  ;;  %v2264_v2 = vmax.f32 %v5256_v55, %v5281_v49  ;;  %v2327_v41 = vmax.f32 %v2295_v33, %v5321_v5  ;;  %v1955_v13 = vld [vmem:[#allocation2 + $0x159] sm:$0xff]  ;;  %v1956_v10 = vld [vmem:[#allocation2 + $0x169] sm:$0xff] }
 0x179   : > { %v2072_v31 = vmax.f32 %v1992_v36, %v2032_v12  ;;  %v1993_v28 = vmax.f32 %v1913_v1, %v1953_v17  ;;  %v2265_v6 = vmax.f32 %v5276_v16, %v5304_v40  ;;  %4221 = vmatmul.mubr.msk.f32.gmra.mrb[34].mxu0 %vm620_vm1, %v5916_v61  ;;  %v5345_v11 = vmax.f32 %v2151_v45, %v2191_v4  ;;  %v2034_v9 = vld [vmem:[#allocation2 + $0x152] sm:$0xff]  ;;  %v2192_v62 = vld [vmem:[#allocation2 + $0x13c] sm:$0xff]  ;;  %v2193_v43 = vld [vmem:[#allocation2 + $0x144] sm:$0xff] }
 0x17a   : > { %2747 = vst.msk [vmem:[#allocation2 + $0xe2] sm:$0xff] %vm620_vm1, %v2357_v24  ;;  %v2358_v52 = vmax.f32 %v2326_v32, %v5333_v46  ;;  %v2296_v55 = vmax.f32 %v2264_v2, %v5310_v44  ;;  %v1994_v27 = vmax.f32 %v1914_v30, %v1954_v14  ;;  %4289 = vmatmul.mubr.msk.f32.gmra.mrb[30].mxu1 %vm620_vm1, %v2357_v24  ;;  %v5917_v16 = vmax.f32 %v4716_v37, 0.0  ;;  %v2114_v0 = vld [vmem:[#allocation2 + $0x153] sm:$0xff]  ;;  %v2036_v2 = vld [vmem:[#allocation2 + $0x16a] sm:$0xff] }
 0x17b   : > { %v2152_v35 = vmax.f32 %v2072_v31, %v2112_v22  ;;  %v2073_v57 = vmax.f32 %v1993_v28, %v2033_v42  ;;  %v2297_v7 = vmax.f32 %v2265_v6, %v5321_v5  ;;  %v2359_v8 = vmax.f32 %v2327_v41, %v5345_v11  ;;  %v2035_v53 = vld [vmem:[#allocation2 + $0x15a] sm:$0xff]  ;;  %v1917_v36 = vld [vmem:[#allocation2 + $0x170] sm:$0xff] }
 0x17c   : > { %4223 = vmatprep.mubr.msk.f32.mxu0 %vm620_vm1, %v5917_v16  ;;  %4291 = vmatprep.mubr.msk.f32.mxu1 %vm620_vm1, %v2358_v52  ;;  %2748 = vst.msk [vmem:[#allocation2 + $0xf2] sm:$0xff] %vm620_vm1, %v2358_v52  ;;  %v2328_v47 = vmax.f32 %v2296_v55, %v5333_v46  ;;  %v2074_v37 = vmax.f32 %v1994_v27, %v2034_v9  ;;  %v5918_v17 = vmax.f32 %v4710_v29, 0.0  ;;  %v1957_v30 = vld [vmem:[#allocation2 + $0x171] sm:$0xff]  ;;  %v5919_v24 = vmax.f32 %v4742_v63, 0.0  ;;  %v2115_v41 = vld [vmem:[#allocation2 + $0x15b] sm:$0xff]  ;;  %v1919_v9 = vld [vmem:[#allocation2 + $0x188] sm:$0xff] }
 0x17d   : > { %v2266_v21 = vmax.f32 %v5281_v49, %v5310_v44  ;;  %v5359_v50 = vmax.f32 %v2152_v35, %v2192_v62  ;;  %v2153_v48 = vmax.f32 %v2073_v57, %v2113_v60  ;;  %v2329_v15 = vmax.f32 %v2297_v7, %v5345_v11  ;;  %2749 = vst.msk [vmem:[#allocation2 + $0xfa] sm:$0xff] %vm620_vm1, %v2359_v8  ;;  %v2194_v45 = vld [vmem:[#allocation2 + $0x154] sm:$0xff]  ;;  %v2195_v31 = vld [vmem:[#allocation2 + $0x15c] sm:$0xff]  ;;  %v2116_v52 = vld [vmem:[#allocation2 + $0x16b] sm:$0xff] }
 0x17e   : > { %v1995_v1 = vmax.f32 %v1915_v19, %v1955_v13  ;;  %4224 = vmatmul.mubr.msk.f32.gmra.mrb[36].mxu0 %vm620_vm1, %v5918_v17  ;;  %v2154_v59 = vmax.f32 %v2074_v37, %v2114_v0  ;;  %v2267_v49 = vmax.f32 %v5304_v40, %v5321_v5  ;;  %v1996_v33 = vmax.f32 %v1916_v38, %v1956_v10  ;;  %v1918_v42 = vld [vmem:[#allocation2 + $0x180] sm:$0xff]  ;;  %v2037_v57 = vld [vmem:[#allocation2 + $0x172] sm:$0xff]  ;;  %v1959_v38 = vld [vmem:[#allocation2 + $0x189] sm:$0xff] }
 0x17f   : > { %v2298_v32 = vmax.f32 %v2266_v21, %v5333_v46  ;;  %4292 = vmatmul.mubr.msk.f32.gmra.mrb[0].mxu1 %vm620_vm1, %v2359_v8  ;;  %v2360_v14 = vmax.f32 %v2328_v47, %v5359_v50  ;;  %4226 = vmatprep.mubr.msk.f32.mxu0 %vm620_vm1, %v5919_v24  ;;  %v5374_v29 = vmax.f32 %v2153_v48, %v2193_v43  ;;  %v1958_v27 = vld [vmem:[#allocation2 + $0x181] sm:$0xff]  ;;  %v5920_v13 = vmax.f32 %v4730_v54, 0.0  ;;  %v2196_v10 = vld [vmem:[#allocation2 + $0x16c] sm:$0xff]  ;;  %v2197_v60 = vld [vmem:[#allocation2 + $0x174] sm:$0xff] }
 0x180   : > { %v2075_v12 = vmax.f32 %v1995_v1, %v2035_v53  ;;  %v5376_v4 = vmax.f32 %v2154_v59, %v2194_v45  ;;  %v2299_v22 = vmax.f32 %v2267_v49, %v5345_v11  ;;  %v2076_v28 = vmax.f32 %v1996_v33, %v2036_v2  ;;  %v2117_v47 = vld [vmem:[#allocation2 + $0x173] sm:$0xff]  ;;  %v2038_v0 = vld [vmem:[#allocation2 + $0x182] sm:$0xff] }
 0x181   : > { %v2330_v40 = vmax.f32 %v2298_v32, %v5359_v50  ;;  %4294 = vmatprep.mubr.msk.f32.mxu1 %vm620_vm1, %v2360_v14  ;;  %2750 = vst.msk [vmem:[#allocation2 + $0x10a] sm:$0xff] %vm620_vm1, %v2360_v14  ;;  %v2361_v63 = vmax.f32 %v2329_v15, %v5374_v29  ;;  %v2268_v61 = vmax.f32 %v5310_v44, %v5333_v46  ;;  %v5921_v44 = vmax.f32 %v4770_v34, 0.0  ;;  %v1920_v17 = vld [vmem:[#allocation2 + $0x198] sm:$0xff]  ;;  %v1961_v14 = vld [vmem:[#allocation2 + $0x1a1] sm:$0xff] }
 0x182   : > { %v2155_v6 = vmax.f32 %v2075_v12, %v2115_v41  ;;  %v1997_v55 = vmax.f32 %v1917_v36, %v1957_v30  ;;  %4227 = vmatmul.mubr.msk.f32.gmra.mrb[38].mxu0 %vm620_vm1, %v5920_v13  ;;  %v2331_v16 = vmax.f32 %v2299_v22, %v5374_v29  ;;  %v2156_v35 = vmax.f32 %v2076_v28, %v2116_v52  ;;  %v1960_v59 = vld [vmem:[#allocation2 + $0x199] sm:$0xff]  ;;  %v2039_v36 = vld [vmem:[#allocation2 + $0x18a] sm:$0xff] }
 0x183   : > { %v2362_v19 = vmax.f32 %v2330_v40, %v5376_v4  ;;  %v2269_v7 = vmax.f32 %v5321_v5, %v5345_v11  ;;  %4295 = vmatmul.mubr.msk.f32.gmra.mrb[2].mxu1 %vm620_vm1, %v2361_v63  ;;  %2751 = vst.msk [vmem:[#allocation2 + $0x112] sm:$0xff] %vm620_vm1, %v2361_v63  ;;  %4229 = vmatprep.mubr.msk.f32.mxu0 %vm620_vm1, %v5921_v44  ;;  %v5922_v32 = vmax.f32 %v4760_v25, 0.0  ;;  %v1921_v30 = vld [vmem:[#allocation2 + $0x1a0] sm:$0xff]  ;;  %v5923_v25 = vmax.f32 %v4796_v26, 0.0 }
 0x184   : > { %v5397_v54 = vmax.f32 %v2155_v6, %v2195_v31  ;;  %v2300_v8 = vmax.f32 %v2268_v61, %v5359_v50  ;;  %v2077_v62 = vmax.f32 %v1997_v55, %v2037_v57  ;;  %v5402_v5 = vmax.f32 %v2156_v35, %v2196_v10  ;;  %v2118_v12 = vld [vmem:[#allocation2 + $0x183] sm:$0xff]  ;;  %v2040_v6 = vld [vmem:[#allocation2 + $0x19a] sm:$0xff] }
 0x185   : > { %4297 = vmatprep.mubr.msk.f32.mxu1 %vm620_vm1, %v2362_v19  ;;  %2752 = vst.msk [vmem:[#allocation2 + $0x122] sm:$0xff] %vm620_vm1, %v2362_v19  ;;  %v2301_v37 = vmax.f32 %v2269_v7, %v5374_v29  ;;  %v1998_v21 = vmax.f32 %v1918_v42, %v1958_v27  ;;  %v2270_v34 = vmax.f32 %v5333_v46, %v5359_v50  ;;  %v2198_v26 = vld [vmem:[#allocation2 + $0x184] sm:$0xff]  ;;  %v5924_v42 = vmax.f32 %v4786_v3, 0.0  ;;  %v2199_v27 = vld [vmem:[#allocation2 + $0x18c] sm:$0xff]  ;;  %v2120_v3 = vld [vmem:[#allocation2 + $0x19b] sm:$0xff] }
 0x186   : > { %v2363_v48 = vmax.f32 %v2331_v16, %v5397_v54  ;;  %v2332_v43 = vmax.f32 %v2300_v8, %v5376_v4  ;;  %v2157_v15 = vmax.f32 %v2077_v62, %v2117_v47  ;;  %v1999_v1 = vmax.f32 %v1919_v9, %v1959_v38  ;;  %4230 = vmatmul.mubr.msk.f32.gmra.mrb[40].mxu0 %vm620_vm1, %v5922_v32  ;;  %v2041_v16 = vld [vmem:[#allocation2 + $0x1a2] sm:$0xff] }
 0x187   : > { %v2333_v53 = vmax.f32 %v2301_v37, %v5397_v54  ;;  %v2078_v49 = vmax.f32 %v1998_v21, %v2038_v0  ;;  %v2302_v33 = vmax.f32 %v2270_v34, %v5376_v4  ;;  %v2271_v46 = vmax.f32 %v5345_v11, %v5374_v29  ;;  %4232 = vmatprep.mubr.msk.f32.mxu0 %vm620_vm1, %v5923_v25  ;;  %v2119_v11 = vld [vmem:[#allocation2 + $0x18b] sm:$0xff]  ;;  %v2121_v10 = vld [vmem:[#allocation2 + $0x1a3] sm:$0xff] }
 0x188   : > { %4298 = vmatmul.mubr.msk.f32.gmra.mrb[4].mxu1 %vm620_vm1, %v2363_v48  ;;  %2753 = vst.msk [vmem:[#allocation2 + $0x12a] sm:$0xff] %vm620_vm1, %v2363_v48  ;;  %v2364_v24 = vmax.f32 %v2332_v43, %v5402_v5  ;;  %v5422_v45 = vmax.f32 %v2157_v15, %v2197_v60  ;;  %v2079_v2 = vmax.f32 %v1999_v1, %v2039_v36  ;;  %v2200_v47 = vld [vmem:[#allocation2 + $0x19c] sm:$0xff]  ;;  %v2768_v21 = vld [vmem:[#allocation2 + $0x30] sm:$0xff]  ;;  %v5926_v43 = vmax.f32 %v4812_v18, 0.0  ;;  %v2201_v15 = vld [vmem:[#allocation2 + $0x1a4] sm:$0xff] }
 0x189   : > { %v2158_v40 = vmax.f32 %v2078_v49, %v2118_v12  ;;  %v2334_v41 = vmax.f32 %v2302_v33, %v5402_v5  ;;  %v2303_v31 = vmax.f32 %v2271_v46, %v5397_v54  ;;  %v2000_v22 = vmax.f32 %v1920_v17, %v1960_v59  ;;  %v2808_v34 = vld [vmem:[#allocation2 + $0x31] sm:$0xff]  ;;  %v2770_v1 = vld [vmem:[#allocation2 + $0x48] sm:$0xff]  ;;  %v2772_v18 = vld [vmem:[#allocation2 + $0x60] sm:$0xff] }
 0x18a   : > { %4300 = vmatprep.mubr.msk.f32.mxu1 %vm620_vm1, %v2364_v24  ;;  %2754 = vst.msk [vmem:[#allocation2 + $0x13a] sm:$0xff] %vm620_vm1, %v2364_v24  ;;  %v2365_v28 = vmax.f32 %v2333_v53, %v5422_v45  ;;  %v2159_v63 = vmax.f32 %v2079_v2, %v2119_v11  ;;  %v2272_v52 = vmax.f32 %v5359_v50, %v5376_v4  ;;  %v5925_v50 = vmax.f32 %v4820_v39, 0.0  ;;  %v2810_v17 = vld [vmem:[#allocation2 + $0x49] sm:$0xff]  ;;  %v2812_v49 = vld [vmem:[#allocation2 + $0x61] sm:$0xff] }
 0x18b   : > { %v2001_v61 = vmax.f32 %v1921_v30, %v1961_v14  ;;  %v2238_v55 = vmax.f32 %v2158_v40, %v2198_v26  ;;  %4233 = vmatmul.mubr.msk.f32.gmra.mrb[42].mxu0 %vm620_vm1, %v5924_v42  ;;  %v2335_v19 = vmax.f32 %v2303_v31, %v5422_v45  ;;  %v2080_v13 = vmax.f32 %v2000_v22, %v2040_v6  ;;  %v2884_v14 = vld [vmem:[#allocation2 + $0x2] sm:$0xff]  ;;  %v2886_v24 = vld [vmem:[#allocation2 + $0x1a] sm:$0xff]  ;;  %v2890_v11 = vld [vmem:[#allocation2 + $0x4a] sm:$0xff] }
 0x18c   : > { %v2273_v35 = vmax.f32 %v5374_v29, %v5397_v54  ;;  %4301 = vmatmul.mubr.msk.f32.gmra.mrb[6].mxu1 %vm620_vm1, %v2365_v28  ;;  %2755 = vst.msk [vmem:[#allocation2 + $0x142] sm:$0xff] %vm620_vm1, %v2365_v28  ;;  %4235 = vmatprep.mubr.msk.f32.mxu0 %vm620_vm1, %v5925_v50  ;;  %v2239_v57 = vmax.f32 %v2159_v63, %v2199_v27  ;;  %v2964_v25 = vld [vmem:[#allocation2 + $0x3] sm:$0xff]  ;;  %v2966_v31 = vld [vmem:[#allocation2 + $0x1b] sm:$0xff]  ;;  %v5933_v50 = vld [vmem:[#allocation5_spill] sm:$0xff] }
 0x18d   : > { %v2304_v7 = vmax.f32 %v2272_v52, %v5402_v5  ;;  %v2081_v9 = vmax.f32 %v2001_v61, %v2041_v16  ;;  %v2366_v38 = vmax.f32 %v2334_v41, %v2238_v55  ;;  %v2160_v44 = vmax.f32 %v2080_v13, %v2120_v3  ;;  %v2888_v41 = vld [vmem:[#allocation2 + $0x32] sm:$0xff]  ;;  %v5928_v22 = vld [vmem:[#allocation7_spill] sm:$0xff]  ;;  %v2765_v61 = vld [vmem:[#allocation2 + $0x8] sm:$0xff] }
 0x18e   : > { %v2305_v8 = vmax.f32 %v2273_v35, %v5422_v45  ;;  %v2274_v29 = vmax.f32 %v5376_v4, %v5402_v5  ;;  %v2367_v62 = vmax.f32 %v2335_v19, %v2239_v57  ;;  %v2275_v39 = vmax.f32 %v5397_v54, %v5422_v45  ;;  %v2892_v63 = vld [vmem:[#allocation2 + $0x62] sm:$0xff] }
 0x18f   : > { %v2336_v60 = vmax.f32 %v2304_v7, %v2238_v55  ;;  %v2161_v37 = vmax.f32 %v2081_v9, %v2121_v10  ;;  %4303 = vmatprep.mubr.msk.f32.mxu1 %vm620_vm1, %v2366_v38  ;;  %2756 = vst.msk [vmem:[#allocation2 + $0x152] sm:$0xff] %vm620_vm1, %v2366_v38  ;;  %v2240_v48 = vmax.f32 %v2160_v44, %v2200_v47  ;;  %v5927_v54 = vmax.f32 %v4845_v51, 0.0  ;;  %v3044_v6 = vld [vmem:[#allocation2 + $0x4] sm:$0xff]  ;;  %v3046_v52 = vld [vmem:[#allocation2 + $0x1c] sm:$0xff]  ;;  %v2968_v9 = vld [vmem:[#allocation2 + $0x33] sm:$0xff] }
 0x190   : > { %4236 = vmatmul.mubr.msk.f32.gmra.mrb[44].mxu0 %vm620_vm1, %v5926_v43  ;;  %v2337_v4 = vmax.f32 %v2305_v8, %v2239_v57  ;;  %v2306_v0 = vmax.f32 %v2274_v29, %v2238_v55  ;;  %4304 = vmatmul.mubr.msk.f32.gmra.mrb[8].mxu1 %vm620_vm1, %v2367_v62  ;;  %2757 = vst.msk [vmem:[#allocation2 + $0x15a] sm:$0xff] %vm620_vm1, %v2367_v62  ;;  %v5929_v28 = vmax.f32 %v5928_v22, 0.0  ;;  %v5930_v19 = vld [vmem:[#allocation3_spill] sm:$0xff]  ;;  %v5931_v13 = vld [vmem:[#allocation4_spill] sm:$0xff]  ;;  %v2769_v47 = vld [vmem:[#allocation2 + $0x38] sm:$0xff] }
 0x191   : > { %4238 = vmatprep.mubr.msk.f32.mxu0 %vm620_vm1, %v5927_v54  ;;  %v2241_v59 = vmax.f32 %v2161_v37, %v2201_v15  ;;  %v2307_v32 = vmax.f32 %v2275_v39, %v2239_v57  ;;  %v2276_v53 = vmax.f32 %v5402_v5, %v2238_v55  ;;  %v2368_v33 = vmax.f32 %v2336_v60, %v2240_v48  ;;  %v2805_v55 = vld [vmem:[#allocation2 + $0x9] sm:$0xff]  ;;  %v2767_v10 = vld [vmem:[#allocation2 + $0x20] sm:$0xff] }
 0x192   : > { %v2338_v36 = vmax.f32 %v2306_v0, %v2240_v48  ;;  %v2277_v46 = vmax.f32 %v5422_v45, %v2239_v57  ;;  %v2848_v30 = vmax.f32 %v2768_v21, %v2808_v34  ;;  %v2850_v51 = vmax.f32 %v2770_v1, %v2810_v17  ;;  %v5934_v57 = vld [vmem:[#allocation6_spill] sm:$0xff]  ;;  %v2970_v38 = vld [vmem:[#allocation2 + $0x4b] sm:$0xff]  ;;  %v2972_v44 = vld [vmem:[#allocation2 + $0x63] sm:$0xff] }
 0x193   : > { %v2369_v12 = vmax.f32 %v2337_v4, %v2241_v59  ;;  %v2339_v2 = vmax.f32 %v2307_v32, %v2241_v59  ;;  %v2308_v40 = vmax.f32 %v2276_v53, %v2240_v48  ;;  %4306 = vmatprep.mubr.msk.f32.mxu1 %vm620_vm1, %v2368_v33  ;;  %2758 = vst.msk [vmem:[#allocation2 + $0x16a] sm:$0xff] %vm620_vm1, %v2368_v33  ;;  %v2807_v60 = vld [vmem:[#allocation2 + $0x21] sm:$0xff]  ;;  %v2809_v37 = vld [vmem:[#allocation2 + $0x39] sm:$0xff]  ;;  %v3050_v43 = vld [vmem:[#allocation2 + $0x4c] sm:$0xff] }
 0x194   : > { %v2370_v5 = vmax.f32 %v2338_v36, %v4773_v56  ;;  %4239 = vmatmul.mubr.msk.f32.gmra.mrb[46].mxu0 %vm620_vm1, %v5929_v28  ;;  %v2309_v45 = vmax.f32 %v2277_v46, %v2241_v59  ;;  %v2852_v26 = vmax.f32 %v2772_v18, %v2812_v49  ;;  %v5932_v16 = vmax.f32 %v5930_v19, %v5931_v13  ;;  %v3048_v48 = vld [vmem:[#allocation2 + $0x34] sm:$0xff]  ;;  %v2773_v4 = vld [vmem:[#allocation2 + $0x68] sm:$0xff] }
 0x195   : > { %4307 = vmatmul.mubr.msk.f32.gmra.mrb[10].mxu1 %vm620_vm1, %v2369_v12  ;;  %2759 = vst.msk [vmem:[#allocation2 + $0x172] sm:$0xff] %vm620_vm1, %v2369_v12  ;;  %v2371_v42 = vmax.f32 %v2339_v2, %v4775_v58  ;;  %v2340_v27 = vmax.f32 %v2308_v40, %v4773_v56  ;;  %v5935_v3 = vmax.f32 %v5933_v50, %v5934_v57  ;;  %v2771_v15 = vld [vmem:[#allocation2 + $0x50] sm:$0xff]  ;;  %v2887_v18 = vld [vmem:[#allocation2 + $0x22] sm:$0xff]  ;;  %v2889_v2 = vld [vmem:[#allocation2 + $0x3a] sm:$0xff] }
 0x196   : > { %v2924_v35 = vmax.f32 %v5932_v16, %v2884_v14  ;;  %4309 = vmatprep.mubr.msk.f32.mxu1 %vm620_vm1, %v2370_v5  ;;  %2760 = vst.msk [vmem:[#allocation2 + $0x182] sm:$0xff] %vm620_vm1, %v2370_v5  ;;  %v2341_v8 = vmax.f32 %v2309_v45, %v4775_v58  ;;  %v2928_v29 = vmax.f32 %v2848_v30, %v2888_v41  ;;  %v2811_v0 = vld [vmem:[#allocation2 + $0x51] sm:$0xff]  ;;  %v2813_v32 = vld [vmem:[#allocation2 + $0x69] sm:$0xff]  ;;  %v2814_v14 = vld [vmem:[#allocation2 + $0x79] sm:$0xff] }
 0x197   : > { %v2926_v7 = vmax.f32 %v5935_v3, %v2886_v24  ;;  %v2930_v56 = vmax.f32 %v2850_v51, %v2890_v11  ;;  %v2932_v62 = vmax.f32 %v2852_v26, %v2892_v63  ;;  %2761 = vst.msk [vmem:[#allocation2 + $0x18a] sm:$0xff] %vm620_vm1, %v2371_v42  ;;  %v2372_v39 = vmax.f32 %v2340_v27, %v4788_v20  ;;  %v2885_v53 = vld [vmem:[#allocation2 + $0xa] sm:$0xff]  ;;  %v2774_v30 = vld [vmem:[#allocation2 + $0x78] sm:$0xff] }
 0x198   : > { %v3004_v21 = vmax.f32 %v2924_v35, %v2964_v25  ;;  %v2845_v1 = vmax.f32 %v2765_v61, %v2805_v55  ;;  %v2373_v58 = vmax.f32 %v2341_v8, %v4790_v23  ;;  %v3008_v17 = vmax.f32 %v2928_v29, %v2968_v9  ;;  %v3052_v20 = vld [vmem:[#allocation2 + $0x64] sm:$0xff]  ;;  %v2969_v45 = vld [vmem:[#allocation2 + $0x3b] sm:$0xff] }
 0x199   : > { %v3006_v34 = vmax.f32 %v2926_v7, %v2966_v31  ;;  %v3010_v54 = vmax.f32 %v2930_v56, %v2970_v38  ;;  %v3012_v59 = vmax.f32 %v2932_v62, %v2972_v44  ;;  %4310 = vmatmul.mubr.msk.f32.gmra.mrb[12].mxu1 %vm620_vm1, %v2371_v42  ;;  %2762 = vst.msk [vmem:[#allocation2 + $0x19a] sm:$0xff] %vm620_vm1, %v2372_v39  ;;  %v2965_v40 = vld [vmem:[#allocation2 + $0xb] sm:$0xff]  ;;  %v2967_v51 = vld [vmem:[#allocation2 + $0x23] sm:$0xff]  ;;  %v2894_v57 = vld [vmem:[#allocation2 + $0x7a] sm:$0xff] }
 0x19a   : > { %v3084_v49 = vmax.f32 %v3004_v21, %v3044_v6  ;;  %v2847_v36 = vmax.f32 %v2767_v10, %v2807_v60  ;;  %v2849_v46 = vmax.f32 %v2769_v47, %v2809_v37  ;;  %4312 = vmatprep.mubr.msk.f32.mxu1 %vm620_vm1, %v2372_v39  ;;  %2763 = vst.msk [vmem:[#allocation2 + $0x1a2] sm:$0xff] %vm620_vm1, %v2373_v58  ;;  %v2891_v31 = vld [vmem:[#allocation2 + $0x52] sm:$0xff]  ;;  %v2893_v5 = vld [vmem:[#allocation2 + $0x6a] sm:$0xff]  ;;  %v3049_v50 = vld [vmem:[#allocation2 + $0x3c] sm:$0xff] }
 0x19b   : > { %v3086_v33 = vmax.f32 %v3006_v34, %v3046_v52  ;;  %v5486_v23 = vmax.f32 %v3008_v17, %v3048_v48  ;;  %v5488_v24 = vmax.f32 %v3010_v54, %v3050_v43  ;;  %v5490_v25 = vmax.f32 %v3012_v59, %v3052_v20  ;;  %v2971_v6 = vld [vmem:[#allocation2 + $0x53] sm:$0xff]  ;;  %v3047_v61 = vld [vmem:[#allocation2 + $0x24] sm:$0xff]  ;;  %v2974_v60 = vld [vmem:[#allocation2 + $0x7b] sm:$0xff] }
 0x19c   : > { %v2851_v12 = vmax.f32 %v2771_v15, %v2811_v0  ;;  %v2853_v11 = vmax.f32 %v2773_v4, %v2813_v32  ;;  %v2925_v22 = vmax.f32 %v2845_v1, %v2885_v53  ;;  %v2927_v28 = vmax.f32 %v2847_v36, %v2887_v18  ;;  %v3045_v52 = vld [vmem:[#allocation2 + $0xc] sm:$0xff]  ;;  %v3051_v9 = vld [vmem:[#allocation2 + $0x54] sm:$0xff]  ;;  %v2775_v10 = vld [vmem:[#allocation2 + $0x80] sm:$0xff] }
 0x19d   : > { %v3124_v41 = vmax.f32 %v3084_v49, %v3086_v33  ;;  %v2929_v26 = vmax.f32 %v2849_v46, %v2889_v2  ;;  %v2854_v55 = vmax.f32 %v2774_v30, %v2814_v14  ;;  %v3126_v42 = vmax.f32 %v3086_v33, %v5486_v23  ;;  %4313 = vmatmul.mubr.msk.f32.gmra.mrb[14].mxu1 %vm620_vm1, %v2373_v58  ;;  %v2973_v13 = vld [vmem:[#allocation2 + $0x6b] sm:$0xff]  ;;  %v2815_v8 = vld [vmem:[#allocation2 + $0x81] sm:$0xff]  ;;  %v2777_v4 = vld [vmem:[#allocation2 + $0x98] sm:$0xff] }
 0x19e   : > { %v2931_v63 = vmax.f32 %v2851_v12, %v2891_v31  ;;  %v2933_v19 = vmax.f32 %v2853_v11, %v2893_v5  ;;  %v3005_v16 = vmax.f32 %v2925_v22, %v2965_v40  ;;  %v3007_v35 = vmax.f32 %v2927_v28, %v2967_v51  ;;  %v2776_v37 = vld [vmem:[#allocation2 + $0x90] sm:$0xff]  ;;  %v2817_v0 = vld [vmem:[#allocation2 + $0x99] sm:$0xff]  ;;  %v2895_v53 = vld [vmem:[#allocation2 + $0x82] sm:$0xff] }
 0x19f   : > { %v3156_v27 = vmax.f32 %v3124_v41, %v5486_v23  ;;  %v3009_v3 = vmax.f32 %v2929_v26, %v2969_v45  ;;  %v2934_v38 = vmax.f32 %v2854_v55, %v2894_v57  ;;  %v3158_v44 = vmax.f32 %v3126_v42, %v5488_v24  ;;  %v2816_v39 = vld [vmem:[#allocation2 + $0x91] sm:$0xff]  ;;  %v3054_v54 = vld [vmem:[#allocation2 + $0x7c] sm:$0xff]  ;;  %v2778_v12 = vld [vmem:[#allocation2 + $0xa8] sm:$0xff] }
 0x1a0   : > { %v3011_v7 = vmax.f32 %v2931_v63, %v2971_v6  ;;  %v3013_v56 = vmax.f32 %v2933_v19, %v2973_v13  ;;  %v3085_v62 = vmax.f32 %v3005_v16, %v3045_v52  ;;  %v3087_v47 = vmax.f32 %v3007_v35, %v3047_v61  ;;  %v3053_v21 = vld [vmem:[#allocation2 + $0x6c] sm:$0xff]  ;;  %v2975_v51 = vld [vmem:[#allocation2 + $0x83] sm:$0xff]  ;;  %v2897_v5 = vld [vmem:[#allocation2 + $0x9a] sm:$0xff] }
 0x1a1   : > { %v3188_v29 = vmax.f32 %v3156_v27, %v5488_v24  ;;  %v3089_v34 = vmax.f32 %v3009_v3, %v3049_v50  ;;  %v3014_v43 = vmax.f32 %v2934_v38, %v2974_v60  ;;  %v3190_v15 = vmax.f32 %v3158_v44, %v5490_v25  ;;  %v2896_v46 = vld [vmem:[#allocation2 + $0x92] sm:$0xff]  ;;  %v2818_v2 = vld [vmem:[#allocation2 + $0xa9] sm:$0xff]  ;;  %v2977_v27 = vld [vmem:[#allocation2 + $0x9b] sm:$0xff] }
 0x1a2   : > { %v5497_v48 = vmax.f32 %v3011_v7, %v3051_v9  ;;  %v5501_v58 = vmax.f32 %v3013_v56, %v3053_v21  ;;  %v3125_v17 = vmax.f32 %v3085_v62, %v3087_v47  ;;  %v2855_v59 = vmax.f32 %v2775_v10, %v2815_v8  ;;  %v2976_v28 = vld [vmem:[#allocation2 + $0x93] sm:$0xff]  ;;  %v3055_v52 = vld [vmem:[#allocation2 + $0x84] sm:$0xff]  ;;  %v3057_v57 = vld [vmem:[#allocation2 + $0x9c] sm:$0xff] }
 0x1a3   : > { %v3220_v1 = vmax.f32 %v3188_v29, %v5490_v25  ;;  %v5503_v32 = vmax.f32 %v3014_v43, %v3054_v54  ;;  %v3127_v18 = vmax.f32 %v3087_v47, %v3089_v34  ;;  %v2856_v20 = vmax.f32 %v2776_v37, %v2816_v39  ;;  %v2779_v63 = vld [vmem:[#allocation2 + $0xb0] sm:$0xff]  ;;  %v2780_v29 = vld [vmem:[#allocation2 + $0xc0] sm:$0xff]  ;;  %v2781_v39 = vld [vmem:[#allocation2 + $0xc8] sm:$0xff] }
 0x1a4   : > { %v3128_v49 = vmax.f32 %v5486_v23, %v5488_v24  ;;  %v3157_v33 = vmax.f32 %v3125_v17, %v3089_v34  ;;  %v2935_v36 = vmax.f32 %v2855_v59, %v2895_v53  ;;  %v2857_v30 = vmax.f32 %v2777_v4, %v2817_v0  ;;  %v2819_v6 = vld [vmem:[#allocation2 + $0xb1] sm:$0xff]  ;;  %v2820_v56 = vld [vmem:[#allocation2 + $0xc1] sm:$0xff]  ;;  %v2821_v21 = vld [vmem:[#allocation2 + $0xc9] sm:$0xff] }
 0x1a5   : > { %4317 = vmatprep.mubr.msk.f32.mxu1 %vm620_vm1, %v3220_v1  ;;  %v3129_v14 = vmax.f32 %v3089_v34, %v5497_v48  ;;  %v3222_v40 = vmax.f32 %v3190_v15, %v5503_v32  ;;  %v3159_v41 = vmax.f32 %v3127_v18, %v5497_v48  ;;  %v2936_v11 = vmax.f32 %v2856_v20, %v2896_v46  ;;  %v3056_v35 = vld [vmem:[#allocation2 + $0x94] sm:$0xff]  ;;  %v2898_v3 = vld [vmem:[#allocation2 + $0xaa] sm:$0xff]  ;;  %v2900_v46 = vld [vmem:[#allocation2 + $0xc2] sm:$0xff] }
 0x1a6   : > { %v3160_v31 = vmax.f32 %v3128_v49, %v5490_v25  ;;  %v3189_v23 = vmax.f32 %v3157_v33, %v5497_v48  ;;  %v3015_v22 = vmax.f32 %v2935_v36, %v2975_v51  ;;  %v2937_v45 = vmax.f32 %v2857_v30, %v2897_v5  ;;  %v2978_v44 = vld [vmem:[#allocation2 + $0xab] sm:$0xff]  ;;  %v2782_v4 = vld [vmem:[#allocation2 + $0xd8] sm:$0xff]  ;;  %v2980_v5 = vld [vmem:[#allocation2 + $0xc3] sm:$0xff] }
 0x1a7   : > { %v3161_v26 = vmax.f32 %v3129_v14, %v5501_v58  ;;  %v3191_v61 = vmax.f32 %v3159_v41, %v5501_v58  ;;  %v3016_v55 = vmax.f32 %v2936_v11, %v2976_v28  ;;  %v2858_v19 = vmax.f32 %v2778_v12, %v2818_v2  ;;  %v2899_v37 = vld [vmem:[#allocation2 + $0xb2] sm:$0xff]  ;;  %v2901_v2 = vld [vmem:[#allocation2 + $0xca] sm:$0xff]  ;;  %v2783_v41 = vld [vmem:[#allocation2 + $0xe0] sm:$0xff] }
 0x1a8   : > { %v3192_v42 = vmax.f32 %v3160_v31, %v5503_v32  ;;  %v3221_v13 = vmax.f32 %v3189_v23, %v5501_v58  ;;  %v5517_v16 = vmax.f32 %v3015_v22, %v3055_v52  ;;  %v3017_v50 = vmax.f32 %v2937_v45, %v2977_v27  ;;  %v2822_v0 = vld [vmem:[#allocation2 + $0xd9] sm:$0xff]  ;;  %v3058_v17 = vld [vmem:[#allocation2 + $0xac] sm:$0xff] }
 0x1a9   : > { %v3130_v7 = vmax.f32 %v5488_v24, %v5490_v25  ;;  %v5521_v9 = vmax.f32 %v3016_v55, %v3056_v35  ;;  %v2938_v38 = vmax.f32 %v2858_v19, %v2898_v3  ;;  %v2859_v10 = vmax.f32 %v2779_v63, %v2819_v6  ;;  %v2979_v59 = vld [vmem:[#allocation2 + $0xb3] sm:$0xff]  ;;  %v2981_v63 = vld [vmem:[#allocation2 + $0xcb] sm:$0xff]  ;;  %v2982_v19 = vld [vmem:[#allocation2 + $0xdb] sm:$0xff] }
 0x1aa   : > { %v3131_v8 = vmax.f32 %v5497_v48, %v5501_v58  ;;  %4318 = vmatmul.mubr.msk.f32.vlgmr.msra.gmra.mrb[16].mxu1 %vm620_vm1, %v3221_v13  ;;  %v3223_v62 = vmax.f32 %v3191_v61, %v5517_v16  ;;  %v5527_v47 = vmax.f32 %v3017_v50, %v3057_v57  ;;  %v3193_v60 = vmax.f32 %v3161_v26, %v5517_v16  ;;  %v3059_v33 = vld [vmem:[#allocation2 + $0xb4] sm:$0xff]  ;;  %v3061_v50 = vld [vmem:[#allocation2 + $0xcc] sm:$0xff] }
 0x1ab   : > { %v3162_v24 = vmax.f32 %v3130_v7, %v5503_v32  ;;  %4320 = vmatprep.mubr.msk.f32.mxu1 %vm620_vm1, %v3222_v40  ;;  %v3224_v34 = vmax.f32 %v3192_v42, %v5521_v9  ;;  %v3018_v48 = vmax.f32 %v2938_v38, %v2978_v44  ;;  %v2939_v43 = vmax.f32 %v2859_v10, %v2899_v37  ;;  %v2902_v22 = vld [vmem:[#allocation2 + $0xda] sm:$0xff]  ;;  %v2784_v52 = vld [vmem:[#allocation2 + $0xf0] sm:$0xff]  ;;  %v3060_v42 = vld [vmem:[#allocation2 + $0xc4] sm:$0xff] }
 0x1ac   : > { %v3163_v15 = vmax.f32 %v3131_v8, %v5517_v16  ;;  %v3225_v1 = vmax.f32 %v3193_v60, %v5527_v47  ;;  %v2860_v53 = vmax.f32 %v2780_v29, %v2820_v56  ;;  %v3132_v18 = vmax.f32 %v5490_v25, %v5503_v32  ;;  %v2823_v25 = vld [vmem:[#allocation2 + $0xe1] sm:$0xff]  ;;  %v2824_v61 = vld [vmem:[#allocation2 + $0xf1] sm:$0xff] }
 0x1ad   : > { %v3194_v54 = vmax.f32 %v3162_v24, %v5521_v9  ;;  %v5538_v20 = vmax.f32 %v3018_v48, %v3058_v17  ;;  %v3019_v49 = vmax.f32 %v2939_v43, %v2979_v59  ;;  %v2861_v30 = vmax.f32 %v2781_v39, %v2821_v21  ;;  %v3062_v7 = vld [vmem:[#allocation2 + $0xdc] sm:$0xff]  ;;  %v2786_v48 = vld [vmem:[#allocation2 + $0x108] sm:$0xff]  ;;  %v2827_v17 = vld [vmem:[#allocation2 + $0x111] sm:$0xff] }
 0x1ae   : > { %v3195_v36 = vmax.f32 %v3163_v15, %v5527_v47  ;;  %4321 = vmatmul.mubr.msk.f32.gmra.mrb[18].mxu1 %vm620_vm1, %v3223_v62  ;;  %v2940_v14 = vmax.f32 %v2860_v53, %v2900_v46  ;;  %v3164_v12 = vmax.f32 %v3132_v18, %v5521_v9  ;;  %v3133_v40 = vmax.f32 %v5501_v58, %v5517_v16  ;;  %v2903_v38 = vld [vmem:[#allocation2 + $0xe2] sm:$0xff]  ;;  %v2785_v60 = vld [vmem:[#allocation2 + $0xf8] sm:$0xff] }
 0x1af   : > { %v2862_v51 = vmax.f32 %v2782_v4, %v2822_v0  ;;  %4323 = vmatprep.mubr.msk.f32.mxu1 %vm620_vm1, %v3224_v34  ;;  %v3226_v11 = vmax.f32 %v3194_v54, %v5538_v20  ;;  %v5547_v31 = vmax.f32 %v3019_v49, %v3059_v33  ;;  %v2941_v23 = vmax.f32 %v2861_v30, %v2901_v2  ;;  %v2983_v29 = vld [vmem:[#allocation2 + $0xe3] sm:$0xff]  ;;  %v2825_v24 = vld [vmem:[#allocation2 + $0xf9] sm:$0xff] }
 0x1b0   : > { %v3134_v28 = vmax.f32 %v5503_v32, %v5521_v9  ;;  %v3020_v45 = vmax.f32 %v2940_v14, %v2980_v5  ;;  %v3196_v26 = vmax.f32 %v3164_v12, %v5538_v20  ;;  %v3165_v58 = vmax.f32 %v3133_v40, %v5527_v47  ;;  %v2904_v34 = vld [vmem:[#allocation2 + $0xf2] sm:$0xff]  ;;  %v2826_v43 = vld [vmem:[#allocation2 + $0x109] sm:$0xff]  ;;  %v2905_v12 = vld [vmem:[#allocation2 + $0xfa] sm:$0xff] }
 0x1b1   : > { %v2942_v6 = vmax.f32 %v2862_v51, %v2902_v22  ;;  %v3227_v55 = vmax.f32 %v3195_v36, %v5547_v31  ;;  %v3021_v27 = vmax.f32 %v2941_v23, %v2981_v63  ;;  %v2863_v35 = vmax.f32 %v2783_v41, %v2823_v25  ;;  %v3063_v59 = vld [vmem:[#allocation2 + $0xe4] sm:$0xff]  ;;  %v2984_v18 = vld [vmem:[#allocation2 + $0xf3] sm:$0xff] }
 0x1b2   : > { %v3166_v13 = vmax.f32 %v3134_v28, %v5538_v20  ;;  %4324 = vmatmul.mubr.msk.f32.gmra.mrb[20].mxu1 %vm620_vm1, %v3225_v1  ;;  %v5556_v32 = vmax.f32 %v3020_v45, %v3060_v42  ;;  %v3197_v57 = vmax.f32 %v3165_v58, %v5547_v31  ;;  %v3135_v44 = vmax.f32 %v5517_v16, %v5527_v47  ;;  %v3064_v30 = vld [vmem:[#allocation2 + $0xf4] sm:$0xff]  ;;  %v2906_v41 = vld [vmem:[#allocation2 + $0x10a] sm:$0xff]  ;;  %v2788_v5 = vld [vmem:[#allocation2 + $0x120] sm:$0xff] }
 0x1b3   : > { %v3022_v3 = vmax.f32 %v2942_v6, %v2982_v19  ;;  %4326 = vmatprep.mubr.msk.f32.mxu1 %vm620_vm1, %v3226_v11  ;;  %v5562_v10 = vmax.f32 %v3021_v27, %v3061_v50  ;;  %v2943_v8 = vmax.f32 %v2863_v35, %v2903_v38  ;;  %v2864_v56 = vmax.f32 %v2784_v52, %v2824_v61  ;;  %v2985_v28 = vld [vmem:[#allocation2 + $0xfb] sm:$0xff]  ;;  %v2986_v52 = vld [vmem:[#allocation2 + $0x10b] sm:$0xff]  ;;  %v2987_v35 = vld [vmem:[#allocation2 + $0x113] sm:$0xff] }
 0x1b4   : > { %v3136_v62 = vmax.f32 %v5521_v9, %v5538_v20  ;;  %v3228_v37 = vmax.f32 %v3196_v26, %v5556_v32  ;;  %v3198_v21 = vmax.f32 %v3166_v13, %v5556_v32  ;;  %v3167_v16 = vmax.f32 %v3135_v44, %v5547_v31  ;;  %v2787_v9 = vld [vmem:[#allocation2 + $0x110] sm:$0xff]  ;;  %v3065_v19 = vld [vmem:[#allocation2 + $0xfc] sm:$0xff] }
 0x1b5   : > { %v5567_v39 = vmax.f32 %v3022_v3, %v3062_v7  ;;  %v3229_v15 = vmax.f32 %v3197_v57, %v5562_v10  ;;  %v3023_v4 = vmax.f32 %v2943_v8, %v2983_v29  ;;  %v2944_v0 = vmax.f32 %v2864_v56, %v2904_v34  ;;  %v2907_v26 = vld [vmem:[#allocation2 + $0x112] sm:$0xff]  ;;  %v2829_v42 = vld [vmem:[#allocation2 + $0x129] sm:$0xff] }
 0x1b6   : > { %v3168_v1 = vmax.f32 %v3136_v62, %v5556_v32  ;;  %4327 = vmatmul.mubr.msk.f32.gmra.mrb[22].mxu1 %vm620_vm1, %v3227_v55  ;;  %v3199_v53 = vmax.f32 %v3167_v16, %v5562_v10  ;;  %v2865_v49 = vmax.f32 %v2785_v60, %v2825_v24  ;;  %v3137_v33 = vmax.f32 %v5527_v47, %v5547_v31  ;;  %v2828_v47 = vld [vmem:[#allocation2 + $0x121] sm:$0xff]  ;;  %v3066_v3 = vld [vmem:[#allocation2 + $0x10c] sm:$0xff]  ;;  %v3067_v44 = vld [vmem:[#allocation2 + $0x114] sm:$0xff] }
 0x1b7   : > { %v3230_v54 = vmax.f32 %v3198_v21, %v5567_v39  ;;  %4329 = vmatprep.mubr.msk.f32.mxu1 %vm620_vm1, %v3228_v37  ;;  %v5579_v36 = vmax.f32 %v3023_v4, %v3063_v59  ;;  %v3024_v46 = vmax.f32 %v2944_v0, %v2984_v18  ;;  %v2866_v2 = vmax.f32 %v2786_v48, %v2826_v43  ;;  %v2789_v55 = vld [vmem:[#allocation2 + $0x128] sm:$0xff]  ;;  %v2790_v21 = vld [vmem:[#allocation2 + $0x138] sm:$0xff]  ;;  %v2791_v4 = vld [vmem:[#allocation2 + $0x140] sm:$0xff] }
 0x1b8   : > { %v3200_v14 = vmax.f32 %v3168_v1, %v5567_v39  ;;  %v2945_v40 = vmax.f32 %v2865_v49, %v2905_v12  ;;  %v3169_v51 = vmax.f32 %v3137_v33, %v5562_v10  ;;  %v3138_v25 = vmax.f32 %v5538_v20, %v5556_v32  ;;  %v2908_v8 = vld [vmem:[#allocation2 + $0x122] sm:$0xff]  ;;  %v2830_v16 = vld [vmem:[#allocation2 + $0x139] sm:$0xff]  ;;  %v2832_v59 = vld [vmem:[#allocation2 + $0x151] sm:$0xff] }
 0x1b9   : > { %v2867_v11 = vmax.f32 %v2787_v9, %v2827_v17  ;;  %v3231_v23 = vmax.f32 %v3199_v53, %v5579_v36  ;;  %v5586_v22 = vmax.f32 %v3024_v46, %v3064_v30  ;;  %v2946_v45 = vmax.f32 %v2866_v2, %v2906_v41  ;;  %v2988_v60 = vld [vmem:[#allocation2 + $0x123] sm:$0xff]  ;;  %v2989_v33 = vld [vmem:[#allocation2 + $0x12b] sm:$0xff] }
 0x1ba   : > { %v3139_v63 = vmax.f32 %v5547_v31, %v5562_v10  ;;  %4330 = vmatmul.mubr.msk.f32.gmra.mrb[24].mxu1 %vm620_vm1, %v3229_v15  ;;  %v3025_v58 = vmax.f32 %v2945_v40, %v2985_v28  ;;  %v3201_v6 = vmax.f32 %v3169_v51, %v5579_v36  ;;  %v3170_v20 = vmax.f32 %v3138_v25, %v5567_v39  ;;  %v2909_v15 = vld [vmem:[#allocation2 + $0x12a] sm:$0xff]  ;;  %v2831_v0 = vld [vmem:[#allocation2 + $0x141] sm:$0xff]  ;;  %v2793_v28 = vld [vmem:[#allocation2 + $0x158] sm:$0xff] }
 0x1bb   : > { %v2947_v61 = vmax.f32 %v2867_v11, %v2907_v26  ;;  %4332 = vmatprep.mubr.msk.f32.mxu1 %vm620_vm1, %v3230_v54  ;;  %v3232_v27 = vmax.f32 %v3200_v14, %v5586_v22  ;;  %v3026_v13 = vmax.f32 %v2946_v45, %v2986_v52  ;;  %v2868_v50 = vmax.f32 %v2788_v5, %v2828_v47  ;;  %v2792_v54 = vld [vmem:[#allocation2 + $0x150] sm:$0xff]  ;;  %v3068_v18 = vld [vmem:[#allocation2 + $0x124] sm:$0xff]  ;;  %v2910_v51 = vld [vmem:[#allocation2 + $0x13a] sm:$0xff] }
 0x1bc   : > { %v3171_v31 = vmax.f32 %v3139_v63, %v5579_v36  ;;  %v5596_v57 = vmax.f32 %v3025_v58, %v3065_v19  ;;  %v3202_v7 = vmax.f32 %v3170_v20, %v5586_v22  ;;  %v3140_v29 = vmax.f32 %v5556_v32, %v5567_v39  ;;  %v3069_v2 = vld [vmem:[#allocation2 + $0x12c] sm:$0xff]  ;;  %v2911_v5 = vld [vmem:[#allocation2 + $0x142] sm:$0xff] }
 0x1bd   : > { %v3027_v38 = vmax.f32 %v2947_v61, %v2987_v35  ;;  %v5601_v56 = vmax.f32 %v3026_v13, %v3066_v3  ;;  %v2948_v62 = vmax.f32 %v2868_v50, %v2908_v8  ;;  %v2869_v24 = vmax.f32 %v2789_v55, %v2829_v42  ;;  %v2990_v63 = vld [vmem:[#allocation2 + $0x13b] sm:$0xff]  ;;  %v2991_v55 = vld [vmem:[#allocation2 + $0x143] sm:$0xff]  ;;  %v2992_v50 = vld [vmem:[#allocation2 + $0x153] sm:$0xff] }
 0x1be   : > { %v3141_v37 = vmax.f32 %v5562_v10, %v5579_v36  ;;  %4333 = vmatmul.mubr.msk.f32.gmra.mrb[26].mxu1 %vm620_vm1, %v3231_v23  ;;  %v3233_v34 = vmax.f32 %v3201_v6, %v5596_v57  ;;  %v3203_v43 = vmax.f32 %v3171_v31, %v5596_v57  ;;  %v3172_v32 = vmax.f32 %v3140_v29, %v5586_v22  ;;  %v2912_v6 = vld [vmem:[#allocation2 + $0x152] sm:$0xff]  ;;  %v2834_v19 = vld [vmem:[#allocation2 + $0x169] sm:$0xff]  ;;  %v3070_v35 = vld [vmem:[#allocation2 + $0x13c] sm:$0xff] }
 0x1bf   : > { %v5607_v48 = vmax.f32 %v3027_v38, %v3067_v44  ;;  %4335 = vmatprep.mubr.msk.f32.mxu1 %vm620_vm1, %v3232_v27  ;;  %v3234_v1 = vmax.f32 %v3202_v7, %v5601_v56  ;;  %v3028_v10 = vmax.f32 %v2948_v62, %v2988_v60  ;;  %v2949_v9 = vmax.f32 %v2869_v24, %v2909_v15  ;;  %v2794_v27 = vld [vmem:[#allocation2 + $0x168] sm:$0xff]  ;;  %v3072_v29 = vld [vmem:[#allocation2 + $0x154] sm:$0xff] }
 0x1c0   : > { %v3173_v17 = vmax.f32 %v3141_v37, %v5596_v57  ;;  %v3204_v49 = vmax.f32 %v3172_v32, %v5601_v56  ;;  %v2870_v46 = vmax.f32 %v2790_v21, %v2830_v16  ;;  %v3142_v30 = vmax.f32 %v5567_v39, %v5586_v22  ;;  %v2833_v39 = vld [vmem:[#allocation2 + $0x159] sm:$0xff]  ;;  %v3071_v38 = vld [vmem:[#allocation2 + $0x144] sm:$0xff]  ;;  %v2835_v32 = vld [vmem:[#allocation2 + $0x171] sm:$0xff] }
 0x1c1   : > { %v3235_v53 = vmax.f32 %v3203_v43, %v5607_v48  ;;  %v5618_v14 = vmax.f32 %v3028_v10, %v3068_v18  ;;  %v3029_v12 = vmax.f32 %v2949_v9, %v2989_v33  ;;  %v2871_v41 = vmax.f32 %v2791_v4, %v2831_v0  ;;  %v2913_v62 = vld [vmem:[#allocation2 + $0x15a] sm:$0xff]  ;;  %v2795_v43 = vld [vmem:[#allocation2 + $0x170] sm:$0xff] }
 0x1c2   : > { %v3205_v40 = vmax.f32 %v3173_v17, %v5607_v48  ;;  %4336 = vmatmul.mubr.msk.f32.gmra.mrb[28].mxu1 %vm620_vm1, %v3233_v34  ;;  %v2950_v25 = vmax.f32 %v2870_v46, %v2910_v51  ;;  %v3174_v11 = vmax.f32 %v3142_v30, %v5601_v56  ;;  %v3143_v47 = vmax.f32 %v5579_v36, %v5596_v57  ;;  %v2993_v21 = vld [vmem:[#allocation2 + $0x15b] sm:$0xff]  ;;  %v2837_v18 = vld [vmem:[#allocation2 + $0x189] sm:$0xff] }
 0x1c3   : > { %v2872_v23 = vmax.f32 %v2792_v54, %v2832_v59  ;;  %4338 = vmatprep.mubr.msk.f32.mxu1 %vm620_vm1, %v3234_v1  ;;  %v3236_v45 = vmax.f32 %v3204_v49, %v5618_v14  ;;  %v5627_v26 = vmax.f32 %v3029_v12, %v3069_v2  ;;  %v2951_v58 = vmax.f32 %v2871_v41, %v2911_v5  ;;  %v2914_v1 = vld [vmem:[#allocation2 + $0x16a] sm:$0xff]  ;;  %v2796_v10 = vld [vmem:[#allocation2 + $0x180] sm:$0xff] }
 0x1c4   : > { %v3144_v52 = vmax.f32 %v5586_v22, %v5601_v56  ;;  %v3030_v20 = vmax.f32 %v2950_v25, %v2990_v63  ;;  %v3206_v61 = vmax.f32 %v3174_v11, %v5618_v14  ;;  %v3175_v36 = vmax.f32 %v3143_v47, %v5607_v48  ;;  %v2836_v9 = vld [vmem:[#allocation2 + $0x181] sm:$0xff]  ;;  %v2994_v30 = vld [vmem:[#allocation2 + $0x16b] sm:$0xff]  ;;  %v2798_v63 = vld [vmem:[#allocation2 + $0x198] sm:$0xff] }
 0x1c5   : > { %v2952_v42 = vmax.f32 %v2872_v23, %v2912_v6  ;;  %v3237_v13 = vmax.f32 %v3205_v40, %v5627_v26  ;;  %v3031_v31 = vmax.f32 %v2951_v58, %v2991_v55  ;;  %v2873_v7 = vmax.f32 %v2793_v28, %v2833_v39  ;;  %v3073_v33 = vld [vmem:[#allocation2 + $0x15c] sm:$0xff]  ;;  %v3074_v41 = vld [vmem:[#allocation2 + $0x16c] sm:$0xff] }
 0x1c6   : > { %v3176_v3 = vmax.f32 %v3144_v52, %v5618_v14  ;;  %4339 = vmatmul.mubr.msk.f32.gmra.mrb[30].mxu1 %vm620_vm1, %v3235_v53  ;;  %v5636_v22 = vmax.f32 %v3030_v20, %v3070_v35  ;;  %v3207_v44 = vmax.f32 %v3175_v36, %v5627_v26  ;;  %v3145_v60 = vmax.f32 %v5596_v57, %v5607_v48  ;;  %v2915_v11 = vld [vmem:[#allocation2 + $0x172] sm:$0xff]  ;;  %v2916_v28 = vld [vmem:[#allocation2 + $0x182] sm:$0xff] }
 0x1c7   : > { %v3032_v8 = vmax.f32 %v2952_v42, %v2992_v50  ;;  %4341 = vmatprep.mubr.msk.f32.mxu1 %vm620_vm1, %v3236_v45  ;;  %v5642_v24 = vmax.f32 %v3031_v31, %v3071_v38  ;;  %v2953_v37 = vmax.f32 %v2873_v7, %v2913_v62  ;;  %v2874_v16 = vmax.f32 %v2794_v27, %v2834_v19  ;;  %v2995_v52 = vld [vmem:[#allocation2 + $0x173] sm:$0xff]  ;;  %v2996_v27 = vld [vmem:[#allocation2 + $0x183] sm:$0xff]  ;;  %v2997_v7 = vld [vmem:[#allocation2 + $0x18b] sm:$0xff] }
 0x1c8   : > { %v3146_v34 = vmax.f32 %v5601_v56, %v5618_v14  ;;  %v3238_v15 = vmax.f32 %v3206_v61, %v5636_v22  ;;  %v3208_v0 = vmax.f32 %v3176_v3, %v5636_v22  ;;  %v3177_v57 = vmax.f32 %v3145_v60, %v5627_v26  ;;  %v2797_v56 = vld [vmem:[#allocation2 + $0x188] sm:$0xff]  ;;  %v3075_v50 = vld [vmem:[#allocation2 + $0x174] sm:$0xff] }
 0x1c9   : > { %v5647_v4 = vmax.f32 %v3032_v8, %v3072_v29  ;;  %v3239_v17 = vmax.f32 %v3207_v44, %v5642_v24  ;;  %v3033_v54 = vmax.f32 %v2953_v37, %v2993_v21  ;;  %v2954_v59 = vmax.f32 %v2874_v16, %v2914_v1  ;;  %v2917_v61 = vld [vmem:[#allocation2 + $0x18a] sm:$0xff]  ;;  %v2839_v35 = vld [vmem:[#allocation2 + $0x1a1] sm:$0xff] }
 0x1ca   : > { %v3178_v53 = vmax.f32 %v3146_v34, %v5636_v22  ;;  %4342 = vmatmul.mubr.msk.f32.gmra.mrb[0].mxu1 %vm620_vm1, %v3237_v13  ;;  %v3209_v46 = vmax.f32 %v3177_v57, %v5642_v24  ;;  %v2875_v12 = vmax.f32 %v2795_v43, %v2835_v32  ;;  %v3147_v2 = vmax.f32 %v5607_v48, %v5627_v26  ;;  %v2838_v48 = vld [vmem:[#allocation2 + $0x199] sm:$0xff]  ;;  %v3076_v8 = vld [vmem:[#allocation2 + $0x184] sm:$0xff]  ;;  %v3077_v60 = vld [vmem:[#allocation2 + $0x18c] sm:$0xff] }
 0x1cb   : > { %v3240_v49 = vmax.f32 %v3208_v0, %v5647_v4  ;;  %4344 = vmatprep.mubr.msk.f32.mxu1 %vm620_vm1, %v3238_v15  ;;  %v5659_v40 = vmax.f32 %v3033_v54, %v3073_v33  ;;  %v3034_v51 = vmax.f32 %v2954_v59, %v2994_v30  ;;  %v2876_v5 = vmax.f32 %v2796_v10, %v2836_v9  ;;  %v2799_v13 = vld [vmem:[#allocation2 + $0x1a0] sm:$0xff]  ;;  %v2800_v0 = vld [vmem:[#allocation2 + $0x1b0] sm:$0xff]  ;;  %v2801_v54 = vld [vmem:[#allocation2 + $0x1b8] sm:$0xff] }
 0x1cc   : > { %v3210_v25 = vmax.f32 %v3178_v53, %v5647_v4  ;;  %v2955_v47 = vmax.f32 %v2875_v12, %v2915_v11  ;;  %v3179_v23 = vmax.f32 %v3147_v2, %v5642_v24  ;;  %v3148_v39 = vmax.f32 %v5618_v14, %v5636_v22  ;;  %v2918_v37 = vld [vmem:[#allocation2 + $0x19a] sm:$0xff]  ;;  %v2840_v57 = vld [vmem:[#allocation2 + $0x1b1] sm:$0xff]  ;;  %v2842_v33 = vld [vmem:[#allocation2 + $0x1c9] sm:$0xff] }
 0x1cd   : > { %v2877_v45 = vmax.f32 %v2797_v56, %v2837_v18  ;;  %v3241_v58 = vmax.f32 %v3209_v46, %v5659_v40  ;;  %v5666_v6 = vmax.f32 %v3034_v51, %v3074_v41  ;;  %v2956_v20 = vmax.f32 %v2876_v5, %v2916_v28  ;;  %v2998_v43 = vld [vmem:[#allocation2 + $0x19b] sm:$0xff]  ;;  %v2920_v18 = vld [vmem:[#allocation2 + $0x1b2] sm:$0xff]  ;;  %v2999_v2 = vld [vmem:[#allocation2 + $0x1a3] sm:$0xff] }
 0x1ce   : > { %v3149_v55 = vmax.f32 %v5627_v26, %v5642_v24  ;;  %4345 = vmatmul.mubr.msk.f32.gmra.mrb[2].mxu1 %vm620_vm1, %v3239_v17  ;;  %v3035_v36 = vmax.f32 %v2955_v47, %v2995_v52  ;;  %v3211_v42 = vmax.f32 %v3179_v23, %v5659_v40  ;;  %v3180_v14 = vmax.f32 %v3148_v39, %v5647_v4  ;;  %v2919_v17 = vld [vmem:[#allocation2 + $0x1a2] sm:$0xff]  ;;  %v3000_v23 = vld [vmem:[#allocation2 + $0x1b3] sm:$0xff]  ;;  %v2922_v39 = vld [vmem:[#allocation2 + $0x1ca] sm:$0xff] }
 0x1cf   : > { %v2957_v19 = vmax.f32 %v2877_v45, %v2917_v61  ;;  %4347 = vmatprep.mubr.msk.f32.mxu1 %vm620_vm1, %v3240_v49  ;;  %v3242_v31 = vmax.f32 %v3210_v25, %v5666_v6  ;;  %v3036_v3 = vmax.f32 %v2956_v20, %v2996_v27  ;;  %v2878_v38 = vmax.f32 %v2798_v63, %v2838_v48  ;;  %v2802_v49 = vld [vmem:[#allocation2 + $0x1c8] sm:$0xff]  ;;  %v3078_v30 = vld [vmem:[#allocation2 + $0x19c] sm:$0xff]  ;;  %v2803_v20 = vld [vmem:[#allocation2 + $0x1d0] sm:$0xff] }
 0x1d0   : > { %v3181_v26 = vmax.f32 %v3149_v55, %v5659_v40  ;;  %v5676_v44 = vmax.f32 %v3035_v36, %v3075_v50  ;;  %v3212_v29 = vmax.f32 %v3180_v14, %v5666_v6  ;;  %v3150_v21 = vmax.f32 %v5636_v22, %v5647_v4  ;;  %v2841_v22 = vld [vmem:[#allocation2 + $0x1b9] sm:$0xff]  ;;  %v2843_v61 = vld [vmem:[#allocation2 + $0x1d1] sm:$0xff]  ;;  %v3079_v55 = vld [vmem:[#allocation2 + $0x1a4] sm:$0xff] }
 0x1d1   : > { %v3037_v62 = vmax.f32 %v2957_v19, %v2997_v7  ;;  %v3116_v16 = vmax.f32 %v3036_v3, %v3076_v8  ;;  %v2958_v34 = vmax.f32 %v2878_v38, %v2918_v37  ;;  %v2879_v32 = vmax.f32 %v2799_v13, %v2839_v35  ;;  %v2921_v25 = vld [vmem:[#allocation2 + $0x1ba] sm:$0xff]  ;;  %v3002_v14 = vld [vmem:[#allocation2 + $0x1cb] sm:$0xff] }
 0x1d2   : > { %v3151_v15 = vmax.f32 %v5642_v24, %v5659_v40  ;;  %4348 = vmatmul.mubr.msk.f32.gmra.mrb[4].mxu1 %vm620_vm1, %v3241_v58  ;;  %v3213_v10 = vmax.f32 %v3181_v26, %v5676_v44  ;;  %v3182_v9 = vmax.f32 %v3150_v21, %v5666_v6  ;;  %v3243_v59 = vmax.f32 %v3211_v42, %v5676_v44  ;;  %v3001_v48 = vld [vmem:[#allocation2 + $0x1bb] sm:$0xff]  ;;  %v3003_v37 = vld [vmem:[#allocation2 + $0x1d3] sm:$0xff] }
 0x1d3   : > { %v5684_v1 = vmax.f32 %v3037_v62, %v3077_v60  ;;  %4350 = vmatprep.mubr.msk.f32.mxu1 %vm620_vm1, %v3242_v31  ;;  %v3038_v53 = vmax.f32 %v2958_v34, %v2998_v43  ;;  %v2959_v56 = vmax.f32 %v2879_v32, %v2919_v17  ;;  %v3244_v46 = vmax.f32 %v3212_v29, %v3116_v16  ;;  %v3080_v42 = vld [vmem:[#allocation2 + $0x1b4] sm:$0xff]  ;;  %v3081_v26 = vld [vmem:[#allocation2 + $0x1bc] sm:$0xff]  ;;  %v3082_v60 = vld [vmem:[#allocation2 + $0x1cc] sm:$0xff] }
 0x1d4   : > { %v3183_v24 = vmax.f32 %v3151_v15, %v5676_v44  ;;  %v3214_v12 = vmax.f32 %v3182_v9, %v3116_v16  ;;  %v2880_v51 = vmax.f32 %v2800_v0, %v2840_v57  ;;  %v3152_v41 = vmax.f32 %v5647_v4, %v5666_v6  ;;  %v3083_v9 = vld [vmem:[#allocation2 + $0x1d4] sm:$0xff] }
 0x1d5   : > { %v3245_v11 = vmax.f32 %v3213_v10, %v5684_v1  ;;  %v3118_v5 = vmax.f32 %v3038_v53, %v3078_v30  ;;  %v3039_v47 = vmax.f32 %v2959_v56, %v2999_v2  ;;  %v2881_v28 = vmax.f32 %v2801_v54, %v2841_v22 }
 0x1d6   : > { %4351 = vmatmul.mubr.msk.f32.gmra.mrb[6].mxu1 %vm620_vm1, %v3243_v59  ;;  %v2960_v45 = vmax.f32 %v2880_v51, %v2920_v18  ;;  %v3184_v63 = vmax.f32 %v3152_v41, %v3116_v16  ;;  %v3153_v58 = vmax.f32 %v5659_v40, %v5676_v44  ;;  %v2882_v52 = vmax.f32 %v2802_v49, %v2842_v33  ;;  %v2923_v40 = vld [vmem:[#allocation2 + $0x1d2] sm:$0xff] }
 0x1d7   : > { %4353 = vmatprep.mubr.msk.f32.mxu1 %vm620_vm1, %v3244_v46  ;;  %v3246_v4 = vmax.f32 %v3214_v12, %v3118_v5  ;;  %v3215_v36 = vmax.f32 %v3183_v24, %v5684_v1  ;;  %v2961_v27 = vmax.f32 %v2881_v28, %v2921_v25  ;;  %v3154_v19 = vmax.f32 %v5666_v6, %v3116_v16 }
 0x1d8   : > { %v3119_v13 = vmax.f32 %v3039_v47, %v3079_v55  ;;  %v3040_v35 = vmax.f32 %v2960_v45, %v3000_v23  ;;  %v3185_v31 = vmax.f32 %v3153_v58, %v5684_v1  ;;  %v2962_v50 = vmax.f32 %v2882_v52, %v2922_v39 }
 0x1d9   : > { %v3216_v3 = vmax.f32 %v3184_v63, %v3118_v5  ;;  %v3041_v7 = vmax.f32 %v2961_v27, %v3001_v48  ;;  %v3186_v38 = vmax.f32 %v3154_v19, %v3118_v5  ;;  %v2883_v8 = vmax.f32 %v2803_v20, %v2843_v61  ;;  %v5753_v19 = vld [vmem:[%s5885_s4] ss:$0 sm:$0xff] }
 0x1da   : > { %4354 = vmatmul.mubr.msk.f32.gmra.mrb[8].mxu1 %vm620_vm1, %v3245_v11  ;;  %v3120_v29 = vmax.f32 %v3040_v35, %v3080_v42  ;;  %v3042_v62 = vmax.f32 %v2962_v50, %v3002_v14  ;;  %v3155_v6 = vmax.f32 %v5676_v44, %v5684_v1  ;;  %v3247_v16 = vmax.f32 %v3215_v36, %v3119_v13 }
 0x1db   : > { %4356 = vmatprep.mubr.msk.f32.mxu1 %vm620_vm1, %v3246_v4  ;;  %v2963_v21 = vmax.f32 %v2883_v8, %v2923_v40  ;;  %v3121_v34 = vmax.f32 %v3041_v7, %v3081_v26  ;;  %v3217_v43 = vmax.f32 %v3185_v31, %v3119_v13 }
 0x1dc   : > { %v3187_v32 = vmax.f32 %v3155_v6, %v3119_v13  ;;  %v3248_v15 = vmax.f32 %v3216_v3, %v3120_v29  ;;  %v3122_v0 = vmax.f32 %v3042_v62, %v3082_v60  ;;  %v3218_v57 = vmax.f32 %v3186_v38, %v3120_v29 }
 0x1dd   : > { %v3043_v10 = vmax.f32 %v2963_v21, %v3003_v37  ;;  %v3249_v17 = vmax.f32 %v3217_v43, %v3121_v34 }
 0x1de   : > { %4357 = vmatmul.mubr.msk.f32.gmra.mrb[10].mxu1 %vm620_vm1, %v3247_v16  ;;  %v3219_v22 = vmax.f32 %v3187_v32, %v3121_v34  ;;  %v3250_v44 = vmax.f32 %v3218_v57, %v3122_v0 }
 0x1df   : > { %4359 = vmatprep.mubr.msk.f32.mxu1 %vm620_vm1, %v3248_v15  ;;  %v3123_v54 = vmax.f32 %v3043_v10, %v3083_v9 }
 0x1e1   : > { %v3251_v1 = vmax.f32 %v3219_v22, %v3123_v54 }
 0x1e2   : > { %4360 = vmatmul.mubr.msk.f32.gmra.mrb[12].mxu1 %vm620_vm1, %v3249_v17 }
 0x1e3   : > { %4362 = vmatprep.mubr.msk.f32.mxu1 %vm620_vm1, %v3250_v44 }
 0x1e6   : > { %4363 = vmatmul.mubr.msk.f32.gmra.mrb[14].mxu1 %vm620_vm1, %v3251_v1 }
 0x20a   : > { %v5710_v59 = vpop.f32.mrb[48].mxu0 }
 0x20b   : > { %v5712_v53 = vpop.f32.mrb[49].mxu0 }
 0x211   : > { %v5714_v56 = vpop.f32.mrb[50].mxu0 }
 0x212   : > { %v5716_v24 = vpop.f32.mrb[51].mxu0 }
 0x21e   : > { %v5718_v18 = vpop.f32.mrb[52].mxu0 }
 0x21f   : > { %v5720_v49 = vpop.f32.mrb[53].mxu0 }
 0x226   : > { %v5722_v33 = vpop.f32.mrb[54].mxu0 }
 0x227   : > { %v5724_v46 = vpop.f32.mrb[55].mxu0 }
 0x230   : > { %v5726_v30 = vpop.f32.mrb[56].mxu0 }
 0x231   : > { %v5728_v12 = vpop.f32.mrb[57].mxu0 }
 0x239   : > { %v5730_v2 = vpop.f32.mrb[58].mxu0 }
 0x23a   : > { %v5732_v51 = vpop.f32.mrb[59].mxu0 }
 0x23f   : > { %v5734_v41 = vpop.f32.mrb[60].mxu0 }
 0x240   : > { %v5736_v25 = vpop.f32.mrb[61].mxu0 }
 0x244   : > { %v5738_v11 = vpop.f32.mrb[62].mxu0 }
 0x245   : > { %v5740_v5 = vpop.f32.mrb[63].mxu0 }
 0x248   : > { %v4219_v47 = vpop.f32.mrb[32].mxu0 }
 0x249   : > { %v1695_v23 = vpop.f32.mrb[33].mxu0 }
 0x24c   : > { %v4222_v28 = vpop.f32.mrb[34].mxu0 }
 0x24d   : > { %v1705_v39 = vpop.f32.mrb[35].mxu0 }
 0x251   : > { %v4225_v45 = vpop.f32.mrb[36].mxu0 }
 0x252   : > { %v1715_v63 = vpop.f32.mrb[37].mxu0 }
 0x255   : > { %v4228_v48 = vpop.f32.mrb[38].mxu0 }
 0x256   : > { %v1725_v58 = vpop.f32.mrb[39].mxu0 }
 0x259   : > { %v4231_v52 = vpop.f32.mrb[40].mxu0 }
 0x25a   : > { %v1735_v20 = vpop.f32.mrb[41].mxu0 }
 0x25e   : > { %v4234_v61 = vpop.f32.mrb[42].mxu0 }
 0x25f   : > { %v1745_v4 = vpop.f32.mrb[43].mxu0 }
 0x263   : > { %v5742_v55 = vpop.f32.mrb[44].mxu0 }
 0x264   : > { %v5744_v36 = vpop.f32.mrb[45].mxu0 }
 0x267   : > { %v5746_v42 = vpop.f32.mrb[46].mxu0 }
 0x268   : > { %v5748_v27 = vpop.f32.mrb[47].mxu0 }
 0x27d   : > { %v4319_v14 = vpop.f32.mrb[16].mxu1 }
 0x27e   : > { %v4367_v13 = vadd.f32 %v4319_v14, %v4219_v47  ;;  %v3419_v35 = vpop.f32.mrb[17].mxu1 }
 0x27f   : > { %v4368_v31 = vadd.f32 %v3419_v35, %v1695_v23 }
 0x280   : > { %v3618_v50 = vadd.f32 %v4367_v13, %v5753_v19 }
 0x281   : > { %v3617_v40 = vadd.f32 %v4368_v31, %v5753_v19  ;;  %v4322_v3 = vpop.f32.mrb[18].mxu1 }
 0x282   : > { %v3650_v7 = vmax.f32 %v3618_v50, 0.0  ;;  %v4369_v26 = vadd.f32 %v4322_v3, %v4222_v28  ;;  %v3429_v38 = vpop.f32.mrb[19].mxu1 }
 0x283   : > { %v3649_v8 = vmax.f32 %v3617_v40, 0.0  ;;  %v4370_v29 = vadd.f32 %v3429_v38, %v1705_v39 }
 0x284   : > { %3682 = vst.msk [vmem:[%s5761_s15 + $0x8] sm:$0xff] %vm265_vm0, %v3650_v7  ;;  %v3620_v62 = vadd.f32 %v4369_v26, %v5753_v19 }
 0x285   : > { %3681 = vst.msk [vmem:[%s5761_s15] sm:$0xff] %vm265_vm0, %v3649_v8  ;;  %v3619_v60 = vadd.f32 %v4370_v29, %v5753_v19  ;;  %v4325_v37 = vpop.f32.mrb[20].mxu1 }
 0x286   : > { %v3652_v6 = vmax.f32 %v3620_v62, 0.0  ;;  %v4371_v21 = vadd.f32 %v4325_v37, %v4225_v45  ;;  %v3439_v16 = vpop.f32.mrb[21].mxu1 }
 0x287   : > { %v3651_v34 = vmax.f32 %v3619_v60, 0.0  ;;  %v4372_v43 = vadd.f32 %v3439_v16, %v1715_v63 }
 0x288   : > { %3684 = vst.msk [vmem:[%s5761_s15 + $0x18] sm:$0xff] %vm265_vm0, %v3652_v6  ;;  %v3622_v32 = vadd.f32 %v4371_v21, %v5753_v19 }
 0x289   : > { %3683 = vst.msk [vmem:[%s5761_s15 + $0x10] sm:$0xff] %vm265_vm0, %v3651_v34  ;;  %v3621_v15 = vadd.f32 %v4372_v43, %v5753_v19  ;;  %v4328_v0 = vpop.f32.mrb[22].mxu1 }
 0x28a   : > { %v3654_v57 = vmax.f32 %v3622_v32, 0.0  ;;  %v4373_v10 = vadd.f32 %v4328_v0, %v4228_v48  ;;  %v3449_v9 = vpop.f32.mrb[23].mxu1 }
 0x28b   : > { %v3653_v17 = vmax.f32 %v3621_v15, 0.0  ;;  %v4374_v54 = vadd.f32 %v3449_v9, %v1725_v58 }
 0x28c   : > { %3686 = vst.msk [vmem:[%s5761_s15 + $0x28] sm:$0xff] %vm265_vm0, %v3654_v57  ;;  %v3624_v22 = vadd.f32 %v4373_v10, %v5753_v19 }
 0x28d   : > { %3685 = vst.msk [vmem:[%s5761_s15 + $0x20] sm:$0xff] %vm265_vm0, %v3653_v17  ;;  %v3623_v44 = vadd.f32 %v4374_v54, %v5753_v19  ;;  %v4331_v1 = vpop.f32.mrb[24].mxu1 }
 0x28e   : > { %v3656_v47 = vmax.f32 %v3624_v22, 0.0  ;;  %v4375_v23 = vadd.f32 %v4331_v1, %v4231_v52  ;;  %v3459_v28 = vpop.f32.mrb[25].mxu1 }
 0x28f   : > { %v3655_v39 = vmax.f32 %v3623_v44, 0.0  ;;  %v4376_v45 = vadd.f32 %v3459_v28, %v1735_v20 }
 0x290   : > { %3688 = vst.msk [vmem:[%s5761_s15 + $0x38] sm:$0xff] %vm265_vm0, %v3656_v47  ;;  %v3626_v63 = vadd.f32 %v4375_v23, %v5753_v19 }
 0x291   : > { %3687 = vst.msk [vmem:[%s5761_s15 + $0x30] sm:$0xff] %vm265_vm0, %v3655_v39  ;;  %v3625_v48 = vadd.f32 %v4376_v45, %v5753_v19  ;;  %v4334_v58 = vpop.f32.mrb[26].mxu1 }
 0x292   : > { %v3658_v14 = vmax.f32 %v3626_v63, 0.0  ;;  %v4377_v13 = vadd.f32 %v4334_v58, %v4234_v61  ;;  %v3469_v35 = vpop.f32.mrb[27].mxu1 }
 0x293   : > { %v3657_v31 = vmax.f32 %v3625_v48, 0.0  ;;  %v4378_v52 = vadd.f32 %v3469_v35, %v1745_v4 }
 0x294   : > { %3690 = vst.msk [vmem:[%s5761_s15 + $0x48] sm:$0xff] %vm265_vm0, %v3658_v14  ;;  %v3628_v20 = vadd.f32 %v4377_v13, %v5753_v19 }
 0x295   : > { %3689 = vst.msk [vmem:[%s5761_s15 + $0x40] sm:$0xff] %vm265_vm0, %v3657_v31  ;;  %v3627_v50 = vadd.f32 %v4378_v52, %v5753_v19  ;;  %v4337_v40 = vpop.f32.mrb[28].mxu1 }
 0x296   : > { %v3660_v3 = vmax.f32 %v3628_v20, 0.0  ;;  %v4379_v7 = vadd.f32 %v4337_v40, %v5742_v55  ;;  %v3479_v26 = vpop.f32.mrb[29].mxu1 }
 0x297   : > { %v3659_v61 = vmax.f32 %v3627_v50, 0.0  ;;  %v4380_v38 = vadd.f32 %v3479_v26, %v5744_v36 }
 0x298   : > { %3692 = vst.msk [vmem:[%s5761_s15 + $0x58] sm:$0xff] %vm265_vm0, %v3660_v3  ;;  %v3630_v4 = vadd.f32 %v4379_v7, %v5753_v19 }
 0x299   : > { %3691 = vst.msk [vmem:[%s5761_s15 + $0x50] sm:$0xff] %vm265_vm0, %v3659_v61  ;;  %v3629_v8 = vadd.f32 %v4380_v38, %v5753_v19  ;;  %v4340_v29 = vpop.f32.mrb[30].mxu1 }
 0x29a   : > { %v3662_v62 = vmax.f32 %v3630_v4, 0.0  ;;  %v4381_v60 = vadd.f32 %v4340_v29, %v5746_v42  ;;  %v3489_v55 = vpop.f32.mrb[31].mxu1 }
 0x29b   : > { %v3661_v37 = vmax.f32 %v3629_v8, 0.0  ;;  %v4382_v6 = vadd.f32 %v3489_v55, %v5748_v27 }
 0x29c   : > { %3694 = vst.msk [vmem:[%s5761_s15 + $0x68] sm:$0xff] %vm265_vm0, %v3662_v62  ;;  %v3632_v36 = vadd.f32 %v4381_v60, %v5753_v19 }
 0x29d   : > { %3693 = vst.msk [vmem:[%s5761_s15 + $0x60] sm:$0xff] %vm265_vm0, %v3661_v37  ;;  %v3631_v21 = vadd.f32 %v4382_v6, %v5753_v19  ;;  %v4343_v16 = vpop.f32.mrb[0].mxu1 }
 0x29e   : > { %v3664_v34 = vmax.f32 %v3632_v36, 0.0  ;;  %v4383_v43 = vadd.f32 %v4343_v16, %v5710_v59  ;;  %v3499_v42 = vpop.f32.mrb[1].mxu1 }
 0x29f   : > { %v3663_v32 = vmax.f32 %v3631_v21, 0.0  ;;  %v4384_v15 = vadd.f32 %v3499_v42, %v5712_v53 }
 0x2a0   : > { %3696 = vst.msk [vmem:[%s5761_s15 + $0x78] sm:$0xff] %vm265_vm0, %v3664_v34  ;;  %v3634_v27 = vadd.f32 %v4383_v43, %v5753_v19 }
 0x2a1   : > { %3695 = vst.msk [vmem:[%s5761_s15 + $0x70] sm:$0xff] %vm265_vm0, %v3663_v32  ;;  %v3633_v0 = vadd.f32 %v4384_v15, %v5753_v19  ;;  %v4346_v57 = vpop.f32.mrb[2].mxu1 }
 0x2a2   : > { %v3666_v10 = vmax.f32 %v3634_v27, 0.0  ;;  %v4385_v9 = vadd.f32 %v4346_v57, %v5714_v56  ;;  %v3509_v59 = vpop.f32.mrb[3].mxu1 }
 0x2a3   : > { %v3665_v17 = vmax.f32 %v3633_v0, 0.0  ;;  %v4386_v54 = vadd.f32 %v3509_v59, %v5716_v24 }
 0x2a4   : > { %3698 = vst.msk [vmem:[%s5761_s15 + $0x88] sm:$0xff] %vm265_vm0, %v3666_v10  ;;  %v3636_v53 = vadd.f32 %v4385_v9, %v5753_v19 }
 0x2a5   : > { %3697 = vst.msk [vmem:[%s5761_s15 + $0x80] sm:$0xff] %vm265_vm0, %v3665_v17  ;;  %v3635_v22 = vadd.f32 %v4386_v54, %v5753_v19  ;;  %v4349_v44 = vpop.f32.mrb[4].mxu1 }
 0x2a6   : > { %v3668_v1 = vmax.f32 %v3636_v53, 0.0  ;;  %v4387_v47 = vadd.f32 %v4349_v44, %v5718_v18  ;;  %v3519_v56 = vpop.f32.mrb[5].mxu1 }
 0x2a7   : > { %v3667_v23 = vmax.f32 %v3635_v22, 0.0  ;;  %v4388_v28 = vadd.f32 %v3519_v56, %v5720_v49 }
 0x2a8   : > { %3700 = vst.msk [vmem:[%s5761_s15 + $0x98] sm:$0xff] %vm265_vm0, %v3668_v1  ;;  %v3638_v24 = vadd.f32 %v4387_v47, %v5753_v19 }
 0x2a9   : > { %3699 = vst.msk [vmem:[%s5761_s15 + $0x90] sm:$0xff] %vm265_vm0, %v3667_v23  ;;  %v3637_v39 = vadd.f32 %v4388_v28, %v5753_v19  ;;  %v4352_v45 = vpop.f32.mrb[6].mxu1 }
 0x2aa   : > { %v3670_v63 = vmax.f32 %v3638_v24, 0.0  ;;  %v4389_v48 = vadd.f32 %v4352_v45, %v5722_v33  ;;  %v3529_v18 = vpop.f32.mrb[7].mxu1 }
 0x2ab   : > { %v3669_v58 = vmax.f32 %v3637_v39, 0.0  ;;  %v4390_v14 = vadd.f32 %v3529_v18, %v5724_v46 }
 0x2ac   : > { %3702 = vst.msk [vmem:[%s5761_s15 + $0xa8] sm:$0xff] %vm265_vm0, %v3670_v63  ;;  %v3640_v49 = vadd.f32 %v4389_v48, %v5753_v19 }
 0x2ad   : > { %3701 = vst.msk [vmem:[%s5761_s15 + $0xa0] sm:$0xff] %vm265_vm0, %v3669_v58  ;;  %v3639_v13 = vadd.f32 %v4390_v14, %v5753_v19  ;;  %v4355_v35 = vpop.f32.mrb[8].mxu1 }
 0x2ae   : > { %v3672_v31 = vmax.f32 %v3640_v49, 0.0  ;;  %v4391_v52 = vadd.f32 %v4355_v35, %v5726_v30  ;;  %v3539_v33 = vpop.f32.mrb[9].mxu1 }
 0x2af   : > { %v3671_v20 = vmax.f32 %v3639_v13, 0.0  ;;  %v4392_v50 = vadd.f32 %v3539_v33, %v5728_v12 }
 0x2b0   : > { %3704 = vst.msk [vmem:[%s5761_s15 + $0xb8] sm:$0xff] %vm265_vm0, %v3672_v31  ;;  %v3642_v46 = vadd.f32 %v4391_v52, %v5753_v19 }
 0x2b1   : > { %3703 = vst.msk [vmem:[%s5761_s15 + $0xb0] sm:$0xff] %vm265_vm0, %v3671_v20  ;;  %v3641_v40 = vadd.f32 %v4392_v50, %v5753_v19  ;;  %v4358_v3 = vpop.f32.mrb[10].mxu1 }
 0x2b2   : > { %v3674_v7 = vmax.f32 %v3642_v46, 0.0  ;;  %v4393_v26 = vadd.f32 %v4358_v3, %v5730_v2  ;;  %v3549_v30 = vpop.f32.mrb[11].mxu1 }
 0x2b3   : > { %v3673_v61 = vmax.f32 %v3641_v40, 0.0  ;;  %v4394_v38 = vadd.f32 %v3549_v30, %v5732_v51 }
 0x2b4   : > { %3706 = vst.msk [vmem:[%s5761_s15 + $0xc8] sm:$0xff] %vm265_vm0, %v3674_v7  ;;  %v3644_v12 = vadd.f32 %v4393_v26, %v5753_v19 }
 0x2b5   : > { %3705 = vst.msk [vmem:[%s5761_s15 + $0xc0] sm:$0xff] %vm265_vm0, %v3673_v61  ;;  %v3643_v4 = vadd.f32 %v4394_v38, %v5753_v19  ;;  %v4361_v8 = vpop.f32.mrb[12].mxu1 }
 0x2b6   : > { %v3676_v29 = vmax.f32 %v3644_v12, 0.0  ;;  %v4395_v62 = vadd.f32 %v4361_v8, %v5734_v41  ;;  %v3559_v2 = vpop.f32.mrb[13].mxu1 }
 0x2b7   : > { %v3675_v60 = vmax.f32 %v3643_v4, 0.0  ;;  %v4396_v55 = vadd.f32 %v3559_v2, %v5736_v25 }
 0x2b8   : > { %3708 = vst.msk [vmem:[%s5761_s15 + $0xd8] sm:$0xff] %vm265_vm0, %v3676_v29  ;;  %v3646_v51 = vadd.f32 %v4395_v62, %v5753_v19 }
 0x2b9   : > { %3707 = vst.msk [vmem:[%s5761_s15 + $0xd0] sm:$0xff] %vm265_vm0, %v3675_v60  ;;  %v3645_v37 = vadd.f32 %v4396_v55, %v5753_v19  ;;  %v4364_v6 = vpop.f32.mrb[14].mxu1 }
 0x2ba   : > { %v3678_v36 = vmax.f32 %v3646_v51, 0.0  ;;  %v4397_v21 = vadd.f32 %v4364_v6, %v5738_v11  ;;  %v3569_v41 = vpop.f32.mrb[15].mxu1 }
 0x2bb   : > { %v3677_v16 = vmax.f32 %v3645_v37, 0.0  ;;  %v4398_v34 = vadd.f32 %v3569_v41, %v5740_v5 }
 0x2bc   : > { %3710 = vst.msk [vmem:[%s5761_s15 + $0xe8] sm:$0xff] %vm265_vm0, %v3678_v36  ;;  %v3648_v25 = vadd.f32 %v4397_v21, %v5753_v19 }
 0x2bd   : > { %3709 = vst.msk [vmem:[%s5761_s15 + $0xe0] sm:$0xff] %vm265_vm0, %v3677_v16  ;;  %v3647_v43 = vadd.f32 %v4398_v34, %v5753_v19 }
 0x2be   : > { %v3680_v42 = vmax.f32 %v3648_v25, 0.0 }
 0x2bf   : > { %v3679_v32 = vmax.f32 %v3647_v43, 0.0 }
 0x2c0   : > { %3712 = vst.msk [vmem:[%s5761_s15 + $0xf8] sm:$0xff] %vm265_vm0, %v3680_v42 }
 0x2c1   : > { %3711 = vst.msk [vmem:[%s5761_s15 + $0xf0] sm:$0xff] %vm265_vm0, %v3679_v32 }
 0x2c2 PF: > { %s15_s18 = sadd.s32 1, %s4478_s18  }
 0x2c3   : > { %p12_p4 = scmp.ge.s32.totalorder %s15_s18, 4  }
 0x2c5   :  { %14 = sbr.rel (!%p12_p4) target bundleno = 1 (0x1), region = 74 }

</bundles_post_ra>
